<compile_context>
chip_gen: v7x
topology: tpu7x:2x2x1
jax: 0.10.0
libtpu: 0.0.40
codegen_flags: <defaults>
</compile_context>

<pallas_src>
import functools

import jax
import jax.numpy as jnp
from jax import lax
from jax.experimental import pallas as pl
from jax.experimental.pallas import tpu as pltpu


_VMEM_LIMIT_BYTES = 48 * 1024 * 1024   # explicit scoped-VMEM limit (fits v7x's 64 MiB)
_VMEM_BUDGET_BYTES = 20 * 1024 * 1024  # budget used to size the time block K


def _sigmoid(x):
    # sigmoid via a single tanh (one EUP op instead of exp + reciprocal).
    return 0.5 * (jnp.tanh(0.5 * x) + 1.0)


def _pick_time_block(t, b, d_in_max, hidden, budget=_VMEM_BUDGET_BYTES, cap=64):
    """Timesteps per sequential grid step, sized from a VMEM budget (not a fixed cap)."""
    bpe = 2  # bf16 activations
    per_k = 2 * (2 * b * d_in_max * bpe)      # up to 2 input blocks, double-buffered
    per_k += 2 * (b * hidden * bpe)           # output block, double-buffered
    per_k += b * 4 * hidden * 4               # f32 gate scratch
    fixed = 2 * ((d_in_max + hidden) * 4 * hidden * bpe + 4 * hidden * 4)  # weights+bias
    fixed += 2 * b * hidden * 4               # h/c state
    k = (budget - fixed) // max(per_k, 1)
    return int(max(1, min(k, cap, t)))


# ---------------------------------------------------------------------------
# Fused (input-projection + bidirectional LSTM recurrence) kernel.
# grid = (2, nT): axis 0 is the direction (megacore-parallel on v7x), axis 1 walks
# time blocks of K steps ("arbitrary": the recurrence must stay sequential).
# The backward direction reads/writes block nT-1-s (reversal via index_map) and walks
# local steps K-1..0.  h/c live in VMEM scratch and are re-initialised at s == 0.
# ---------------------------------------------------------------------------
def _bilstm_kernel(*refs, hidden, steps, n_inputs, n_blocks, t_real, unroll):
    in_refs = refs[:n_inputs]
    wih_ref, b_ref, whh_ref = refs[n_inputs:n_inputs + 3]
    out_ref = refs[n_inputs + 3]
    h_st, c_st, gx = refs[n_inputs + 4:]

    d = pl.program_id(0)   # 0 = forward, 1 = backward
    s = pl.program_id(1)   # time-block index along this direction's processing order
    H = hidden
    bsz = in_refs[0].shape[1]

    @pl.when(s == 0)
    def _():
        h_st[...] = jnp.zeros_like(h_st)
        c_st[...] = jnp.zeros_like(c_st)

    # ---- fused input projection for the whole K-step block (bf16 MXU, f32 acc) ----
    if n_inputs == 1:      # layer 0: raw input block (K, B, D)
        x = in_refs[0][...].reshape(steps * bsz, -1)
        g = jnp.dot(x, wih_ref[...], preferred_element_type=jnp.float32)
    else:                  # deep layer: previous layer's fwd / bwd halves (no concat)
        xf = in_refs[0][...].reshape(steps * bsz, H)
        xb = in_refs[1][...].reshape(steps * bsz, H)
        w = wih_ref[...]
        g = (jnp.dot(xf, w[:H], preferred_element_type=jnp.float32)
             + jnp.dot(xb, w[H:], preferred_element_type=jnp.float32))
    gx[...] = (g + b_ref[...]).reshape(steps, bsz, 4 * H)

    whh = whh_ref[...]     # (H, 4H) bf16, loaded once per block

    def body(k, carry):
        # local step index: forward walks 0..K-1, backward walks K-1..0
        kk = jnp.where(d == 0, k, steps - 1 - k)
        blk_t = jnp.where(d == 0, s, n_blocks - 1 - s)
        t_glob = blk_t * steps + kk
        valid = t_glob < t_real   # mask padded timesteps out of the state carry

        gates = gx[kk] + jnp.dot(h_st[...].astype(jnp.bfloat16), whh,
                                 preferred_element_type=jnp.float32)
        i = _sigmoid(gates[:, 0 * H:1 * H])
        f = _sigmoid(gates[:, 1 * H:2 * H])
        gg = jnp.tanh(gates[:, 2 * H:3 * H])
        o = _sigmoid(gates[:, 3 * H:4 * H])
        c_new = f * c_st[...] + i * gg
        h_new = o * jnp.tanh(c_new)
        c_st[...] = jnp.where(valid, c_new, c_st[...])
        h_st[...] = jnp.where(valid, h_new, h_st[...])
        out_ref[kk] = h_new.astype(out_ref.dtype)   # padded rows are sliced off later
        return carry

    lax.fori_loop(0, steps, body, 0, unroll=unroll)


def bilstm_layer(xs, x_idx, w_ih, bias, w_hh, *, hidden, k_steps, t_real):
    """One bidirectional LSTM layer with the input projection fused in.

    xs: list of stacked input arrays, each (S_i, T_pad, B, D_i) bf16.
    x_idx: which first-axis slice of each input array to read.
    w_ih: (2, D_in, 4H) bf16, bias: (2, 1, 4H) f32, w_hh: (2, H, 4H) bf16.
    Returns (2, T_pad, B, H) bf16 — index 0 = forward h, index 1 = backward h.
    """
    t_pad, b = xs[0].shape[1], xs[0].shape[2]
    n_blocks = t_pad // k_steps

    def _blk(d, s):  # forward reads block s; backward reads block nT-1-s
        return d * (n_blocks - 1) + (1 - 2 * d) * s

    def _make_in_spec(arr, idx0):
        d_i = arr.shape[-1]

        def idx_map(d, s):
            return (idx0, _blk(d, s), 0, 0)

        return pl.BlockSpec((None, k_steps, b, d_i), idx_map)

    in_specs = [_make_in_spec(arr, idx0) for arr, idx0 in zip(xs, x_idx)]
    in_specs += [
        pl.BlockSpec((None,) + tuple(w_ih.shape[1:]), lambda d, s: (d, 0, 0)),
        pl.BlockSpec((None, 1, 4 * hidden), lambda d, s: (d, 0, 0)),
        pl.BlockSpec((None, hidden, 4 * hidden), lambda d, s: (d, 0, 0)),
    ]

    kernel = functools.partial(
        _bilstm_kernel, hidden=hidden, steps=k_steps, n_inputs=len(xs),
        n_blocks=n_blocks, t_real=t_real, unroll=int(min(k_steps, 8)))

    return pl.pallas_call(
        kernel,
        out_shape=jax.ShapeDtypeStruct((2, t_pad, b, hidden), jnp.bfloat16),
        grid=(2, n_blocks),
        in_specs=in_specs,
        out_specs=pl.BlockSpec((None, k_steps, b, hidden),
                               lambda d, s: (d, _blk(d, s), 0, 0)),
        scratch_shapes=[
            pltpu.VMEM((b, hidden), jnp.float32),               # h state
            pltpu.VMEM((b, hidden), jnp.float32),               # c state
            pltpu.VMEM((k_steps, b, 4 * hidden), jnp.float32),  # block gates
        ],
        compiler_params=pltpu.CompilerParams(
            # direction axis -> megacore-parallel on v7x; time axis is the recurrence.
            dimension_semantics=("parallel", "arbitrary"),
            vmem_limit_bytes=_VMEM_LIMIT_BYTES),
    )(*xs, w_ih, bias, w_hh)


# ---------------------------------------------------------------------------
# FC + log_softmax head. Consumes the stacked fwd/bwd halves directly (no concat);
# class dim padded to a multiple of 128 (zero weight columns + -1e30 f32 bias).
# ---------------------------------------------------------------------------
def _fc_logsoftmax_kernel(hf_ref, hb_ref, wf_ref, wb_ref, b_ref, o_ref):
    k, b, h = hf_ref.shape
    xf = hf_ref[...].reshape(k * b, h)
    xb = hb_ref[...].reshape(k * b, h)
    logits = (jnp.dot(xf, wf_ref[...], preferred_element_type=jnp.float32)
              + jnp.dot(xb, wb_ref[...], preferred_element_type=jnp.float32)
              + b_ref[...])
    m = jnp.max(logits, axis=-1, keepdims=True)
    z = logits - m
    lse = jnp.log(jnp.sum(jnp.exp(z), axis=-1, keepdims=True))
    o_ref[...] = (z - lse).reshape(k, b, logits.shape[-1])


def fc_log_softmax(h_stacked, wf, wb, bias, *, k_steps):
    _, t_pad, b, h = h_stacked.shape
    n_blocks = t_pad // k_steps
    cp = wf.shape[1]
    return pl.pallas_call(
        _fc_logsoftmax_kernel,
        out_shape=jax.ShapeDtypeStruct((t_pad, b, cp), jnp.float32),
        grid=(n_blocks,),
        in_specs=[
            pl.BlockSpec((None, k_steps, b, h), lambda i: (0, i, 0, 0)),
            pl.BlockSpec((None, k_steps, b, h), lambda i: (1, i, 0, 0)),
            pl.BlockSpec((h, cp), lambda i: (0, 0)),
            pl.BlockSpec((h, cp), lambda i: (0, 0)),
            pl.BlockSpec((1, cp), lambda i: (0, 0)),
        ],
        out_specs=pl.BlockSpec((k_steps, b, cp), lambda i: (i, 0, 0)),
        compiler_params=pltpu.CompilerParams(
            dimension_semantics=("parallel",),
            vmem_limit_bytes=_VMEM_LIMIT_BYTES),
    )(h_stacked, h_stacked, wf, wb, bias)


# ---------------------------------------------------------------------------
# Full model forward.
# ---------------------------------------------------------------------------
def ctc_transcription_forward(x_btd, params, *, hidden, num_classes, num_layers=2):
    """x_btd: (B, T, input_size). Returns (T, B, num_classes) log-probs."""
    b, t, d = x_btd.shape
    H = hidden
    k_steps = _pick_time_block(t, b, max(d, 2 * H), H)
    n_blocks = -(-t // k_steps)
    t_pad = n_blocks * k_steps

    x = jnp.transpose(x_btd, (1, 0, 2)).astype(jnp.bfloat16)  # time-major (T, B, D)
    if t_pad != t:
        x = jnp.pad(x, ((0, t_pad - t), (0, 0), (0, 0)))
    h = x[None]  # (1, T_pad, B, D)

    for layer in range(num_layers):
        p = params[f"l{layer}"]
        xs, idxs = ([h], [0]) if layer == 0 else ([h, h], [0, 1])
        h = bilstm_layer(xs, idxs,
                         p["w_ih"].astype(jnp.bfloat16),
                         p["b"],                               # keep bias f32
                         p["w_hh"].astype(jnp.bfloat16),
                         hidden=H, k_steps=k_steps, t_real=t)

    # FC + log_softmax head (class dim padded to a multiple of 128, f32 padding math).
    c = num_classes
    cp = ((c + 127) // 128) * 128
    pad = cp - c
    wf, wb, b_fc = params["fc_w"][:H], params["fc_w"][H:], params["fc_b"]
    if pad:
        wf = jnp.pad(wf, ((0, 0), (0, pad)))
        wb = jnp.pad(wb, ((0, 0), (0, pad)))
        b_fc = jnp.pad(b_fc, (0, pad), constant_values=-1e30)  # f32 only (bf16 -> -inf)
    out = fc_log_softmax(h, wf.astype(jnp.bfloat16), wb.astype(jnp.bfloat16),
                         b_fc.reshape(1, cp), k_steps=k_steps)
    return out[:t, :, :c]   # (T, B, C) == PyTorch output.transpose(0, 1)


# ---------------------------------------------------------------------------
# Pure-JAX reference (lax.scan) with matched bf16 matmuls, for validation.
# ---------------------------------------------------------------------------
def _reference_forward(x_btd, params, hidden, num_layers):
    x = jnp.transpose(x_btd, (1, 0, 2)).astype(jnp.float32)
    H = hidden
    bf = jnp.bfloat16

    def run_dir(inp, w_ih, w_hh, bias, reverse):
        nb = inp.shape[1]
        w_ih, w_hh = w_ih.astype(bf), w_hh.astype(bf)

        def step(carry, x_t):
            hh, cc = carry
            g = (jnp.dot(x_t.astype(bf), w_ih, preferred_element_type=jnp.float32)
                 + jnp.dot(hh.astype(bf), w_hh, preferred_element_type=jnp.float32)
                 + bias)
            i = jax.nn.sigmoid(g[:, :H])
            f = jax.nn.sigmoid(g[:, H:2 * H])
            gg = jnp.tanh(g[:, 2 * H:3 * H])
            o = jax.nn.sigmoid(g[:, 3 * H:])
            cc = f * cc + i * gg
            hh = o * jnp.tanh(cc)
            return (hh, cc), hh

        init = (jnp.zeros((nb, H), jnp.float32), jnp.zeros((nb, H), jnp.float32))
        _, hs = lax.scan(step, init, inp, reverse=reverse)
        return hs

    layer_in = x
    for layer in range(num_layers):
        p = params[f"l{layer}"]
        hf = run_dir(layer_in, p["w_ih"][0], p["w_hh"][0], p["b"][0], reverse=False)
        hb = run_dir(layer_in, p["w_ih"][1], p["w_hh"][1], p["b"][1], reverse=True)
        layer_in = jnp.concatenate([hf, hb], axis=-1)

    t, nb = layer_in.shape[0], layer_in.shape[1]
    logits = (jnp.dot(layer_in.astype(bf).reshape(t * nb, -1),
                      params["fc_w"].astype(bf),
                      preferred_element_type=jnp.float32).reshape(t, nb, -1)
              + params["fc_b"])
    return jax.nn.log_softmax(logits, axis=-1)


# ---------------------------------------------------------------------------
# Deterministic parameter init (PyTorch-style uniform(-1/sqrt(H), 1/sqrt(H))).
# Weights are stored transposed w.r.t. PyTorch and stacked over [fwd, bwd];
# the two LSTM biases are pre-summed into one row per direction.
# ---------------------------------------------------------------------------
def init_params(key, input_size, hidden, num_classes, num_layers=2):
    params = {}
    bound = 1.0 / float(hidden) ** 0.5
    for layer in range(num_layers):
        d_in = input_size if layer == 0 else 2 * hidden
        w_ih, w_hh, b = [], [], []
        for _ in range(2):  # fwd, bwd
            key, k1, k2, k3, k4 = jax.random.split(key, 5)
            w_ih.append(jax.random.uniform(k1, (d_in, 4 * hidden), jnp.float32, -bound, bound))
            w_hh.append(jax.random.uniform(k2, (hidden, 4 * hidden), jnp.float32, -bound, bound))
            b_ih = jax.random.uniform(k3, (4 * hidden,), jnp.float32, -bound, bound)
            b_hh = jax.random.uniform(k4, (4 * hidden,), jnp.float32, -bound, bound)
            b.append((b_ih + b_hh).reshape(1, 4 * hidden))
        params[f"l{layer}"] = {"w_ih": jnp.stack(w_ih), "w_hh": jnp.stack(w_hh),
                               "b": jnp.stack(b)}
    fc_in = 2 * hidden
    kb = 1.0 / float(fc_in) ** 0.5
    key, k1, k2 = jax.random.split(key, 3)
    params["fc_w"] = jax.random.uniform(k1, (fc_in, num_classes), jnp.float32, -kb, kb)
    params["fc_b"] = jax.random.uniform(k2, (num_classes,), jnp.float32, -kb, kb)
    return params


if __name__ == "__main__":
    B, T = 2, 8
    INPUT_SIZE, HIDDEN, NUM_CLASSES, NUM_LAYERS = 16, 32, 16, 2

    key = jax.random.PRNGKey(0)
    key, xk = jax.random.split(key)
    x = jax.random.normal(xk, (B, T, INPUT_SIZE), dtype=jnp.float32)
    params = init_params(key, INPUT_SIZE, HIDDEN, NUM_CLASSES, NUM_LAYERS)

    fwd = jax.jit(functools.partial(ctc_transcription_forward, hidden=HIDDEN,
                                    num_classes=NUM_CLASSES, num_layers=NUM_LAYERS))
    out = jax.block_until_ready(fwd(x, params))

    assert out.shape == (T, B, NUM_CLASSES), out.shape
    # log_softmax sanity: rows sum to ~1 in prob space (padded classes contribute ~0)
    assert jnp.allclose(jnp.sum(jnp.exp(out), axis=-1), 1.0, atol=1e-3)

    # numerical check vs a pure-JAX (lax.scan) reference using matched bf16 matmuls
    ref = _reference_forward(x, params, HIDDEN, NUM_LAYERS)
    max_diff = float(jnp.max(jnp.abs(out - ref)))
    assert max_diff < 3e-2, max_diff

    print("KERNEL_OK")
</pallas_src>

<mosaic_0001>
module attributes {stable_mosaic.version = 11 : i64} {
  func.func @_bilstm_kernel(%arg0: i32, %arg1: i32, %arg2: memref<1x8x2x16xbf16, #tpu.memory_space<vmem>>, %arg3: memref<1x16x128xbf16, #tpu.memory_space<vmem>>, %arg4: memref<1x1x128xf32, #tpu.memory_space<vmem>>, %arg5: memref<1x32x128xbf16, #tpu.memory_space<vmem>>, %arg6: memref<1x8x2x32xbf16, #tpu.memory_space<vmem>>, %arg7: memref<2x32xf32, #tpu.memory_space<vmem>>, %arg8: memref<2x32xf32, #tpu.memory_space<vmem>>, %arg9: memref<8x2x128xf32, #tpu.memory_space<vmem>>) attributes {dimension_semantics = [#tpu.dimension_semantics<parallel>, #tpu.dimension_semantics<arbitrary>], iteration_bounds = array<i64: 2, 1>, scalar_prefetch = 0 : i64, scratch_operands = 3 : i64, tpu.core_type = #tpu.core_type<tc>, window_params = [{transform_indices = @transform_0, window_bounds = array<i64: 1, 8, 2, 16>}, {transform_indices = @transform_1, window_bounds = array<i64: 1, 16, 128>}, {transform_indices = @transform_2, window_bounds = array<i64: 1, 1, 128>}, {transform_indices = @transform_3, window_bounds = array<i64: 1, 32, 128>}, {transform_indices = @transform_4, window_bounds = array<i64: 1, 8, 2, 32>}]} {
    %c0_i32 = arith.constant 0 : i32
    %0 = arith.cmpi eq, %arg1, %c0_i32 : i32
    %1 = arith.extui %0 : i1 to i32
    %c0_i32_0 = arith.constant 0 : i32
    %2 = arith.cmpi ne, %1, %c0_i32_0 : i32
    scf.if %2 {
      %cst_281 = arith.constant 0.000000e+00 : f32
      %489 = vector.broadcast %cst_281 : f32 to vector<2x32xf32>
      %c0_282 = arith.constant 0 : index
      %c0_283 = arith.constant 0 : index
      %490 = vector.load %arg7[%c0_282, %c0_283] : memref<2x32xf32, #tpu.memory_space<vmem>>, vector<2x32xf32>
      tpu.vector_store %arg7[%c0_282, %c0_283], %489 {strides = array<i32>} : memref<2x32xf32, #tpu.memory_space<vmem>>, vector<2x32xf32>,
      %cst_284 = arith.constant 0.000000e+00 : f32
      %491 = vector.broadcast %cst_284 : f32 to vector<2x32xf32>
      %c0_285 = arith.constant 0 : index
      %c0_286 = arith.constant 0 : index
      %492 = vector.load %arg8[%c0_285, %c0_286] : memref<2x32xf32, #tpu.memory_space<vmem>>, vector<2x32xf32>
      tpu.vector_store %arg8[%c0_285, %c0_286], %491 {strides = array<i32>} : memref<2x32xf32, #tpu.memory_space<vmem>>, vector<2x32xf32>,
    } else {
    }
    %c0 = arith.constant 0 : index
    %c0_1 = arith.constant 0 : index
    %c0_2 = arith.constant 0 : index
    %c0_3 = arith.constant 0 : index
    %3 = vector.load %arg2[%c0, %c0_1, %c0_2, %c0_3] : memref<1x8x2x16xbf16, #tpu.memory_space<vmem>>, vector<1x8x2x16xbf16>
    %4 = vector.shape_cast %3 : vector<1x8x2x16xbf16> to vector<8x2x16xbf16>
    %5 = vector.shape_cast %4 : vector<8x2x16xbf16> to vector<16x16xbf16>
    %c0_4 = arith.constant 0 : index
    %c0_5 = arith.constant 0 : index
    %c0_6 = arith.constant 0 : index
    %6 = vector.load %arg3[%c0_4, %c0_5, %c0_6] : memref<1x16x128xbf16, #tpu.memory_space<vmem>>, vector<1x16x128xbf16>
    %7 = vector.shape_cast %6 : vector<1x16x128xbf16> to vector<16x128xbf16>
    %cst = arith.constant dense<0.000000e+00> : vector<16x128xf32>
    %8 = tpu.matmul %5, %7, %cst {dimension_numbers = #tpu.dot_dimension_numbers<[1], [0], [0], [1], [0, 0, 1, 1], [], []>} : vector<16x16xbf16>, vector<16x128xbf16>, vector<16x128xf32> -> vector<16x128xf32>
    %c0_7 = arith.constant 0 : index
    %c0_8 = arith.constant 0 : index
    %c0_9 = arith.constant 0 : index
    %9 = vector.load %arg4[%c0_7, %c0_8, %c0_9] : memref<1x1x128xf32, #tpu.memory_space<vmem>>, vector<1x1x128xf32>
    %10 = vector.shape_cast %9 : vector<1x1x128xf32> to vector<1x128xf32>
    %11 = vector.broadcast %10 : vector<1x128xf32> to vector<16x128xf32>
    %12 = arith.addf %8, %11 : vector<16x128xf32>
    %13 = vector.shape_cast %12 : vector<16x128xf32> to vector<8x2x128xf32>
    %c0_10 = arith.constant 0 : index
    %c0_11 = arith.constant 0 : index
    %c0_12 = arith.constant 0 : index
    %14 = vector.load %arg9[%c0_10, %c0_11, %c0_12] : memref<8x2x128xf32, #tpu.memory_space<vmem>>, vector<8x2x128xf32>
    tpu.vector_store %arg9[%c0_10, %c0_11, %c0_12], %13 {strides = array<i32>} : memref<8x2x128xf32, #tpu.memory_space<vmem>>, vector<8x2x128xf32>,
    %c0_13 = arith.constant 0 : index
    %c0_14 = arith.constant 0 : index
    %c0_15 = arith.constant 0 : index
    %15 = vector.load %arg5[%c0_13, %c0_14, %c0_15] : memref<1x32x128xbf16, #tpu.memory_space<vmem>>, vector<1x32x128xbf16>
    %16 = vector.shape_cast %15 : vector<1x32x128xbf16> to vector<32x128xbf16>
    %c0_i32_16 = arith.constant 0 : i32
    %c0_i32_17 = arith.constant 0 : i32
    %17 = arith.cmpi eq, %arg0, %c0_i32_17 : i32
    %c7_i32 = arith.constant 7 : i32
    %18 = arith.subi %c7_i32, %c0_i32_16 : i32
    %19 = arith.select %17, %c0_i32_16, %18 : i32
    %c0_i32_18 = arith.constant 0 : i32
    %20 = arith.cmpi eq, %arg0, %c0_i32_18 : i32
    %c0_i32_19 = arith.constant 0 : i32
    %21 = arith.subi %c0_i32_19, %arg1 : i32
    %22 = arith.select %20, %arg1, %21 : i32
    %c8_i32 = arith.constant 8 : i32
    %23 = arith.muli %22, %c8_i32 : i32
    %24 = arith.addi %23, %19 : i32
    %c8_i32_20 = arith.constant 8 : i32
    %25 = arith.cmpi slt, %24, %c8_i32_20 : i32
    %26 = arith.index_cast %19 : i32 to index
    %c0_21 = arith.constant 0 : index
    %c0_22 = arith.constant 0 : index
    %27 = vector.load %arg9[%26, %c0_21, %c0_22] : memref<8x2x128xf32, #tpu.memory_space<vmem>>, vector<1x2x128xf32>
    %28 = vector.shape_cast %27 : vector<1x2x128xf32> to vector<2x128xf32>
    %c0_23 = arith.constant 0 : index
    %c0_24 = arith.constant 0 : index
    %29 = vector.load %arg7[%c0_23, %c0_24] : memref<2x32xf32, #tpu.memory_space<vmem>>, vector<2x32xf32>
    %30 = arith.truncf %29 : vector<2x32xf32> to vector<2x32xbf16>
    %cst_25 = arith.constant dense<0.000000e+00> : vector<2x128xf32>
    %31 = tpu.matmul %30, %16, %cst_25 {dimension_numbers = #tpu.dot_dimension_numbers<[1], [0], [0], [1], [0, 0, 1, 1], [], []>} : vector<2x32xbf16>, vector<32x128xbf16>, vector<2x128xf32> -> vector<2x128xf32>
    %32 = arith.addf %28, %31 : vector<2x128xf32>
    %33 = vector.extract_strided_slice %32 {offsets = [0, 0], sizes = [2, 32], strides = [1, 1]} : vector<2x128xf32> to vector<2x32xf32>
    %cst_26 = arith.constant 5.000000e-01 : f32
    %34 = vector.broadcast %cst_26 : f32 to vector<2x32xf32>
    %35 = arith.mulf %34, %33 : vector<2x32xf32>
    %36 = math.tanh %35 : vector<2x32xf32>
    %cst_27 = arith.constant 1.000000e+00 : f32
    %37 = vector.broadcast %cst_27 : f32 to vector<2x32xf32>
    %38 = arith.addf %36, %37 : vector<2x32xf32>
    %cst_28 = arith.constant 5.000000e-01 : f32
    %39 = vector.broadcast %cst_28 : f32 to vector<2x32xf32>
    %40 = arith.mulf %39, %38 : vector<2x32xf32>
    %41 = vector.extract_strided_slice %32 {offsets = [0, 32], sizes = [2, 32], strides = [1, 1]} : vector<2x128xf32> to vector<2x32xf32>
    %cst_29 = arith.constant 5.000000e-01 : f32
    %42 = vector.broadcast %cst_29 : f32 to vector<2x32xf32>
    %43 = arith.mulf %42, %41 : vector<2x32xf32>
    %44 = math.tanh %43 : vector<2x32xf32>
    %cst_30 = arith.constant 1.000000e+00 : f32
    %45 = vector.broadcast %cst_30 : f32 to vector<2x32xf32>
    %46 = arith.addf %44, %45 : vector<2x32xf32>
    %cst_31 = arith.constant 5.000000e-01 : f32
    %47 = vector.broadcast %cst_31 : f32 to vector<2x32xf32>
    %48 = arith.mulf %47, %46 : vector<2x32xf32>
    %49 = vector.extract_strided_slice %32 {offsets = [0, 64], sizes = [2, 32], strides = [1, 1]} : vector<2x128xf32> to vector<2x32xf32>
    %50 = math.tanh %49 : vector<2x32xf32>
    %51 = vector.extract_strided_slice %32 {offsets = [0, 96], sizes = [2, 32], strides = [1, 1]} : vector<2x128xf32> to vector<2x32xf32>
    %cst_32 = arith.constant 5.000000e-01 : f32
    %52 = vector.broadcast %cst_32 : f32 to vector<2x32xf32>
    %53 = arith.mulf %52, %51 : vector<2x32xf32>
    %54 = math.tanh %53 : vector<2x32xf32>
    %cst_33 = arith.constant 1.000000e+00 : f32
    %55 = vector.broadcast %cst_33 : f32 to vector<2x32xf32>
    %56 = arith.addf %54, %55 : vector<2x32xf32>
    %cst_34 = arith.constant 5.000000e-01 : f32
    %57 = vector.broadcast %cst_34 : f32 to vector<2x32xf32>
    %58 = arith.mulf %57, %56 : vector<2x32xf32>
    %c0_35 = arith.constant 0 : index
    %c0_36 = arith.constant 0 : index
    %59 = vector.load %arg8[%c0_35, %c0_36] : memref<2x32xf32, #tpu.memory_space<vmem>>, vector<2x32xf32>
    %60 = arith.mulf %48, %59 : vector<2x32xf32>
    %61 = arith.mulf %40, %50 : vector<2x32xf32>
    %62 = arith.addf %60, %61 : vector<2x32xf32>
    %63 = math.tanh %62 : vector<2x32xf32>
    %64 = arith.mulf %58, %63 : vector<2x32xf32>
    %c0_37 = arith.constant 0 : index
    %c0_38 = arith.constant 0 : index
    %65 = vector.load %arg8[%c0_37, %c0_38] : memref<2x32xf32, #tpu.memory_space<vmem>>, vector<2x32xf32>
    %66 = arith.select %25, %62, %65 : vector<2x32xf32>
    %c0_39 = arith.constant 0 : index
    %c0_40 = arith.constant 0 : index
    %67 = vector.load %arg8[%c0_39, %c0_40] : memref<2x32xf32, #tpu.memory_space<vmem>>, vector<2x32xf32>
    tpu.vector_store %arg8[%c0_39, %c0_40], %66 {strides = array<i32>} : memref<2x32xf32, #tpu.memory_space<vmem>>, vector<2x32xf32>,
    %c0_41 = arith.constant 0 : index
    %c0_42 = arith.constant 0 : index
    %68 = vector.load %arg7[%c0_41, %c0_42] : memref<2x32xf32, #tpu.memory_space<vmem>>, vector<2x32xf32>
    %69 = arith.select %25, %64, %68 : vector<2x32xf32>
    %c0_43 = arith.constant 0 : index
    %c0_44 = arith.constant 0 : index
    %70 = vector.load %arg7[%c0_43, %c0_44] : memref<2x32xf32, #tpu.memory_space<vmem>>, vector<2x32xf32>
    tpu.vector_store %arg7[%c0_43, %c0_44], %69 {strides = array<i32>} : memref<2x32xf32, #tpu.memory_space<vmem>>, vector<2x32xf32>,
    %71 = arith.truncf %64 : vector<2x32xf32> to vector<2x32xbf16>
    %c0_45 = arith.constant 0 : index
    %72 = arith.index_cast %19 : i32 to index
    %c0_46 = arith.constant 0 : index
    %c0_47 = arith.constant 0 : index
    %73 = vector.load %arg6[%c0_45, %72, %c0_46, %c0_47] : memref<1x8x2x32xbf16, #tpu.memory_space<vmem>>, vector<1x1x2x32xbf16>
    %74 = vector.shape_cast %73 : vector<1x1x2x32xbf16> to vector<2x32xbf16>
    %75 = vector.shape_cast %71 : vector<2x32xbf16> to vector<1x1x2x32xbf16>
    tpu.vector_store %arg6[%c0_45, %72, %c0_46, %c0_47], %75 {strides = array<i32>} : memref<1x8x2x32xbf16, #tpu.memory_space<vmem>>, vector<1x1x2x32xbf16>,
    %c1_i32 = arith.constant 1 : i32
    %c0_i32_48 = arith.constant 0 : i32
    %76 = arith.cmpi eq, %arg0, %c0_i32_48 : i32
    %c7_i32_49 = arith.constant 7 : i32
    %77 = arith.subi %c7_i32_49, %c1_i32 : i32
    %78 = arith.select %76, %c1_i32, %77 : i32
    %c0_i32_50 = arith.constant 0 : i32
    %79 = arith.cmpi eq, %arg0, %c0_i32_50 : i32
    %c0_i32_51 = arith.constant 0 : i32
    %80 = arith.subi %c0_i32_51, %arg1 : i32
    %81 = arith.select %79, %arg1, %80 : i32
    %c8_i32_52 = arith.constant 8 : i32
    %82 = arith.muli %81, %c8_i32_52 : i32
    %83 = arith.addi %82, %78 : i32
    %c8_i32_53 = arith.constant 8 : i32
    %84 = arith.cmpi slt, %83, %c8_i32_53 : i32
    %85 = arith.index_cast %78 : i32 to index
    %c0_54 = arith.constant 0 : index
    %c0_55 = arith.constant 0 : index
    %86 = vector.load %arg9[%85, %c0_54, %c0_55] : memref<8x2x128xf32, #tpu.memory_space<vmem>>, vector<1x2x128xf32>
    %87 = vector.shape_cast %86 : vector<1x2x128xf32> to vector<2x128xf32>
    %c0_56 = arith.constant 0 : index
    %c0_57 = arith.constant 0 : index
    %88 = vector.load %arg7[%c0_56, %c0_57] : memref<2x32xf32, #tpu.memory_space<vmem>>, vector<2x32xf32>
    %89 = arith.truncf %88 : vector<2x32xf32> to vector<2x32xbf16>
    %cst_58 = arith.constant dense<0.000000e+00> : vector<2x128xf32>
    %90 = tpu.matmul %89, %16, %cst_58 {dimension_numbers = #tpu.dot_dimension_numbers<[1], [0], [0], [1], [0, 0, 1, 1], [], []>} : vector<2x32xbf16>, vector<32x128xbf16>, vector<2x128xf32> -> vector<2x128xf32>
    %91 = arith.addf %87, %90 : vector<2x128xf32>
    %92 = vector.extract_strided_slice %91 {offsets = [0, 0], sizes = [2, 32], strides = [1, 1]} : vector<2x128xf32> to vector<2x32xf32>
    %cst_59 = arith.constant 5.000000e-01 : f32
    %93 = vector.broadcast %cst_59 : f32 to vector<2x32xf32>
    %94 = arith.mulf %93, %92 : vector<2x32xf32>
    %95 = math.tanh %94 : vector<2x32xf32>
    %cst_60 = arith.constant 1.000000e+00 : f32
    %96 = vector.broadcast %cst_60 : f32 to vector<2x32xf32>
    %97 = arith.addf %95, %96 : vector<2x32xf32>
    %cst_61 = arith.constant 5.000000e-01 : f32
    %98 = vector.broadcast %cst_61 : f32 to vector<2x32xf32>
    %99 = arith.mulf %98, %97 : vector<2x32xf32>
    %100 = vector.extract_strided_slice %91 {offsets = [0, 32], sizes = [2, 32], strides = [1, 1]} : vector<2x128xf32> to vector<2x32xf32>
    %cst_62 = arith.constant 5.000000e-01 : f32
    %101 = vector.broadcast %cst_62 : f32 to vector<2x32xf32>
    %102 = arith.mulf %101, %100 : vector<2x32xf32>
    %103 = math.tanh %102 : vector<2x32xf32>
    %cst_63 = arith.constant 1.000000e+00 : f32
    %104 = vector.broadcast %cst_63 : f32 to vector<2x32xf32>
    %105 = arith.addf %103, %104 : vector<2x32xf32>
    %cst_64 = arith.constant 5.000000e-01 : f32
    %106 = vector.broadcast %cst_64 : f32 to vector<2x32xf32>
    %107 = arith.mulf %106, %105 : vector<2x32xf32>
    %108 = vector.extract_strided_slice %91 {offsets = [0, 64], sizes = [2, 32], strides = [1, 1]} : vector<2x128xf32> to vector<2x32xf32>
    %109 = math.tanh %108 : vector<2x32xf32>
    %110 = vector.extract_strided_slice %91 {offsets = [0, 96], sizes = [2, 32], strides = [1, 1]} : vector<2x128xf32> to vector<2x32xf32>
    %cst_65 = arith.constant 5.000000e-01 : f32
    %111 = vector.broadcast %cst_65 : f32 to vector<2x32xf32>
    %112 = arith.mulf %111, %110 : vector<2x32xf32>
    %113 = math.tanh %112 : vector<2x32xf32>
    %cst_66 = arith.constant 1.000000e+00 : f32
    %114 = vector.broadcast %cst_66 : f32 to vector<2x32xf32>
    %115 = arith.addf %113, %114 : vector<2x32xf32>
    %cst_67 = arith.constant 5.000000e-01 : f32
    %116 = vector.broadcast %cst_67 : f32 to vector<2x32xf32>
    %117 = arith.mulf %116, %115 : vector<2x32xf32>
    %c0_68 = arith.constant 0 : index
    %c0_69 = arith.constant 0 : index
    %118 = vector.load %arg8[%c0_68, %c0_69] : memref<2x32xf32, #tpu.memory_space<vmem>>, vector<2x32xf32>
    %119 = arith.mulf %107, %118 : vector<2x32xf32>
    %120 = arith.mulf %99, %109 : vector<2x32xf32>
    %121 = arith.addf %119, %120 : vector<2x32xf32>
    %122 = math.tanh %121 : vector<2x32xf32>
    %123 = arith.mulf %117, %122 : vector<2x32xf32>
    %c0_70 = arith.constant 0 : index
    %c0_71 = arith.constant 0 : index
    %124 = vector.load %arg8[%c0_70, %c0_71] : memref<2x32xf32, #tpu.memory_space<vmem>>, vector<2x32xf32>
    %125 = arith.select %84, %121, %124 : vector<2x32xf32>
    %c0_72 = arith.constant 0 : index
    %c0_73 = arith.constant 0 : index
    %126 = vector.load %arg8[%c0_72, %c0_73] : memref<2x32xf32, #tpu.memory_space<vmem>>, vector<2x32xf32>
    tpu.vector_store %arg8[%c0_72, %c0_73], %125 {strides = array<i32>} : memref<2x32xf32, #tpu.memory_space<vmem>>, vector<2x32xf32>,
    %c0_74 = arith.constant 0 : index
    %c0_75 = arith.constant 0 : index
    %127 = vector.load %arg7[%c0_74, %c0_75] : memref<2x32xf32, #tpu.memory_space<vmem>>, vector<2x32xf32>
    %128 = arith.select %84, %123, %127 : vector<2x32xf32>
    %c0_76 = arith.constant 0 : index
    %c0_77 = arith.constant 0 : index
    %129 = vector.load %arg7[%c0_76, %c0_77] : memref<2x32xf32, #tpu.memory_space<vmem>>, vector<2x32xf32>
    tpu.vector_store %arg7[%c0_76, %c0_77], %128 {strides = array<i32>} : memref<2x32xf32, #tpu.memory_space<vmem>>, vector<2x32xf32>,
    %130 = arith.truncf %123 : vector<2x32xf32> to vector<2x32xbf16>
    %c0_78 = arith.constant 0 : index
    %131 = arith.index_cast %78 : i32 to index
    %c0_79 = arith.constant 0 : index
    %c0_80 = arith.constant 0 : index
    %132 = vector.load %arg6[%c0_78, %131, %c0_79, %c0_80] : memref<1x8x2x32xbf16, #tpu.memory_space<vmem>>, vector<1x1x2x32xbf16>
    %133 = vector.shape_cast %132 : vector<1x1x2x32xbf16> to vector<2x32xbf16>
    %134 = vector.shape_cast %130 : vector<2x32xbf16> to vector<1x1x2x32xbf16>
    tpu.vector_store %arg6[%c0_78, %131, %c0_79, %c0_80], %134 {strides = array<i32>} : memref<1x8x2x32xbf16, #tpu.memory_space<vmem>>, vector<1x1x2x32xbf16>,
    %c2_i32 = arith.constant 2 : i32
    %c0_i32_81 = arith.constant 0 : i32
    %135 = arith.cmpi eq, %arg0, %c0_i32_81 : i32
    %c7_i32_82 = arith.constant 7 : i32
    %136 = arith.subi %c7_i32_82, %c2_i32 : i32
    %137 = arith.select %135, %c2_i32, %136 : i32
    %c0_i32_83 = arith.constant 0 : i32
    %138 = arith.cmpi eq, %arg0, %c0_i32_83 : i32
    %c0_i32_84 = arith.constant 0 : i32
    %139 = arith.subi %c0_i32_84, %arg1 : i32
    %140 = arith.select %138, %arg1, %139 : i32
    %c8_i32_85 = arith.constant 8 : i32
    %141 = arith.muli %140, %c8_i32_85 : i32
    %142 = arith.addi %141, %137 : i32
    %c8_i32_86 = arith.constant 8 : i32
    %143 = arith.cmpi slt, %142, %c8_i32_86 : i32
    %144 = arith.index_cast %137 : i32 to index
    %c0_87 = arith.constant 0 : index
    %c0_88 = arith.constant 0 : index
    %145 = vector.load %arg9[%144, %c0_87, %c0_88] : memref<8x2x128xf32, #tpu.memory_space<vmem>>, vector<1x2x128xf32>
    %146 = vector.shape_cast %145 : vector<1x2x128xf32> to vector<2x128xf32>
    %c0_89 = arith.constant 0 : index
    %c0_90 = arith.constant 0 : index
    %147 = vector.load %arg7[%c0_89, %c0_90] : memref<2x32xf32, #tpu.memory_space<vmem>>, vector<2x32xf32>
    %148 = arith.truncf %147 : vector<2x32xf32> to vector<2x32xbf16>
    %cst_91 = arith.constant dense<0.000000e+00> : vector<2x128xf32>
    %149 = tpu.matmul %148, %16, %cst_91 {dimension_numbers = #tpu.dot_dimension_numbers<[1], [0], [0], [1], [0, 0, 1, 1], [], []>} : vector<2x32xbf16>, vector<32x128xbf16>, vector<2x128xf32> -> vector<2x128xf32>
    %150 = arith.addf %146, %149 : vector<2x128xf32>
    %151 = vector.extract_strided_slice %150 {offsets = [0, 0], sizes = [2, 32], strides = [1, 1]} : vector<2x128xf32> to vector<2x32xf32>
    %cst_92 = arith.constant 5.000000e-01 : f32
    %152 = vector.broadcast %cst_92 : f32 to vector<2x32xf32>
    %153 = arith.mulf %152, %151 : vector<2x32xf32>
    %154 = math.tanh %153 : vector<2x32xf32>
    %cst_93 = arith.constant 1.000000e+00 : f32
    %155 = vector.broadcast %cst_93 : f32 to vector<2x32xf32>
    %156 = arith.addf %154, %155 : vector<2x32xf32>
    %cst_94 = arith.constant 5.000000e-01 : f32
    %157 = vector.broadcast %cst_94 : f32 to vector<2x32xf32>
    %158 = arith.mulf %157, %156 : vector<2x32xf32>
    %159 = vector.extract_strided_slice %150 {offsets = [0, 32], sizes = [2, 32], strides = [1, 1]} : vector<2x128xf32> to vector<2x32xf32>
    %cst_95 = arith.constant 5.000000e-01 : f32
    %160 = vector.broadcast %cst_95 : f32 to vector<2x32xf32>
    %161 = arith.mulf %160, %159 : vector<2x32xf32>
    %162 = math.tanh %161 : vector<2x32xf32>
    %cst_96 = arith.constant 1.000000e+00 : f32
    %163 = vector.broadcast %cst_96 : f32 to vector<2x32xf32>
    %164 = arith.addf %162, %163 : vector<2x32xf32>
    %cst_97 = arith.constant 5.000000e-01 : f32
    %165 = vector.broadcast %cst_97 : f32 to vector<2x32xf32>
    %166 = arith.mulf %165, %164 : vector<2x32xf32>
    %167 = vector.extract_strided_slice %150 {offsets = [0, 64], sizes = [2, 32], strides = [1, 1]} : vector<2x128xf32> to vector<2x32xf32>
    %168 = math.tanh %167 : vector<2x32xf32>
    %169 = vector.extract_strided_slice %150 {offsets = [0, 96], sizes = [2, 32], strides = [1, 1]} : vector<2x128xf32> to vector<2x32xf32>
    %cst_98 = arith.constant 5.000000e-01 : f32
    %170 = vector.broadcast %cst_98 : f32 to vector<2x32xf32>
    %171 = arith.mulf %170, %169 : vector<2x32xf32>
    %172 = math.tanh %171 : vector<2x32xf32>
    %cst_99 = arith.constant 1.000000e+00 : f32
    %173 = vector.broadcast %cst_99 : f32 to vector<2x32xf32>
    %174 = arith.addf %172, %173 : vector<2x32xf32>
    %cst_100 = arith.constant 5.000000e-01 : f32
    %175 = vector.broadcast %cst_100 : f32 to vector<2x32xf32>
    %176 = arith.mulf %175, %174 : vector<2x32xf32>
    %c0_101 = arith.constant 0 : index
    %c0_102 = arith.constant 0 : index
    %177 = vector.load %arg8[%c0_101, %c0_102] : memref<2x32xf32, #tpu.memory_space<vmem>>, vector<2x32xf32>
    %178 = arith.mulf %166, %177 : vector<2x32xf32>
    %179 = arith.mulf %158, %168 : vector<2x32xf32>
    %180 = arith.addf %178, %179 : vector<2x32xf32>
    %181 = math.tanh %180 : vector<2x32xf32>
    %182 = arith.mulf %176, %181 : vector<2x32xf32>
    %c0_103 = arith.constant 0 : index
    %c0_104 = arith.constant 0 : index
    %183 = vector.load %arg8[%c0_103, %c0_104] : memref<2x32xf32, #tpu.memory_space<vmem>>, vector<2x32xf32>
    %184 = arith.select %143, %180, %183 : vector<2x32xf32>
    %c0_105 = arith.constant 0 : index
    %c0_106 = arith.constant 0 : index
    %185 = vector.load %arg8[%c0_105, %c0_106] : memref<2x32xf32, #tpu.memory_space<vmem>>, vector<2x32xf32>
    tpu.vector_store %arg8[%c0_105, %c0_106], %184 {strides = array<i32>} : memref<2x32xf32, #tpu.memory_space<vmem>>, vector<2x32xf32>,
    %c0_107 = arith.constant 0 : index
    %c0_108 = arith.constant 0 : index
    %186 = vector.load %arg7[%c0_107, %c0_108] : memref<2x32xf32, #tpu.memory_space<vmem>>, vector<2x32xf32>
    %187 = arith.select %143, %182, %186 : vector<2x32xf32>
    %c0_109 = arith.constant 0 : index
    %c0_110 = arith.constant 0 : index
    %188 = vector.load %arg7[%c0_109, %c0_110] : memref<2x32xf32, #tpu.memory_space<vmem>>, vector<2x32xf32>
    tpu.vector_store %arg7[%c0_109, %c0_110], %187 {strides = array<i32>} : memref<2x32xf32, #tpu.memory_space<vmem>>, vector<2x32xf32>,
    %189 = arith.truncf %182 : vector<2x32xf32> to vector<2x32xbf16>
    %c0_111 = arith.constant 0 : index
    %190 = arith.index_cast %137 : i32 to index
    %c0_112 = arith.constant 0 : index
    %c0_113 = arith.constant 0 : index
    %191 = vector.load %arg6[%c0_111, %190, %c0_112, %c0_113] : memref<1x8x2x32xbf16, #tpu.memory_space<vmem>>, vector<1x1x2x32xbf16>
    %192 = vector.shape_cast %191 : vector<1x1x2x32xbf16> to vector<2x32xbf16>
    %193 = vector.shape_cast %189 : vector<2x32xbf16> to vector<1x1x2x32xbf16>
    tpu.vector_store %arg6[%c0_111, %190, %c0_112, %c0_113], %193 {strides = array<i32>} : memref<1x8x2x32xbf16, #tpu.memory_space<vmem>>, vector<1x1x2x32xbf16>,
    %c3_i32 = arith.constant 3 : i32
    %c0_i32_114 = arith.constant 0 : i32
    %194 = arith.cmpi eq, %arg0, %c0_i32_114 : i32
    %c7_i32_115 = arith.constant 7 : i32
    %195 = arith.subi %c7_i32_115, %c3_i32 : i32
    %196 = arith.select %194, %c3_i32, %195 : i32
    %c0_i32_116 = arith.constant 0 : i32
    %197 = arith.cmpi eq, %arg0, %c0_i32_116 : i32
    %c0_i32_117 = arith.constant 0 : i32
    %198 = arith.subi %c0_i32_117, %arg1 : i32
    %199 = arith.select %197, %arg1, %198 : i32
    %c8_i32_118 = arith.constant 8 : i32
    %200 = arith.muli %199, %c8_i32_118 : i32
    %201 = arith.addi %200, %196 : i32
    %c8_i32_119 = arith.constant 8 : i32
    %202 = arith.cmpi slt, %201, %c8_i32_119 : i32
    %203 = arith.index_cast %196 : i32 to index
    %c0_120 = arith.constant 0 : index
    %c0_121 = arith.constant 0 : index
    %204 = vector.load %arg9[%203, %c0_120, %c0_121] : memref<8x2x128xf32, #tpu.memory_space<vmem>>, vector<1x2x128xf32>
    %205 = vector.shape_cast %204 : vector<1x2x128xf32> to vector<2x128xf32>
    %c0_122 = arith.constant 0 : index
    %c0_123 = arith.constant 0 : index
    %206 = vector.load %arg7[%c0_122, %c0_123] : memref<2x32xf32, #tpu.memory_space<vmem>>, vector<2x32xf32>
    %207 = arith.truncf %206 : vector<2x32xf32> to vector<2x32xbf16>
    %cst_124 = arith.constant dense<0.000000e+00> : vector<2x128xf32>
    %208 = tpu.matmul %207, %16, %cst_124 {dimension_numbers = #tpu.dot_dimension_numbers<[1], [0], [0], [1], [0, 0, 1, 1], [], []>} : vector<2x32xbf16>, vector<32x128xbf16>, vector<2x128xf32> -> vector<2x128xf32>
    %209 = arith.addf %205, %208 : vector<2x128xf32>
    %210 = vector.extract_strided_slice %209 {offsets = [0, 0], sizes = [2, 32], strides = [1, 1]} : vector<2x128xf32> to vector<2x32xf32>
    %cst_125 = arith.constant 5.000000e-01 : f32
    %211 = vector.broadcast %cst_125 : f32 to vector<2x32xf32>
    %212 = arith.mulf %211, %210 : vector<2x32xf32>
    %213 = math.tanh %212 : vector<2x32xf32>
    %cst_126 = arith.constant 1.000000e+00 : f32
    %214 = vector.broadcast %cst_126 : f32 to vector<2x32xf32>
    %215 = arith.addf %213, %214 : vector<2x32xf32>
    %cst_127 = arith.constant 5.000000e-01 : f32
    %216 = vector.broadcast %cst_127 : f32 to vector<2x32xf32>
    %217 = arith.mulf %216, %215 : vector<2x32xf32>
    %218 = vector.extract_strided_slice %209 {offsets = [0, 32], sizes = [2, 32], strides = [1, 1]} : vector<2x128xf32> to vector<2x32xf32>
    %cst_128 = arith.constant 5.000000e-01 : f32
    %219 = vector.broadcast %cst_128 : f32 to vector<2x32xf32>
    %220 = arith.mulf %219, %218 : vector<2x32xf32>
    %221 = math.tanh %220 : vector<2x32xf32>
    %cst_129 = arith.constant 1.000000e+00 : f32
    %222 = vector.broadcast %cst_129 : f32 to vector<2x32xf32>
    %223 = arith.addf %221, %222 : vector<2x32xf32>
    %cst_130 = arith.constant 5.000000e-01 : f32
    %224 = vector.broadcast %cst_130 : f32 to vector<2x32xf32>
    %225 = arith.mulf %224, %223 : vector<2x32xf32>
    %226 = vector.extract_strided_slice %209 {offsets = [0, 64], sizes = [2, 32], strides = [1, 1]} : vector<2x128xf32> to vector<2x32xf32>
    %227 = math.tanh %226 : vector<2x32xf32>
    %228 = vector.extract_strided_slice %209 {offsets = [0, 96], sizes = [2, 32], strides = [1, 1]} : vector<2x128xf32> to vector<2x32xf32>
    %cst_131 = arith.constant 5.000000e-01 : f32
    %229 = vector.broadcast %cst_131 : f32 to vector<2x32xf32>
    %230 = arith.mulf %229, %228 : vector<2x32xf32>
    %231 = math.tanh %230 : vector<2x32xf32>
    %cst_132 = arith.constant 1.000000e+00 : f32
    %232 = vector.broadcast %cst_132 : f32 to vector<2x32xf32>
    %233 = arith.addf %231, %232 : vector<2x32xf32>
    %cst_133 = arith.constant 5.000000e-01 : f32
    %234 = vector.broadcast %cst_133 : f32 to vector<2x32xf32>
    %235 = arith.mulf %234, %233 : vector<2x32xf32>
    %c0_134 = arith.constant 0 : index
    %c0_135 = arith.constant 0 : index
    %236 = vector.load %arg8[%c0_134, %c0_135] : memref<2x32xf32, #tpu.memory_space<vmem>>, vector<2x32xf32>
    %237 = arith.mulf %225, %236 : vector<2x32xf32>
    %238 = arith.mulf %217, %227 : vector<2x32xf32>
    %239 = arith.addf %237, %238 : vector<2x32xf32>
    %240 = math.tanh %239 : vector<2x32xf32>
    %241 = arith.mulf %235, %240 : vector<2x32xf32>
    %c0_136 = arith.constant 0 : index
    %c0_137 = arith.constant 0 : index
    %242 = vector.load %arg8[%c0_136, %c0_137] : memref<2x32xf32, #tpu.memory_space<vmem>>, vector<2x32xf32>
    %243 = arith.select %202, %239, %242 : vector<2x32xf32>
    %c0_138 = arith.constant 0 : index
    %c0_139 = arith.constant 0 : index
    %244 = vector.load %arg8[%c0_138, %c0_139] : memref<2x32xf32, #tpu.memory_space<vmem>>, vector<2x32xf32>
    tpu.vector_store %arg8[%c0_138, %c0_139], %243 {strides = array<i32>} : memref<2x32xf32, #tpu.memory_space<vmem>>, vector<2x32xf32>,
    %c0_140 = arith.constant 0 : index
    %c0_141 = arith.constant 0 : index
    %245 = vector.load %arg7[%c0_140, %c0_141] : memref<2x32xf32, #tpu.memory_space<vmem>>, vector<2x32xf32>
    %246 = arith.select %202, %241, %245 : vector<2x32xf32>
    %c0_142 = arith.constant 0 : index
    %c0_143 = arith.constant 0 : index
    %247 = vector.load %arg7[%c0_142, %c0_143] : memref<2x32xf32, #tpu.memory_space<vmem>>, vector<2x32xf32>
    tpu.vector_store %arg7[%c0_142, %c0_143], %246 {strides = array<i32>} : memref<2x32xf32, #tpu.memory_space<vmem>>, vector<2x32xf32>,
    %248 = arith.truncf %241 : vector<2x32xf32> to vector<2x32xbf16>
    %c0_144 = arith.constant 0 : index
    %249 = arith.index_cast %196 : i32 to index
    %c0_145 = arith.constant 0 : index
    %c0_146 = arith.constant 0 : index
    %250 = vector.load %arg6[%c0_144, %249, %c0_145, %c0_146] : memref<1x8x2x32xbf16, #tpu.memory_space<vmem>>, vector<1x1x2x32xbf16>
    %251 = vector.shape_cast %250 : vector<1x1x2x32xbf16> to vector<2x32xbf16>
    %252 = vector.shape_cast %248 : vector<2x32xbf16> to vector<1x1x2x32xbf16>
    tpu.vector_store %arg6[%c0_144, %249, %c0_145, %c0_146], %252 {strides = array<i32>} : memref<1x8x2x32xbf16, #tpu.memory_space<vmem>>, vector<1x1x2x32xbf16>,
    %c4_i32 = arith.constant 4 : i32
    %c0_i32_147 = arith.constant 0 : i32
    %253 = arith.cmpi eq, %arg0, %c0_i32_147 : i32
    %c7_i32_148 = arith.constant 7 : i32
    %254 = arith.subi %c7_i32_148, %c4_i32 : i32
    %255 = arith.select %253, %c4_i32, %254 : i32
    %c0_i32_149 = arith.constant 0 : i32
    %256 = arith.cmpi eq, %arg0, %c0_i32_149 : i32
    %c0_i32_150 = arith.constant 0 : i32
    %257 = arith.subi %c0_i32_150, %arg1 : i32
    %258 = arith.select %256, %arg1, %257 : i32
    %c8_i32_151 = arith.constant 8 : i32
    %259 = arith.muli %258, %c8_i32_151 : i32
    %260 = arith.addi %259, %255 : i32
    %c8_i32_152 = arith.constant 8 : i32
    %261 = arith.cmpi slt, %260, %c8_i32_152 : i32
    %262 = arith.index_cast %255 : i32 to index
    %c0_153 = arith.constant 0 : index
    %c0_154 = arith.constant 0 : index
    %263 = vector.load %arg9[%262, %c0_153, %c0_154] : memref<8x2x128xf32, #tpu.memory_space<vmem>>, vector<1x2x128xf32>
    %264 = vector.shape_cast %263 : vector<1x2x128xf32> to vector<2x128xf32>
    %c0_155 = arith.constant 0 : index
    %c0_156 = arith.constant 0 : index
    %265 = vector.load %arg7[%c0_155, %c0_156] : memref<2x32xf32, #tpu.memory_space<vmem>>, vector<2x32xf32>
    %266 = arith.truncf %265 : vector<2x32xf32> to vector<2x32xbf16>
    %cst_157 = arith.constant dense<0.000000e+00> : vector<2x128xf32>
    %267 = tpu.matmul %266, %16, %cst_157 {dimension_numbers = #tpu.dot_dimension_numbers<[1], [0], [0], [1], [0, 0, 1, 1], [], []>} : vector<2x32xbf16>, vector<32x128xbf16>, vector<2x128xf32> -> vector<2x128xf32>
    %268 = arith.addf %264, %267 : vector<2x128xf32>
    %269 = vector.extract_strided_slice %268 {offsets = [0, 0], sizes = [2, 32], strides = [1, 1]} : vector<2x128xf32> to vector<2x32xf32>
    %cst_158 = arith.constant 5.000000e-01 : f32
    %270 = vector.broadcast %cst_158 : f32 to vector<2x32xf32>
    %271 = arith.mulf %270, %269 : vector<2x32xf32>
    %272 = math.tanh %271 : vector<2x32xf32>
    %cst_159 = arith.constant 1.000000e+00 : f32
    %273 = vector.broadcast %cst_159 : f32 to vector<2x32xf32>
    %274 = arith.addf %272, %273 : vector<2x32xf32>
    %cst_160 = arith.constant 5.000000e-01 : f32
    %275 = vector.broadcast %cst_160 : f32 to vector<2x32xf32>
    %276 = arith.mulf %275, %274 : vector<2x32xf32>
    %277 = vector.extract_strided_slice %268 {offsets = [0, 32], sizes = [2, 32], strides = [1, 1]} : vector<2x128xf32> to vector<2x32xf32>
    %cst_161 = arith.constant 5.000000e-01 : f32
    %278 = vector.broadcast %cst_161 : f32 to vector<2x32xf32>
    %279 = arith.mulf %278, %277 : vector<2x32xf32>
    %280 = math.tanh %279 : vector<2x32xf32>
    %cst_162 = arith.constant 1.000000e+00 : f32
    %281 = vector.broadcast %cst_162 : f32 to vector<2x32xf32>
    %282 = arith.addf %280, %281 : vector<2x32xf32>
    %cst_163 = arith.constant 5.000000e-01 : f32
    %283 = vector.broadcast %cst_163 : f32 to vector<2x32xf32>
    %284 = arith.mulf %283, %282 : vector<2x32xf32>
    %285 = vector.extract_strided_slice %268 {offsets = [0, 64], sizes = [2, 32], strides = [1, 1]} : vector<2x128xf32> to vector<2x32xf32>
    %286 = math.tanh %285 : vector<2x32xf32>
    %287 = vector.extract_strided_slice %268 {offsets = [0, 96], sizes = [2, 32], strides = [1, 1]} : vector<2x128xf32> to vector<2x32xf32>
    %cst_164 = arith.constant 5.000000e-01 : f32
    %288 = vector.broadcast %cst_164 : f32 to vector<2x32xf32>
    %289 = arith.mulf %288, %287 : vector<2x32xf32>
    %290 = math.tanh %289 : vector<2x32xf32>
    %cst_165 = arith.constant 1.000000e+00 : f32
    %291 = vector.broadcast %cst_165 : f32 to vector<2x32xf32>
    %292 = arith.addf %290, %291 : vector<2x32xf32>
    %cst_166 = arith.constant 5.000000e-01 : f32
    %293 = vector.broadcast %cst_166 : f32 to vector<2x32xf32>
    %294 = arith.mulf %293, %292 : vector<2x32xf32>
    %c0_167 = arith.constant 0 : index
    %c0_168 = arith.constant 0 : index
    %295 = vector.load %arg8[%c0_167, %c0_168] : memref<2x32xf32, #tpu.memory_space<vmem>>, vector<2x32xf32>
    %296 = arith.mulf %284, %295 : vector<2x32xf32>
    %297 = arith.mulf %276, %286 : vector<2x32xf32>
    %298 = arith.addf %296, %297 : vector<2x32xf32>
    %299 = math.tanh %298 : vector<2x32xf32>
    %300 = arith.mulf %294, %299 : vector<2x32xf32>
    %c0_169 = arith.constant 0 : index
    %c0_170 = arith.constant 0 : index
    %301 = vector.load %arg8[%c0_169, %c0_170] : memref<2x32xf32, #tpu.memory_space<vmem>>, vector<2x32xf32>
    %302 = arith.select %261, %298, %301 : vector<2x32xf32>
    %c0_171 = arith.constant 0 : index
    %c0_172 = arith.constant 0 : index
    %303 = vector.load %arg8[%c0_171, %c0_172] : memref<2x32xf32, #tpu.memory_space<vmem>>, vector<2x32xf32>
    tpu.vector_store %arg8[%c0_171, %c0_172], %302 {strides = array<i32>} : memref<2x32xf32, #tpu.memory_space<vmem>>, vector<2x32xf32>,
    %c0_173 = arith.constant 0 : index
    %c0_174 = arith.constant 0 : index
    %304 = vector.load %arg7[%c0_173, %c0_174] : memref<2x32xf32, #tpu.memory_space<vmem>>, vector<2x32xf32>
    %305 = arith.select %261, %300, %304 : vector<2x32xf32>
    %c0_175 = arith.constant 0 : index
    %c0_176 = arith.constant 0 : index
    %306 = vector.load %arg7[%c0_175, %c0_176] : memref<2x32xf32, #tpu.memory_space<vmem>>, vector<2x32xf32>
    tpu.vector_store %arg7[%c0_175, %c0_176], %305 {strides = array<i32>} : memref<2x32xf32, #tpu.memory_space<vmem>>, vector<2x32xf32>,
    %307 = arith.truncf %300 : vector<2x32xf32> to vector<2x32xbf16>
    %c0_177 = arith.constant 0 : index
    %308 = arith.index_cast %255 : i32 to index
    %c0_178 = arith.constant 0 : index
    %c0_179 = arith.constant 0 : index
    %309 = vector.load %arg6[%c0_177, %308, %c0_178, %c0_179] : memref<1x8x2x32xbf16, #tpu.memory_space<vmem>>, vector<1x1x2x32xbf16>
    %310 = vector.shape_cast %309 : vector<1x1x2x32xbf16> to vector<2x32xbf16>
    %311 = vector.shape_cast %307 : vector<2x32xbf16> to vector<1x1x2x32xbf16>
    tpu.vector_store %arg6[%c0_177, %308, %c0_178, %c0_179], %311 {strides = array<i32>} : memref<1x8x2x32xbf16, #tpu.memory_space<vmem>>, vector<1x1x2x32xbf16>,
    %c5_i32 = arith.constant 5 : i32
    %c0_i32_180 = arith.constant 0 : i32
    %312 = arith.cmpi eq, %arg0, %c0_i32_180 : i32
    %c7_i32_181 = arith.constant 7 : i32
    %313 = arith.subi %c7_i32_181, %c5_i32 : i32
    %314 = arith.select %312, %c5_i32, %313 : i32
    %c0_i32_182 = arith.constant 0 : i32
    %315 = arith.cmpi eq, %arg0, %c0_i32_182 : i32
    %c0_i32_183 = arith.constant 0 : i32
    %316 = arith.subi %c0_i32_183, %arg1 : i32
    %317 = arith.select %315, %arg1, %316 : i32
    %c8_i32_184 = arith.constant 8 : i32
    %318 = arith.muli %317, %c8_i32_184 : i32
    %319 = arith.addi %318, %314 : i32
    %c8_i32_185 = arith.constant 8 : i32
    %320 = arith.cmpi slt, %319, %c8_i32_185 : i32
    %321 = arith.index_cast %314 : i32 to index
    %c0_186 = arith.constant 0 : index
    %c0_187 = arith.constant 0 : index
    %322 = vector.load %arg9[%321, %c0_186, %c0_187] : memref<8x2x128xf32, #tpu.memory_space<vmem>>, vector<1x2x128xf32>
    %323 = vector.shape_cast %322 : vector<1x2x128xf32> to vector<2x128xf32>
    %c0_188 = arith.constant 0 : index
    %c0_189 = arith.constant 0 : index
    %324 = vector.load %arg7[%c0_188, %c0_189] : memref<2x32xf32, #tpu.memory_space<vmem>>, vector<2x32xf32>
    %325 = arith.truncf %324 : vector<2x32xf32> to vector<2x32xbf16>
    %cst_190 = arith.constant dense<0.000000e+00> : vector<2x128xf32>
    %326 = tpu.matmul %325, %16, %cst_190 {dimension_numbers = #tpu.dot_dimension_numbers<[1], [0], [0], [1], [0, 0, 1, 1], [], []>} : vector<2x32xbf16>, vector<32x128xbf16>, vector<2x128xf32> -> vector<2x128xf32>
    %327 = arith.addf %323, %326 : vector<2x128xf32>
    %328 = vector.extract_strided_slice %327 {offsets = [0, 0], sizes = [2, 32], strides = [1, 1]} : vector<2x128xf32> to vector<2x32xf32>
    %cst_191 = arith.constant 5.000000e-01 : f32
    %329 = vector.broadcast %cst_191 : f32 to vector<2x32xf32>
    %330 = arith.mulf %329, %328 : vector<2x32xf32>
    %331 = math.tanh %330 : vector<2x32xf32>
    %cst_192 = arith.constant 1.000000e+00 : f32
    %332 = vector.broadcast %cst_192 : f32 to vector<2x32xf32>
    %333 = arith.addf %331, %332 : vector<2x32xf32>
    %cst_193 = arith.constant 5.000000e-01 : f32
    %334 = vector.broadcast %cst_193 : f32 to vector<2x32xf32>
    %335 = arith.mulf %334, %333 : vector<2x32xf32>
    %336 = vector.extract_strided_slice %327 {offsets = [0, 32], sizes = [2, 32], strides = [1, 1]} : vector<2x128xf32> to vector<2x32xf32>
    %cst_194 = arith.constant 5.000000e-01 : f32
    %337 = vector.broadcast %cst_194 : f32 to vector<2x32xf32>
    %338 = arith.mulf %337, %336 : vector<2x32xf32>
    %339 = math.tanh %338 : vector<2x32xf32>
    %cst_195 = arith.constant 1.000000e+00 : f32
    %340 = vector.broadcast %cst_195 : f32 to vector<2x32xf32>
    %341 = arith.addf %339, %340 : vector<2x32xf32>
    %cst_196 = arith.constant 5.000000e-01 : f32
    %342 = vector.broadcast %cst_196 : f32 to vector<2x32xf32>
    %343 = arith.mulf %342, %341 : vector<2x32xf32>
    %344 = vector.extract_strided_slice %327 {offsets = [0, 64], sizes = [2, 32], strides = [1, 1]} : vector<2x128xf32> to vector<2x32xf32>
    %345 = math.tanh %344 : vector<2x32xf32>
    %346 = vector.extract_strided_slice %327 {offsets = [0, 96], sizes = [2, 32], strides = [1, 1]} : vector<2x128xf32> to vector<2x32xf32>
    %cst_197 = arith.constant 5.000000e-01 : f32
    %347 = vector.broadcast %cst_197 : f32 to vector<2x32xf32>
    %348 = arith.mulf %347, %346 : vector<2x32xf32>
    %349 = math.tanh %348 : vector<2x32xf32>
    %cst_198 = arith.constant 1.000000e+00 : f32
    %350 = vector.broadcast %cst_198 : f32 to vector<2x32xf32>
    %351 = arith.addf %349, %350 : vector<2x32xf32>
    %cst_199 = arith.constant 5.000000e-01 : f32
    %352 = vector.broadcast %cst_199 : f32 to vector<2x32xf32>
    %353 = arith.mulf %352, %351 : vector<2x32xf32>
    %c0_200 = arith.constant 0 : index
    %c0_201 = arith.constant 0 : index
    %354 = vector.load %arg8[%c0_200, %c0_201] : memref<2x32xf32, #tpu.memory_space<vmem>>, vector<2x32xf32>
    %355 = arith.mulf %343, %354 : vector<2x32xf32>
    %356 = arith.mulf %335, %345 : vector<2x32xf32>
    %357 = arith.addf %355, %356 : vector<2x32xf32>
    %358 = math.tanh %357 : vector<2x32xf32>
    %359 = arith.mulf %353, %358 : vector<2x32xf32>
    %c0_202 = arith.constant 0 : index
    %c0_203 = arith.constant 0 : index
    %360 = vector.load %arg8[%c0_202, %c0_203] : memref<2x32xf32, #tpu.memory_space<vmem>>, vector<2x32xf32>
    %361 = arith.select %320, %357, %360 : vector<2x32xf32>
    %c0_204 = arith.constant 0 : index
    %c0_205 = arith.constant 0 : index
    %362 = vector.load %arg8[%c0_204, %c0_205] : memref<2x32xf32, #tpu.memory_space<vmem>>, vector<2x32xf32>
    tpu.vector_store %arg8[%c0_204, %c0_205], %361 {strides = array<i32>} : memref<2x32xf32, #tpu.memory_space<vmem>>, vector<2x32xf32>,
    %c0_206 = arith.constant 0 : index
    %c0_207 = arith.constant 0 : index
    %363 = vector.load %arg7[%c0_206, %c0_207] : memref<2x32xf32, #tpu.memory_space<vmem>>, vector<2x32xf32>
    %364 = arith.select %320, %359, %363 : vector<2x32xf32>
    %c0_208 = arith.constant 0 : index
    %c0_209 = arith.constant 0 : index
    %365 = vector.load %arg7[%c0_208, %c0_209] : memref<2x32xf32, #tpu.memory_space<vmem>>, vector<2x32xf32>
    tpu.vector_store %arg7[%c0_208, %c0_209], %364 {strides = array<i32>} : memref<2x32xf32, #tpu.memory_space<vmem>>, vector<2x32xf32>,
    %366 = arith.truncf %359 : vector<2x32xf32> to vector<2x32xbf16>
    %c0_210 = arith.constant 0 : index
    %367 = arith.index_cast %314 : i32 to index
    %c0_211 = arith.constant 0 : index
    %c0_212 = arith.constant 0 : index
    %368 = vector.load %arg6[%c0_210, %367, %c0_211, %c0_212] : memref<1x8x2x32xbf16, #tpu.memory_space<vmem>>, vector<1x1x2x32xbf16>
    %369 = vector.shape_cast %368 : vector<1x1x2x32xbf16> to vector<2x32xbf16>
    %370 = vector.shape_cast %366 : vector<2x32xbf16> to vector<1x1x2x32xbf16>
    tpu.vector_store %arg6[%c0_210, %367, %c0_211, %c0_212], %370 {strides = array<i32>} : memref<1x8x2x32xbf16, #tpu.memory_space<vmem>>, vector<1x1x2x32xbf16>,
    %c6_i32 = arith.constant 6 : i32
    %c0_i32_213 = arith.constant 0 : i32
    %371 = arith.cmpi eq, %arg0, %c0_i32_213 : i32
    %c7_i32_214 = arith.constant 7 : i32
    %372 = arith.subi %c7_i32_214, %c6_i32 : i32
    %373 = arith.select %371, %c6_i32, %372 : i32
    %c0_i32_215 = arith.constant 0 : i32
    %374 = arith.cmpi eq, %arg0, %c0_i32_215 : i32
    %c0_i32_216 = arith.constant 0 : i32
    %375 = arith.subi %c0_i32_216, %arg1 : i32
    %376 = arith.select %374, %arg1, %375 : i32
    %c8_i32_217 = arith.constant 8 : i32
    %377 = arith.muli %376, %c8_i32_217 : i32
    %378 = arith.addi %377, %373 : i32
    %c8_i32_218 = arith.constant 8 : i32
    %379 = arith.cmpi slt, %378, %c8_i32_218 : i32
    %380 = arith.index_cast %373 : i32 to index
    %c0_219 = arith.constant 0 : index
    %c0_220 = arith.constant 0 : index
    %381 = vector.load %arg9[%380, %c0_219, %c0_220] : memref<8x2x128xf32, #tpu.memory_space<vmem>>, vector<1x2x128xf32>
    %382 = vector.shape_cast %381 : vector<1x2x128xf32> to vector<2x128xf32>
    %c0_221 = arith.constant 0 : index
    %c0_222 = arith.constant 0 : index
    %383 = vector.load %arg7[%c0_221, %c0_222] : memref<2x32xf32, #tpu.memory_space<vmem>>, vector<2x32xf32>
    %384 = arith.truncf %383 : vector<2x32xf32> to vector<2x32xbf16>
    %cst_223 = arith.constant dense<0.000000e+00> : vector<2x128xf32>
    %385 = tpu.matmul %384, %16, %cst_223 {dimension_numbers = #tpu.dot_dimension_numbers<[1], [0], [0], [1], [0, 0, 1, 1], [], []>} : vector<2x32xbf16>, vector<32x128xbf16>, vector<2x128xf32> -> vector<2x128xf32>
    %386 = arith.addf %382, %385 : vector<2x128xf32>
    %387 = vector.extract_strided_slice %386 {offsets = [0, 0], sizes = [2, 32], strides = [1, 1]} : vector<2x128xf32> to vector<2x32xf32>
    %cst_224 = arith.constant 5.000000e-01 : f32
    %388 = vector.broadcast %cst_224 : f32 to vector<2x32xf32>
    %389 = arith.mulf %388, %387 : vector<2x32xf32>
    %390 = math.tanh %389 : vector<2x32xf32>
    %cst_225 = arith.constant 1.000000e+00 : f32
    %391 = vector.broadcast %cst_225 : f32 to vector<2x32xf32>
    %392 = arith.addf %390, %391 : vector<2x32xf32>
    %cst_226 = arith.constant 5.000000e-01 : f32
    %393 = vector.broadcast %cst_226 : f32 to vector<2x32xf32>
    %394 = arith.mulf %393, %392 : vector<2x32xf32>
    %395 = vector.extract_strided_slice %386 {offsets = [0, 32], sizes = [2, 32], strides = [1, 1]} : vector<2x128xf32> to vector<2x32xf32>
    %cst_227 = arith.constant 5.000000e-01 : f32
    %396 = vector.broadcast %cst_227 : f32 to vector<2x32xf32>
    %397 = arith.mulf %396, %395 : vector<2x32xf32>
    %398 = math.tanh %397 : vector<2x32xf32>
    %cst_228 = arith.constant 1.000000e+00 : f32
    %399 = vector.broadcast %cst_228 : f32 to vector<2x32xf32>
    %400 = arith.addf %398, %399 : vector<2x32xf32>
    %cst_229 = arith.constant 5.000000e-01 : f32
    %401 = vector.broadcast %cst_229 : f32 to vector<2x32xf32>
    %402 = arith.mulf %401, %400 : vector<2x32xf32>
    %403 = vector.extract_strided_slice %386 {offsets = [0, 64], sizes = [2, 32], strides = [1, 1]} : vector<2x128xf32> to vector<2x32xf32>
    %404 = math.tanh %403 : vector<2x32xf32>
    %405 = vector.extract_strided_slice %386 {offsets = [0, 96], sizes = [2, 32], strides = [1, 1]} : vector<2x128xf32> to vector<2x32xf32>
    %cst_230 = arith.constant 5.000000e-01 : f32
    %406 = vector.broadcast %cst_230 : f32 to vector<2x32xf32>
    %407 = arith.mulf %406, %405 : vector<2x32xf32>
    %408 = math.tanh %407 : vector<2x32xf32>
    %cst_231 = arith.constant 1.000000e+00 : f32
    %409 = vector.broadcast %cst_231 : f32 to vector<2x32xf32>
    %410 = arith.addf %408, %409 : vector<2x32xf32>
    %cst_232 = arith.constant 5.000000e-01 : f32
    %411 = vector.broadcast %cst_232 : f32 to vector<2x32xf32>
    %412 = arith.mulf %411, %410 : vector<2x32xf32>
    %c0_233 = arith.constant 0 : index
    %c0_234 = arith.constant 0 : index
    %413 = vector.load %arg8[%c0_233, %c0_234] : memref<2x32xf32, #tpu.memory_space<vmem>>, vector<2x32xf32>
    %414 = arith.mulf %402, %413 : vector<2x32xf32>
    %415 = arith.mulf %394, %404 : vector<2x32xf32>
    %416 = arith.addf %414, %415 : vector<2x32xf32>
    %417 = math.tanh %416 : vector<2x32xf32>
    %418 = arith.mulf %412, %417 : vector<2x32xf32>
    %c0_235 = arith.constant 0 : index
    %c0_236 = arith.constant 0 : index
    %419 = vector.load %arg8[%c0_235, %c0_236] : memref<2x32xf32, #tpu.memory_space<vmem>>, vector<2x32xf32>
    %420 = arith.select %379, %416, %419 : vector<2x32xf32>
    %c0_237 = arith.constant 0 : index
    %c0_238 = arith.constant 0 : index
    %421 = vector.load %arg8[%c0_237, %c0_238] : memref<2x32xf32, #tpu.memory_space<vmem>>, vector<2x32xf32>
    tpu.vector_store %arg8[%c0_237, %c0_238], %420 {strides = array<i32>} : memref<2x32xf32, #tpu.memory_space<vmem>>, vector<2x32xf32>,
    %c0_239 = arith.constant 0 : index
    %c0_240 = arith.constant 0 : index
    %422 = vector.load %arg7[%c0_239, %c0_240] : memref<2x32xf32, #tpu.memory_space<vmem>>, vector<2x32xf32>
    %423 = arith.select %379, %418, %422 : vector<2x32xf32>
    %c0_241 = arith.constant 0 : index
    %c0_242 = arith.constant 0 : index
    %424 = vector.load %arg7[%c0_241, %c0_242] : memref<2x32xf32, #tpu.memory_space<vmem>>, vector<2x32xf32>
    tpu.vector_store %arg7[%c0_241, %c0_242], %423 {strides = array<i32>} : memref<2x32xf32, #tpu.memory_space<vmem>>, vector<2x32xf32>,
    %425 = arith.truncf %418 : vector<2x32xf32> to vector<2x32xbf16>
    %c0_243 = arith.constant 0 : index
    %426 = arith.index_cast %373 : i32 to index
    %c0_244 = arith.constant 0 : index
    %c0_245 = arith.constant 0 : index
    %427 = vector.load %arg6[%c0_243, %426, %c0_244, %c0_245] : memref<1x8x2x32xbf16, #tpu.memory_space<vmem>>, vector<1x1x2x32xbf16>
    %428 = vector.shape_cast %427 : vector<1x1x2x32xbf16> to vector<2x32xbf16>
    %429 = vector.shape_cast %425 : vector<2x32xbf16> to vector<1x1x2x32xbf16>
    tpu.vector_store %arg6[%c0_243, %426, %c0_244, %c0_245], %429 {strides = array<i32>} : memref<1x8x2x32xbf16, #tpu.memory_space<vmem>>, vector<1x1x2x32xbf16>,
    %c7_i32_246 = arith.constant 7 : i32
    %c0_i32_247 = arith.constant 0 : i32
    %430 = arith.cmpi eq, %arg0, %c0_i32_247 : i32
    %c7_i32_248 = arith.constant 7 : i32
    %431 = arith.subi %c7_i32_248, %c7_i32_246 : i32
    %432 = arith.select %430, %c7_i32_246, %431 : i32
    %c0_i32_249 = arith.constant 0 : i32
    %433 = arith.cmpi eq, %arg0, %c0_i32_249 : i32
    %c0_i32_250 = arith.constant 0 : i32
    %434 = arith.subi %c0_i32_250, %arg1 : i32
    %435 = arith.select %433, %arg1, %434 : i32
    %c8_i32_251 = arith.constant 8 : i32
    %436 = arith.muli %435, %c8_i32_251 : i32
    %437 = arith.addi %436, %432 : i32
    %c8_i32_252 = arith.constant 8 : i32
    %438 = arith.cmpi slt, %437, %c8_i32_252 : i32
    %439 = arith.index_cast %432 : i32 to index
    %c0_253 = arith.constant 0 : index
    %c0_254 = arith.constant 0 : index
    %440 = vector.load %arg9[%439, %c0_253, %c0_254] : memref<8x2x128xf32, #tpu.memory_space<vmem>>, vector<1x2x128xf32>
    %441 = vector.shape_cast %440 : vector<1x2x128xf32> to vector<2x128xf32>
    %c0_255 = arith.constant 0 : index
    %c0_256 = arith.constant 0 : index
    %442 = vector.load %arg7[%c0_255, %c0_256] : memref<2x32xf32, #tpu.memory_space<vmem>>, vector<2x32xf32>
    %443 = arith.truncf %442 : vector<2x32xf32> to vector<2x32xbf16>
    %cst_257 = arith.constant dense<0.000000e+00> : vector<2x128xf32>
    %444 = tpu.matmul %443, %16, %cst_257 {dimension_numbers = #tpu.dot_dimension_numbers<[1], [0], [0], [1], [0, 0, 1, 1], [], []>} : vector<2x32xbf16>, vector<32x128xbf16>, vector<2x128xf32> -> vector<2x128xf32>
    %445 = arith.addf %441, %444 : vector<2x128xf32>
    %446 = vector.extract_strided_slice %445 {offsets = [0, 0], sizes = [2, 32], strides = [1, 1]} : vector<2x128xf32> to vector<2x32xf32>
    %cst_258 = arith.constant 5.000000e-01 : f32
    %447 = vector.broadcast %cst_258 : f32 to vector<2x32xf32>
    %448 = arith.mulf %447, %446 : vector<2x32xf32>
    %449 = math.tanh %448 : vector<2x32xf32>
    %cst_259 = arith.constant 1.000000e+00 : f32
    %450 = vector.broadcast %cst_259 : f32 to vector<2x32xf32>
    %451 = arith.addf %449, %450 : vector<2x32xf32>
    %cst_260 = arith.constant 5.000000e-01 : f32
    %452 = vector.broadcast %cst_260 : f32 to vector<2x32xf32>
    %453 = arith.mulf %452, %451 : vector<2x32xf32>
    %454 = vector.extract_strided_slice %445 {offsets = [0, 32], sizes = [2, 32], strides = [1, 1]} : vector<2x128xf32> to vector<2x32xf32>
    %cst_261 = arith.constant 5.000000e-01 : f32
    %455 = vector.broadcast %cst_261 : f32 to vector<2x32xf32>
    %456 = arith.mulf %455, %454 : vector<2x32xf32>
    %457 = math.tanh %456 : vector<2x32xf32>
    %cst_262 = arith.constant 1.000000e+00 : f32
    %458 = vector.broadcast %cst_262 : f32 to vector<2x32xf32>
    %459 = arith.addf %457, %458 : vector<2x32xf32>
    %cst_263 = arith.constant 5.000000e-01 : f32
    %460 = vector.broadcast %cst_263 : f32 to vector<2x32xf32>
    %461 = arith.mulf %460, %459 : vector<2x32xf32>
    %462 = vector.extract_strided_slice %445 {offsets = [0, 64], sizes = [2, 32], strides = [1, 1]} : vector<2x128xf32> to vector<2x32xf32>
    %463 = math.tanh %462 : vector<2x32xf32>
    %464 = vector.extract_strided_slice %445 {offsets = [0, 96], sizes = [2, 32], strides = [1, 1]} : vector<2x128xf32> to vector<2x32xf32>
    %cst_264 = arith.constant 5.000000e-01 : f32
    %465 = vector.broadcast %cst_264 : f32 to vector<2x32xf32>
    %466 = arith.mulf %465, %464 : vector<2x32xf32>
    %467 = math.tanh %466 : vector<2x32xf32>
    %cst_265 = arith.constant 1.000000e+00 : f32
    %468 = vector.broadcast %cst_265 : f32 to vector<2x32xf32>
    %469 = arith.addf %467, %468 : vector<2x32xf32>
    %cst_266 = arith.constant 5.000000e-01 : f32
    %470 = vector.broadcast %cst_266 : f32 to vector<2x32xf32>
    %471 = arith.mulf %470, %469 : vector<2x32xf32>
    %c0_267 = arith.constant 0 : index
    %c0_268 = arith.constant 0 : index
    %472 = vector.load %arg8[%c0_267, %c0_268] : memref<2x32xf32, #tpu.memory_space<vmem>>, vector<2x32xf32>
    %473 = arith.mulf %461, %472 : vector<2x32xf32>
    %474 = arith.mulf %453, %463 : vector<2x32xf32>
    %475 = arith.addf %473, %474 : vector<2x32xf32>
    %476 = math.tanh %475 : vector<2x32xf32>
    %477 = arith.mulf %471, %476 : vector<2x32xf32>
    %c0_269 = arith.constant 0 : index
    %c0_270 = arith.constant 0 : index
    %478 = vector.load %arg8[%c0_269, %c0_270] : memref<2x32xf32, #tpu.memory_space<vmem>>, vector<2x32xf32>
    %479 = arith.select %438, %475, %478 : vector<2x32xf32>
    %c0_271 = arith.constant 0 : index
    %c0_272 = arith.constant 0 : index
    %480 = vector.load %arg8[%c0_271, %c0_272] : memref<2x32xf32, #tpu.memory_space<vmem>>, vector<2x32xf32>
    tpu.vector_store %arg8[%c0_271, %c0_272], %479 {strides = array<i32>} : memref<2x32xf32, #tpu.memory_space<vmem>>, vector<2x32xf32>,
    %c0_273 = arith.constant 0 : index
    %c0_274 = arith.constant 0 : index
    %481 = vector.load %arg7[%c0_273, %c0_274] : memref<2x32xf32, #tpu.memory_space<vmem>>, vector<2x32xf32>
    %482 = arith.select %438, %477, %481 : vector<2x32xf32>
    %c0_275 = arith.constant 0 : index
    %c0_276 = arith.constant 0 : index
    %483 = vector.load %arg7[%c0_275, %c0_276] : memref<2x32xf32, #tpu.memory_space<vmem>>, vector<2x32xf32>
    tpu.vector_store %arg7[%c0_275, %c0_276], %482 {strides = array<i32>} : memref<2x32xf32, #tpu.memory_space<vmem>>, vector<2x32xf32>,
    %484 = arith.truncf %477 : vector<2x32xf32> to vector<2x32xbf16>
    %c0_277 = arith.constant 0 : index
    %485 = arith.index_cast %432 : i32 to index
    %c0_278 = arith.constant 0 : index
    %c0_279 = arith.constant 0 : index
    %486 = vector.load %arg6[%c0_277, %485, %c0_278, %c0_279] : memref<1x8x2x32xbf16, #tpu.memory_space<vmem>>, vector<1x1x2x32xbf16>
    %487 = vector.shape_cast %486 : vector<1x1x2x32xbf16> to vector<2x32xbf16>
    %488 = vector.shape_cast %484 : vector<2x32xbf16> to vector<1x1x2x32xbf16>
    tpu.vector_store %arg6[%c0_277, %485, %c0_278, %c0_279], %488 {strides = array<i32>} : memref<1x8x2x32xbf16, #tpu.memory_space<vmem>>, vector<1x1x2x32xbf16>,
    %c8_i32_280 = arith.constant 8 : i32
    return
  }
  func.func @transform_0(%arg0: i32, %arg1: i32) -> (i32, i32, i32, i32) {
    %c0_i32 = arith.constant 0 : i32
    %0 = arith.muli %arg0, %c0_i32 : i32
    %c2_i32 = arith.constant 2 : i32
    %1 = arith.muli %c2_i32, %arg0 : i32
    %c1_i32 = arith.constant 1 : i32
    %2 = arith.subi %c1_i32, %1 : i32
    %3 = arith.muli %2, %arg1 : i32
    %4 = arith.addi %0, %3 : i32
    %c0_i32_0 = arith.constant 0 : i32
    %c0_i32_1 = arith.constant 0 : i32
    %c0_i32_2 = arith.constant 0 : i32
    %c0_i32_3 = arith.constant 0 : i32
    return %c0_i32_0, %4, %c0_i32_1, %c0_i32_2 : i32, i32, i32, i32
  }
  func.func @transform_1(%arg0: i32, %arg1: i32) -> (i32, i32, i32) {
    %c0_i32 = arith.constant 0 : i32
    %c0_i32_0 = arith.constant 0 : i32
    %c0_i32_1 = arith.constant 0 : i32
    return %arg0, %c0_i32, %c0_i32_0 : i32, i32, i32
  }
  func.func @transform_2(%arg0: i32, %arg1: i32) -> (i32, i32, i32) {
    %c0_i32 = arith.constant 0 : i32
    %c0_i32_0 = arith.constant 0 : i32
    %c0_i32_1 = arith.constant 0 : i32
    return %arg0, %c0_i32, %c0_i32_0 : i32, i32, i32
  }
  func.func @transform_3(%arg0: i32, %arg1: i32) -> (i32, i32, i32) {
    %c0_i32 = arith.constant 0 : i32
    %c0_i32_0 = arith.constant 0 : i32
    %c0_i32_1 = arith.constant 0 : i32
    return %arg0, %c0_i32, %c0_i32_0 : i32, i32, i32
  }
  func.func @transform_4(%arg0: i32, %arg1: i32) -> (i32, i32, i32, i32) {
    %c0_i32 = arith.constant 0 : i32
    %0 = arith.muli %arg0, %c0_i32 : i32
    %c2_i32 = arith.constant 2 : i32
    %1 = arith.muli %c2_i32, %arg0 : i32
    %c1_i32 = arith.constant 1 : i32
    %2 = arith.subi %c1_i32, %1 : i32
    %3 = arith.muli %2, %arg1 : i32
    %4 = arith.addi %0, %3 : i32
    %c0_i32_0 = arith.constant 0 : i32
    %c0_i32_1 = arith.constant 0 : i32
    %c0_i32_2 = arith.constant 0 : i32
    return %arg0, %4, %c0_i32_0, %c0_i32_1 : i32, i32, i32, i32
  }
}

module attributes {stable_mosaic.version = 11 : i64} {
  func.func @_fc_logsoftmax_kernel(%arg0: i32, %arg1: memref<1x8x2x32xbf16, #tpu.memory_space<vmem>>, %arg2: memref<1x8x2x32xbf16, #tpu.memory_space<vmem>>, %arg3: memref<32x128xbf16, #tpu.memory_space<vmem>>, %arg4: memref<32x128xbf16, #tpu.memory_space<vmem>>, %arg5: memref<1x128xf32, #tpu.memory_space<vmem>>, %arg6: memref<8x2x128xf32, #tpu.memory_space<vmem>>) attributes {dimension_semantics = [#tpu.dimension_semantics<parallel>], iteration_bounds = array<i64: 1>, scalar_prefetch = 0 : i64, scratch_operands = 0 : i64, tpu.core_type = #tpu.core_type<tc>, window_params = [{transform_indices = @transform_0, window_bounds = array<i64: 1, 8, 2, 32>}, {transform_indices = @transform_1, window_bounds = array<i64: 1, 8, 2, 32>}, {pipeline_mode = #tpu.pipeline_mode<synchronous>, transform_indices = @transform_2, window_bounds = array<i64: 32, 128>}, {pipeline_mode = #tpu.pipeline_mode<synchronous>, transform_indices = @transform_3, window_bounds = array<i64: 32, 128>}, {pipeline_mode = #tpu.pipeline_mode<synchronous>, transform_indices = @transform_4, window_bounds = array<i64: 1, 128>}, {transform_indices = @transform_5, window_bounds = array<i64: 8, 2, 128>}]} {
    %c0 = arith.constant 0 : index
    %c0_0 = arith.constant 0 : index
    %c0_1 = arith.constant 0 : index
    %c0_2 = arith.constant 0 : index
    %0 = vector.load %arg1[%c0, %c0_0, %c0_1, %c0_2] : memref<1x8x2x32xbf16, #tpu.memory_space<vmem>>, vector<1x8x2x32xbf16>
    %1 = vector.shape_cast %0 : vector<1x8x2x32xbf16> to vector<8x2x32xbf16>
    %2 = vector.shape_cast %1 : vector<8x2x32xbf16> to vector<16x32xbf16>
    %c0_3 = arith.constant 0 : index
    %c0_4 = arith.constant 0 : index
    %c0_5 = arith.constant 0 : index
    %c0_6 = arith.constant 0 : index
    %3 = vector.load %arg2[%c0_3, %c0_4, %c0_5, %c0_6] : memref<1x8x2x32xbf16, #tpu.memory_space<vmem>>, vector<1x8x2x32xbf16>
    %4 = vector.shape_cast %3 : vector<1x8x2x32xbf16> to vector<8x2x32xbf16>
    %5 = vector.shape_cast %4 : vector<8x2x32xbf16> to vector<16x32xbf16>
    %c0_7 = arith.constant 0 : index
    %c0_8 = arith.constant 0 : index
    %6 = vector.load %arg3[%c0_7, %c0_8] : memref<32x128xbf16, #tpu.memory_space<vmem>>, vector<32x128xbf16>
    %cst = arith.constant dense<0.000000e+00> : vector<16x128xf32>
    %7 = tpu.matmul %2, %6, %cst {dimension_numbers = #tpu.dot_dimension_numbers<[1], [0], [0], [1], [0, 0, 1, 1], [], []>} : vector<16x32xbf16>, vector<32x128xbf16>, vector<16x128xf32> -> vector<16x128xf32>
    %c0_9 = arith.constant 0 : index
    %c0_10 = arith.constant 0 : index
    %8 = vector.load %arg4[%c0_9, %c0_10] : memref<32x128xbf16, #tpu.memory_space<vmem>>, vector<32x128xbf16>
    %cst_11 = arith.constant dense<0.000000e+00> : vector<16x128xf32>
    %9 = tpu.matmul %5, %8, %cst_11 {dimension_numbers = #tpu.dot_dimension_numbers<[1], [0], [0], [1], [0, 0, 1, 1], [], []>} : vector<16x32xbf16>, vector<32x128xbf16>, vector<16x128xf32> -> vector<16x128xf32>
    %10 = arith.addf %7, %9 : vector<16x128xf32>
    %c0_12 = arith.constant 0 : index
    %c0_13 = arith.constant 0 : index
    %11 = vector.load %arg5[%c0_12, %c0_13] : memref<1x128xf32, #tpu.memory_space<vmem>>, vector<1x128xf32>
    %12 = vector.broadcast %11 : vector<1x128xf32> to vector<16x128xf32>
    %13 = arith.addf %10, %12 : vector<16x128xf32>
    %cst_14 = arith.constant dense<0xFF800000> : vector<16xf32>
    %14 = vector.multi_reduction <maximumf>, %13, %cst_14 [1] : vector<16x128xf32> to vector<16xf32>
    %15 = vector.shape_cast %14 : vector<16xf32> to vector<16x1xf32>
    %16 = vector.broadcast %15 : vector<16x1xf32> to vector<16x128xf32>
    %17 = arith.subf %13, %16 : vector<16x128xf32>
    %18 = math.exp %17 : vector<16x128xf32>
    %cst_15 = arith.constant dense<0.000000e+00> : vector<16xf32>
    %19 = vector.multi_reduction <add>, %18, %cst_15 [1] : vector<16x128xf32> to vector<16xf32>
    %20 = vector.shape_cast %19 : vector<16xf32> to vector<16x1xf32>
    %21 = math.log %20 : vector<16x1xf32>
    %22 = vector.broadcast %21 : vector<16x1xf32> to vector<16x128xf32>
    %23 = arith.subf %17, %22 : vector<16x128xf32>
    %24 = vector.shape_cast %23 : vector<16x128xf32> to vector<8x2x128xf32>
    %c0_16 = arith.constant 0 : index
    %c0_17 = arith.constant 0 : index
    %c0_18 = arith.constant 0 : index
    %25 = vector.load %arg6[%c0_16, %c0_17, %c0_18] : memref<8x2x128xf32, #tpu.memory_space<vmem>>, vector<8x2x128xf32>
    tpu.vector_store %arg6[%c0_16, %c0_17, %c0_18], %24 {strides = array<i32>} : memref<8x2x128xf32, #tpu.memory_space<vmem>>, vector<8x2x128xf32>,
    return
  }
  func.func @transform_0(%arg0: i32) -> (i32, i32, i32, i32) {
    %c0_i32 = arith.constant 0 : i32
    %c0_i32_0 = arith.constant 0 : i32
    %c0_i32_1 = arith.constant 0 : i32
    %c0_i32_2 = arith.constant 0 : i32
    return %c0_i32, %arg0, %c0_i32_0, %c0_i32_1 : i32, i32, i32, i32
  }
  func.func @transform_1(%arg0: i32) -> (i32, i32, i32, i32) {
    %c1_i32 = arith.constant 1 : i32
    %c0_i32 = arith.constant 0 : i32
    %c0_i32_0 = arith.constant 0 : i32
    %c0_i32_1 = arith.constant 0 : i32
    return %c1_i32, %arg0, %c0_i32, %c0_i32_0 : i32, i32, i32, i32
  }
  func.func @transform_2(%arg0: i32) -> (i32, i32) {
    %c0_i32 = arith.constant 0 : i32
    %c0_i32_0 = arith.constant 0 : i32
    %c0_i32_1 = arith.constant 0 : i32
    return %c0_i32, %c0_i32_0 : i32, i32
  }
  func.func @transform_3(%arg0: i32) -> (i32, i32) {
    %c0_i32 = arith.constant 0 : i32
    %c0_i32_0 = arith.constant 0 : i32
    %c0_i32_1 = arith.constant 0 : i32
    return %c0_i32, %c0_i32_0 : i32, i32
  }
  func.func @transform_4(%arg0: i32) -> (i32, i32) {
    %c0_i32 = arith.constant 0 : i32
    %c0_i32_0 = arith.constant 0 : i32
    %c0_i32_1 = arith.constant 0 : i32
    return %c0_i32, %c0_i32_0 : i32, i32
  }
  func.func @transform_5(%arg0: i32) -> (i32, i32, i32) {
    %c0_i32 = arith.constant 0 : i32
    %c0_i32_0 = arith.constant 0 : i32
    %c0_i32_1 = arith.constant 0 : i32
    return %arg0, %c0_i32, %c0_i32_0 : i32, i32, i32
  }
}

module attributes {stable_mosaic.version = 11 : i64} {
  func.func @_bilstm_kernel(%arg0: i32, %arg1: i32, %arg2: memref<1x8x2x32xbf16, #tpu.memory_space<vmem>>, %arg3: memref<1x8x2x32xbf16, #tpu.memory_space<vmem>>, %arg4: memref<1x64x128xbf16, #tpu.memory_space<vmem>>, %arg5: memref<1x1x128xf32, #tpu.memory_space<vmem>>, %arg6: memref<1x32x128xbf16, #tpu.memory_space<vmem>>, %arg7: memref<1x8x2x32xbf16, #tpu.memory_space<vmem>>, %arg8: memref<2x32xf32, #tpu.memory_space<vmem>>, %arg9: memref<2x32xf32, #tpu.memory_space<vmem>>, %arg10: memref<8x2x128xf32, #tpu.memory_space<vmem>>) attributes {dimension_semantics = [#tpu.dimension_semantics<parallel>, #tpu.dimension_semantics<arbitrary>], iteration_bounds = array<i64: 2, 1>, scalar_prefetch = 0 : i64, scratch_operands = 3 : i64, tpu.core_type = #tpu.core_type<tc>, window_params = [{transform_indices = @transform_0, window_bounds = array<i64: 1, 8, 2, 32>}, {transform_indices = @transform_1, window_bounds = array<i64: 1, 8, 2, 32>}, {transform_indices = @transform_2, window_bounds = array<i64: 1, 64, 128>}, {transform_indices = @transform_3, window_bounds = array<i64: 1, 1, 128>}, {transform_indices = @transform_4, window_bounds = array<i64: 1, 32, 128>}, {transform_indices = @transform_5, window_bounds = array<i64: 1, 8, 2, 32>}]} {
    %c0_i32 = arith.constant 0 : i32
    %0 = arith.cmpi eq, %arg1, %c0_i32 : i32
    %1 = arith.extui %0 : i1 to i32
    %c0_i32_0 = arith.constant 0 : i32
    %2 = arith.cmpi ne, %1, %c0_i32_0 : i32
    scf.if %2 {
      %cst_286 = arith.constant 0.000000e+00 : f32
      %496 = vector.broadcast %cst_286 : f32 to vector<2x32xf32>
      %c0_287 = arith.constant 0 : index
      %c0_288 = arith.constant 0 : index
      %497 = vector.load %arg8[%c0_287, %c0_288] : memref<2x32xf32, #tpu.memory_space<vmem>>, vector<2x32xf32>
      tpu.vector_store %arg8[%c0_287, %c0_288], %496 {strides = array<i32>} : memref<2x32xf32, #tpu.memory_space<vmem>>, vector<2x32xf32>,
      %cst_289 = arith.constant 0.000000e+00 : f32
      %498 = vector.broadcast %cst_289 : f32 to vector<2x32xf32>
      %c0_290 = arith.constant 0 : index
      %c0_291 = arith.constant 0 : index
      %499 = vector.load %arg9[%c0_290, %c0_291] : memref<2x32xf32, #tpu.memory_space<vmem>>, vector<2x32xf32>
      tpu.vector_store %arg9[%c0_290, %c0_291], %498 {strides = array<i32>} : memref<2x32xf32, #tpu.memory_space<vmem>>, vector<2x32xf32>,
    } else {
    }
    %c0 = arith.constant 0 : index
    %c0_1 = arith.constant 0 : index
    %c0_2 = arith.constant 0 : index
    %c0_3 = arith.constant 0 : index
    %3 = vector.load %arg2[%c0, %c0_1, %c0_2, %c0_3] : memref<1x8x2x32xbf16, #tpu.memory_space<vmem>>, vector<1x8x2x32xbf16>
    %4 = vector.shape_cast %3 : vector<1x8x2x32xbf16> to vector<8x2x32xbf16>
    %5 = vector.shape_cast %4 : vector<8x2x32xbf16> to vector<16x32xbf16>
    %c0_4 = arith.constant 0 : index
    %c0_5 = arith.constant 0 : index
    %c0_6 = arith.constant 0 : index
    %c0_7 = arith.constant 0 : index
    %6 = vector.load %arg3[%c0_4, %c0_5, %c0_6, %c0_7] : memref<1x8x2x32xbf16, #tpu.memory_space<vmem>>, vector<1x8x2x32xbf16>
    %7 = vector.shape_cast %6 : vector<1x8x2x32xbf16> to vector<8x2x32xbf16>
    %8 = vector.shape_cast %7 : vector<8x2x32xbf16> to vector<16x32xbf16>
    %c0_8 = arith.constant 0 : index
    %c0_9 = arith.constant 0 : index
    %c0_10 = arith.constant 0 : index
    %9 = vector.load %arg4[%c0_8, %c0_9, %c0_10] : memref<1x64x128xbf16, #tpu.memory_space<vmem>>, vector<1x64x128xbf16>
    %10 = vector.shape_cast %9 : vector<1x64x128xbf16> to vector<64x128xbf16>
    %11 = vector.extract_strided_slice %10 {offsets = [0, 0], sizes = [32, 128], strides = [1, 1]} : vector<64x128xbf16> to vector<32x128xbf16>
    %cst = arith.constant dense<0.000000e+00> : vector<16x128xf32>
    %12 = tpu.matmul %5, %11, %cst {dimension_numbers = #tpu.dot_dimension_numbers<[1], [0], [0], [1], [0, 0, 1, 1], [], []>} : vector<16x32xbf16>, vector<32x128xbf16>, vector<16x128xf32> -> vector<16x128xf32>
    %13 = vector.extract_strided_slice %10 {offsets = [32, 0], sizes = [32, 128], strides = [1, 1]} : vector<64x128xbf16> to vector<32x128xbf16>
    %cst_11 = arith.constant dense<0.000000e+00> : vector<16x128xf32>
    %14 = tpu.matmul %8, %13, %cst_11 {dimension_numbers = #tpu.dot_dimension_numbers<[1], [0], [0], [1], [0, 0, 1, 1], [], []>} : vector<16x32xbf16>, vector<32x128xbf16>, vector<16x128xf32> -> vector<16x128xf32>
    %15 = arith.addf %12, %14 : vector<16x128xf32>
    %c0_12 = arith.constant 0 : index
    %c0_13 = arith.constant 0 : index
    %c0_14 = arith.constant 0 : index
    %16 = vector.load %arg5[%c0_12, %c0_13, %c0_14] : memref<1x1x128xf32, #tpu.memory_space<vmem>>, vector<1x1x128xf32>
    %17 = vector.shape_cast %16 : vector<1x1x128xf32> to vector<1x128xf32>
    %18 = vector.broadcast %17 : vector<1x128xf32> to vector<16x128xf32>
    %19 = arith.addf %15, %18 : vector<16x128xf32>
    %20 = vector.shape_cast %19 : vector<16x128xf32> to vector<8x2x128xf32>
    %c0_15 = arith.constant 0 : index
    %c0_16 = arith.constant 0 : index
    %c0_17 = arith.constant 0 : index
    %21 = vector.load %arg10[%c0_15, %c0_16, %c0_17] : memref<8x2x128xf32, #tpu.memory_space<vmem>>, vector<8x2x128xf32>
    tpu.vector_store %arg10[%c0_15, %c0_16, %c0_17], %20 {strides = array<i32>} : memref<8x2x128xf32, #tpu.memory_space<vmem>>, vector<8x2x128xf32>,
    %c0_18 = arith.constant 0 : index
    %c0_19 = arith.constant 0 : index
    %c0_20 = arith.constant 0 : index
    %22 = vector.load %arg6[%c0_18, %c0_19, %c0_20] : memref<1x32x128xbf16, #tpu.memory_space<vmem>>, vector<1x32x128xbf16>
    %23 = vector.shape_cast %22 : vector<1x32x128xbf16> to vector<32x128xbf16>
    %c0_i32_21 = arith.constant 0 : i32
    %c0_i32_22 = arith.constant 0 : i32
    %24 = arith.cmpi eq, %arg0, %c0_i32_22 : i32
    %c7_i32 = arith.constant 7 : i32
    %25 = arith.subi %c7_i32, %c0_i32_21 : i32
    %26 = arith.select %24, %c0_i32_21, %25 : i32
    %c0_i32_23 = arith.constant 0 : i32
    %27 = arith.cmpi eq, %arg0, %c0_i32_23 : i32
    %c0_i32_24 = arith.constant 0 : i32
    %28 = arith.subi %c0_i32_24, %arg1 : i32
    %29 = arith.select %27, %arg1, %28 : i32
    %c8_i32 = arith.constant 8 : i32
    %30 = arith.muli %29, %c8_i32 : i32
    %31 = arith.addi %30, %26 : i32
    %c8_i32_25 = arith.constant 8 : i32
    %32 = arith.cmpi slt, %31, %c8_i32_25 : i32
    %33 = arith.index_cast %26 : i32 to index
    %c0_26 = arith.constant 0 : index
    %c0_27 = arith.constant 0 : index
    %34 = vector.load %arg10[%33, %c0_26, %c0_27] : memref<8x2x128xf32, #tpu.memory_space<vmem>>, vector<1x2x128xf32>
    %35 = vector.shape_cast %34 : vector<1x2x128xf32> to vector<2x128xf32>
    %c0_28 = arith.constant 0 : index
    %c0_29 = arith.constant 0 : index
    %36 = vector.load %arg8[%c0_28, %c0_29] : memref<2x32xf32, #tpu.memory_space<vmem>>, vector<2x32xf32>
    %37 = arith.truncf %36 : vector<2x32xf32> to vector<2x32xbf16>
    %cst_30 = arith.constant dense<0.000000e+00> : vector<2x128xf32>
    %38 = tpu.matmul %37, %23, %cst_30 {dimension_numbers = #tpu.dot_dimension_numbers<[1], [0], [0], [1], [0, 0, 1, 1], [], []>} : vector<2x32xbf16>, vector<32x128xbf16>, vector<2x128xf32> -> vector<2x128xf32>
    %39 = arith.addf %35, %38 : vector<2x128xf32>
    %40 = vector.extract_strided_slice %39 {offsets = [0, 0], sizes = [2, 32], strides = [1, 1]} : vector<2x128xf32> to vector<2x32xf32>
    %cst_31 = arith.constant 5.000000e-01 : f32
    %41 = vector.broadcast %cst_31 : f32 to vector<2x32xf32>
    %42 = arith.mulf %41, %40 : vector<2x32xf32>
    %43 = math.tanh %42 : vector<2x32xf32>
    %cst_32 = arith.constant 1.000000e+00 : f32
    %44 = vector.broadcast %cst_32 : f32 to vector<2x32xf32>
    %45 = arith.addf %43, %44 : vector<2x32xf32>
    %cst_33 = arith.constant 5.000000e-01 : f32
    %46 = vector.broadcast %cst_33 : f32 to vector<2x32xf32>
    %47 = arith.mulf %46, %45 : vector<2x32xf32>
    %48 = vector.extract_strided_slice %39 {offsets = [0, 32], sizes = [2, 32], strides = [1, 1]} : vector<2x128xf32> to vector<2x32xf32>
    %cst_34 = arith.constant 5.000000e-01 : f32
    %49 = vector.broadcast %cst_34 : f32 to vector<2x32xf32>
    %50 = arith.mulf %49, %48 : vector<2x32xf32>
    %51 = math.tanh %50 : vector<2x32xf32>
    %cst_35 = arith.constant 1.000000e+00 : f32
    %52 = vector.broadcast %cst_35 : f32 to vector<2x32xf32>
    %53 = arith.addf %51, %52 : vector<2x32xf32>
    %cst_36 = arith.constant 5.000000e-01 : f32
    %54 = vector.broadcast %cst_36 : f32 to vector<2x32xf32>
    %55 = arith.mulf %54, %53 : vector<2x32xf32>
    %56 = vector.extract_strided_slice %39 {offsets = [0, 64], sizes = [2, 32], strides = [1, 1]} : vector<2x128xf32> to vector<2x32xf32>
    %57 = math.tanh %56 : vector<2x32xf32>
    %58 = vector.extract_strided_slice %39 {offsets = [0, 96], sizes = [2, 32], strides = [1, 1]} : vector<2x128xf32> to vector<2x32xf32>
    %cst_37 = arith.constant 5.000000e-01 : f32
    %59 = vector.broadcast %cst_37 : f32 to vector<2x32xf32>
    %60 = arith.mulf %59, %58 : vector<2x32xf32>
    %61 = math.tanh %60 : vector<2x32xf32>
    %cst_38 = arith.constant 1.000000e+00 : f32
    %62 = vector.broadcast %cst_38 : f32 to vector<2x32xf32>
    %63 = arith.addf %61, %62 : vector<2x32xf32>
    %cst_39 = arith.constant 5.000000e-01 : f32
    %64 = vector.broadcast %cst_39 : f32 to vector<2x32xf32>
    %65 = arith.mulf %64, %63 : vector<2x32xf32>
    %c0_40 = arith.constant 0 : index
    %c0_41 = arith.constant 0 : index
    %66 = vector.load %arg9[%c0_40, %c0_41] : memref<2x32xf32, #tpu.memory_space<vmem>>, vector<2x32xf32>
    %67 = arith.mulf %55, %66 : vector<2x32xf32>
    %68 = arith.mulf %47, %57 : vector<2x32xf32>
    %69 = arith.addf %67, %68 : vector<2x32xf32>
    %70 = math.tanh %69 : vector<2x32xf32>
    %71 = arith.mulf %65, %70 : vector<2x32xf32>
    %c0_42 = arith.constant 0 : index
    %c0_43 = arith.constant 0 : index
    %72 = vector.load %arg9[%c0_42, %c0_43] : memref<2x32xf32, #tpu.memory_space<vmem>>, vector<2x32xf32>
    %73 = arith.select %32, %69, %72 : vector<2x32xf32>
    %c0_44 = arith.constant 0 : index
    %c0_45 = arith.constant 0 : index
    %74 = vector.load %arg9[%c0_44, %c0_45] : memref<2x32xf32, #tpu.memory_space<vmem>>, vector<2x32xf32>
    tpu.vector_store %arg9[%c0_44, %c0_45], %73 {strides = array<i32>} : memref<2x32xf32, #tpu.memory_space<vmem>>, vector<2x32xf32>,
    %c0_46 = arith.constant 0 : index
    %c0_47 = arith.constant 0 : index
    %75 = vector.load %arg8[%c0_46, %c0_47] : memref<2x32xf32, #tpu.memory_space<vmem>>, vector<2x32xf32>
    %76 = arith.select %32, %71, %75 : vector<2x32xf32>
    %c0_48 = arith.constant 0 : index
    %c0_49 = arith.constant 0 : index
    %77 = vector.load %arg8[%c0_48, %c0_49] : memref<2x32xf32, #tpu.memory_space<vmem>>, vector<2x32xf32>
    tpu.vector_store %arg8[%c0_48, %c0_49], %76 {strides = array<i32>} : memref<2x32xf32, #tpu.memory_space<vmem>>, vector<2x32xf32>,
    %78 = arith.truncf %71 : vector<2x32xf32> to vector<2x32xbf16>
    %c0_50 = arith.constant 0 : index
    %79 = arith.index_cast %26 : i32 to index
    %c0_51 = arith.constant 0 : index
    %c0_52 = arith.constant 0 : index
    %80 = vector.load %arg7[%c0_50, %79, %c0_51, %c0_52] : memref<1x8x2x32xbf16, #tpu.memory_space<vmem>>, vector<1x1x2x32xbf16>
    %81 = vector.shape_cast %80 : vector<1x1x2x32xbf16> to vector<2x32xbf16>
    %82 = vector.shape_cast %78 : vector<2x32xbf16> to vector<1x1x2x32xbf16>
    tpu.vector_store %arg7[%c0_50, %79, %c0_51, %c0_52], %82 {strides = array<i32>} : memref<1x8x2x32xbf16, #tpu.memory_space<vmem>>, vector<1x1x2x32xbf16>,
    %c1_i32 = arith.constant 1 : i32
    %c0_i32_53 = arith.constant 0 : i32
    %83 = arith.cmpi eq, %arg0, %c0_i32_53 : i32
    %c7_i32_54 = arith.constant 7 : i32
    %84 = arith.subi %c7_i32_54, %c1_i32 : i32
    %85 = arith.select %83, %c1_i32, %84 : i32
    %c0_i32_55 = arith.constant 0 : i32
    %86 = arith.cmpi eq, %arg0, %c0_i32_55 : i32
    %c0_i32_56 = arith.constant 0 : i32
    %87 = arith.subi %c0_i32_56, %arg1 : i32
    %88 = arith.select %86, %arg1, %87 : i32
    %c8_i32_57 = arith.constant 8 : i32
    %89 = arith.muli %88, %c8_i32_57 : i32
    %90 = arith.addi %89, %85 : i32
    %c8_i32_58 = arith.constant 8 : i32
    %91 = arith.cmpi slt, %90, %c8_i32_58 : i32
    %92 = arith.index_cast %85 : i32 to index
    %c0_59 = arith.constant 0 : index
    %c0_60 = arith.constant 0 : index
    %93 = vector.load %arg10[%92, %c0_59, %c0_60] : memref<8x2x128xf32, #tpu.memory_space<vmem>>, vector<1x2x128xf32>
    %94 = vector.shape_cast %93 : vector<1x2x128xf32> to vector<2x128xf32>
    %c0_61 = arith.constant 0 : index
    %c0_62 = arith.constant 0 : index
    %95 = vector.load %arg8[%c0_61, %c0_62] : memref<2x32xf32, #tpu.memory_space<vmem>>, vector<2x32xf32>
    %96 = arith.truncf %95 : vector<2x32xf32> to vector<2x32xbf16>
    %cst_63 = arith.constant dense<0.000000e+00> : vector<2x128xf32>
    %97 = tpu.matmul %96, %23, %cst_63 {dimension_numbers = #tpu.dot_dimension_numbers<[1], [0], [0], [1], [0, 0, 1, 1], [], []>} : vector<2x32xbf16>, vector<32x128xbf16>, vector<2x128xf32> -> vector<2x128xf32>
    %98 = arith.addf %94, %97 : vector<2x128xf32>
    %99 = vector.extract_strided_slice %98 {offsets = [0, 0], sizes = [2, 32], strides = [1, 1]} : vector<2x128xf32> to vector<2x32xf32>
    %cst_64 = arith.constant 5.000000e-01 : f32
    %100 = vector.broadcast %cst_64 : f32 to vector<2x32xf32>
    %101 = arith.mulf %100, %99 : vector<2x32xf32>
    %102 = math.tanh %101 : vector<2x32xf32>
    %cst_65 = arith.constant 1.000000e+00 : f32
    %103 = vector.broadcast %cst_65 : f32 to vector<2x32xf32>
    %104 = arith.addf %102, %103 : vector<2x32xf32>
    %cst_66 = arith.constant 5.000000e-01 : f32
    %105 = vector.broadcast %cst_66 : f32 to vector<2x32xf32>
    %106 = arith.mulf %105, %104 : vector<2x32xf32>
    %107 = vector.extract_strided_slice %98 {offsets = [0, 32], sizes = [2, 32], strides = [1, 1]} : vector<2x128xf32> to vector<2x32xf32>
    %cst_67 = arith.constant 5.000000e-01 : f32
    %108 = vector.broadcast %cst_67 : f32 to vector<2x32xf32>
    %109 = arith.mulf %108, %107 : vector<2x32xf32>
    %110 = math.tanh %109 : vector<2x32xf32>
    %cst_68 = arith.constant 1.000000e+00 : f32
    %111 = vector.broadcast %cst_68 : f32 to vector<2x32xf32>
    %112 = arith.addf %110, %111 : vector<2x32xf32>
    %cst_69 = arith.constant 5.000000e-01 : f32
    %113 = vector.broadcast %cst_69 : f32 to vector<2x32xf32>
    %114 = arith.mulf %113, %112 : vector<2x32xf32>
    %115 = vector.extract_strided_slice %98 {offsets = [0, 64], sizes = [2, 32], strides = [1, 1]} : vector<2x128xf32> to vector<2x32xf32>
    %116 = math.tanh %115 : vector<2x32xf32>
    %117 = vector.extract_strided_slice %98 {offsets = [0, 96], sizes = [2, 32], strides = [1, 1]} : vector<2x128xf32> to vector<2x32xf32>
    %cst_70 = arith.constant 5.000000e-01 : f32
    %118 = vector.broadcast %cst_70 : f32 to vector<2x32xf32>
    %119 = arith.mulf %118, %117 : vector<2x32xf32>
    %120 = math.tanh %119 : vector<2x32xf32>
    %cst_71 = arith.constant 1.000000e+00 : f32
    %121 = vector.broadcast %cst_71 : f32 to vector<2x32xf32>
    %122 = arith.addf %120, %121 : vector<2x32xf32>
    %cst_72 = arith.constant 5.000000e-01 : f32
    %123 = vector.broadcast %cst_72 : f32 to vector<2x32xf32>
    %124 = arith.mulf %123, %122 : vector<2x32xf32>
    %c0_73 = arith.constant 0 : index
    %c0_74 = arith.constant 0 : index
    %125 = vector.load %arg9[%c0_73, %c0_74] : memref<2x32xf32, #tpu.memory_space<vmem>>, vector<2x32xf32>
    %126 = arith.mulf %114, %125 : vector<2x32xf32>
    %127 = arith.mulf %106, %116 : vector<2x32xf32>
    %128 = arith.addf %126, %127 : vector<2x32xf32>
    %129 = math.tanh %128 : vector<2x32xf32>
    %130 = arith.mulf %124, %129 : vector<2x32xf32>
    %c0_75 = arith.constant 0 : index
    %c0_76 = arith.constant 0 : index
    %131 = vector.load %arg9[%c0_75, %c0_76] : memref<2x32xf32, #tpu.memory_space<vmem>>, vector<2x32xf32>
    %132 = arith.select %91, %128, %131 : vector<2x32xf32>
    %c0_77 = arith.constant 0 : index
    %c0_78 = arith.constant 0 : index
    %133 = vector.load %arg9[%c0_77, %c0_78] : memref<2x32xf32, #tpu.memory_space<vmem>>, vector<2x32xf32>
    tpu.vector_store %arg9[%c0_77, %c0_78], %132 {strides = array<i32>} : memref<2x32xf32, #tpu.memory_space<vmem>>, vector<2x32xf32>,
    %c0_79 = arith.constant 0 : index
    %c0_80 = arith.constant 0 : index
    %134 = vector.load %arg8[%c0_79, %c0_80] : memref<2x32xf32, #tpu.memory_space<vmem>>, vector<2x32xf32>
    %135 = arith.select %91, %130, %134 : vector<2x32xf32>
    %c0_81 = arith.constant 0 : index
    %c0_82 = arith.constant 0 : index
    %136 = vector.load %arg8[%c0_81, %c0_82] : memref<2x32xf32, #tpu.memory_space<vmem>>, vector<2x32xf32>
    tpu.vector_store %arg8[%c0_81, %c0_82], %135 {strides = array<i32>} : memref<2x32xf32, #tpu.memory_space<vmem>>, vector<2x32xf32>,
    %137 = arith.truncf %130 : vector<2x32xf32> to vector<2x32xbf16>
    %c0_83 = arith.constant 0 : index
    %138 = arith.index_cast %85 : i32 to index
    %c0_84 = arith.constant 0 : index
    %c0_85 = arith.constant 0 : index
    %139 = vector.load %arg7[%c0_83, %138, %c0_84, %c0_85] : memref<1x8x2x32xbf16, #tpu.memory_space<vmem>>, vector<1x1x2x32xbf16>
    %140 = vector.shape_cast %139 : vector<1x1x2x32xbf16> to vector<2x32xbf16>
    %141 = vector.shape_cast %137 : vector<2x32xbf16> to vector<1x1x2x32xbf16>
    tpu.vector_store %arg7[%c0_83, %138, %c0_84, %c0_85], %141 {strides = array<i32>} : memref<1x8x2x32xbf16, #tpu.memory_space<vmem>>, vector<1x1x2x32xbf16>,
    %c2_i32 = arith.constant 2 : i32
    %c0_i32_86 = arith.constant 0 : i32
    %142 = arith.cmpi eq, %arg0, %c0_i32_86 : i32
    %c7_i32_87 = arith.constant 7 : i32
    %143 = arith.subi %c7_i32_87, %c2_i32 : i32
    %144 = arith.select %142, %c2_i32, %143 : i32
    %c0_i32_88 = arith.constant 0 : i32
    %145 = arith.cmpi eq, %arg0, %c0_i32_88 : i32
    %c0_i32_89 = arith.constant 0 : i32
    %146 = arith.subi %c0_i32_89, %arg1 : i32
    %147 = arith.select %145, %arg1, %146 : i32
    %c8_i32_90 = arith.constant 8 : i32
    %148 = arith.muli %147, %c8_i32_90 : i32
    %149 = arith.addi %148, %144 : i32
    %c8_i32_91 = arith.constant 8 : i32
    %150 = arith.cmpi slt, %149, %c8_i32_91 : i32
    %151 = arith.index_cast %144 : i32 to index
    %c0_92 = arith.constant 0 : index
    %c0_93 = arith.constant 0 : index
    %152 = vector.load %arg10[%151, %c0_92, %c0_93] : memref<8x2x128xf32, #tpu.memory_space<vmem>>, vector<1x2x128xf32>
    %153 = vector.shape_cast %152 : vector<1x2x128xf32> to vector<2x128xf32>
    %c0_94 = arith.constant 0 : index
    %c0_95 = arith.constant 0 : index
    %154 = vector.load %arg8[%c0_94, %c0_95] : memref<2x32xf32, #tpu.memory_space<vmem>>, vector<2x32xf32>
    %155 = arith.truncf %154 : vector<2x32xf32> to vector<2x32xbf16>
    %cst_96 = arith.constant dense<0.000000e+00> : vector<2x128xf32>
    %156 = tpu.matmul %155, %23, %cst_96 {dimension_numbers = #tpu.dot_dimension_numbers<[1], [0], [0], [1], [0, 0, 1, 1], [], []>} : vector<2x32xbf16>, vector<32x128xbf16>, vector<2x128xf32> -> vector<2x128xf32>
    %157 = arith.addf %153, %156 : vector<2x128xf32>
    %158 = vector.extract_strided_slice %157 {offsets = [0, 0], sizes = [2, 32], strides = [1, 1]} : vector<2x128xf32> to vector<2x32xf32>
    %cst_97 = arith.constant 5.000000e-01 : f32
    %159 = vector.broadcast %cst_97 : f32 to vector<2x32xf32>
    %160 = arith.mulf %159, %158 : vector<2x32xf32>
    %161 = math.tanh %160 : vector<2x32xf32>
    %cst_98 = arith.constant 1.000000e+00 : f32
    %162 = vector.broadcast %cst_98 : f32 to vector<2x32xf32>
    %163 = arith.addf %161, %162 : vector<2x32xf32>
    %cst_99 = arith.constant 5.000000e-01 : f32
    %164 = vector.broadcast %cst_99 : f32 to vector<2x32xf32>
    %165 = arith.mulf %164, %163 : vector<2x32xf32>
    %166 = vector.extract_strided_slice %157 {offsets = [0, 32], sizes = [2, 32], strides = [1, 1]} : vector<2x128xf32> to vector<2x32xf32>
    %cst_100 = arith.constant 5.000000e-01 : f32
    %167 = vector.broadcast %cst_100 : f32 to vector<2x32xf32>
    %168 = arith.mulf %167, %166 : vector<2x32xf32>
    %169 = math.tanh %168 : vector<2x32xf32>
    %cst_101 = arith.constant 1.000000e+00 : f32
    %170 = vector.broadcast %cst_101 : f32 to vector<2x32xf32>
    %171 = arith.addf %169, %170 : vector<2x32xf32>
    %cst_102 = arith.constant 5.000000e-01 : f32
    %172 = vector.broadcast %cst_102 : f32 to vector<2x32xf32>
    %173 = arith.mulf %172, %171 : vector<2x32xf32>
    %174 = vector.extract_strided_slice %157 {offsets = [0, 64], sizes = [2, 32], strides = [1, 1]} : vector<2x128xf32> to vector<2x32xf32>
    %175 = math.tanh %174 : vector<2x32xf32>
    %176 = vector.extract_strided_slice %157 {offsets = [0, 96], sizes = [2, 32], strides = [1, 1]} : vector<2x128xf32> to vector<2x32xf32>
    %cst_103 = arith.constant 5.000000e-01 : f32
    %177 = vector.broadcast %cst_103 : f32 to vector<2x32xf32>
    %178 = arith.mulf %177, %176 : vector<2x32xf32>
    %179 = math.tanh %178 : vector<2x32xf32>
    %cst_104 = arith.constant 1.000000e+00 : f32
    %180 = vector.broadcast %cst_104 : f32 to vector<2x32xf32>
    %181 = arith.addf %179, %180 : vector<2x32xf32>
    %cst_105 = arith.constant 5.000000e-01 : f32
    %182 = vector.broadcast %cst_105 : f32 to vector<2x32xf32>
    %183 = arith.mulf %182, %181 : vector<2x32xf32>
    %c0_106 = arith.constant 0 : index
    %c0_107 = arith.constant 0 : index
    %184 = vector.load %arg9[%c0_106, %c0_107] : memref<2x32xf32, #tpu.memory_space<vmem>>, vector<2x32xf32>
    %185 = arith.mulf %173, %184 : vector<2x32xf32>
    %186 = arith.mulf %165, %175 : vector<2x32xf32>
    %187 = arith.addf %185, %186 : vector<2x32xf32>
    %188 = math.tanh %187 : vector<2x32xf32>
    %189 = arith.mulf %183, %188 : vector<2x32xf32>
    %c0_108 = arith.constant 0 : index
    %c0_109 = arith.constant 0 : index
    %190 = vector.load %arg9[%c0_108, %c0_109] : memref<2x32xf32, #tpu.memory_space<vmem>>, vector<2x32xf32>
    %191 = arith.select %150, %187, %190 : vector<2x32xf32>
    %c0_110 = arith.constant 0 : index
    %c0_111 = arith.constant 0 : index
    %192 = vector.load %arg9[%c0_110, %c0_111] : memref<2x32xf32, #tpu.memory_space<vmem>>, vector<2x32xf32>
    tpu.vector_store %arg9[%c0_110, %c0_111], %191 {strides = array<i32>} : memref<2x32xf32, #tpu.memory_space<vmem>>, vector<2x32xf32>,
    %c0_112 = arith.constant 0 : index
    %c0_113 = arith.constant 0 : index
    %193 = vector.load %arg8[%c0_112, %c0_113] : memref<2x32xf32, #tpu.memory_space<vmem>>, vector<2x32xf32>
    %194 = arith.select %150, %189, %193 : vector<2x32xf32>
    %c0_114 = arith.constant 0 : index
    %c0_115 = arith.constant 0 : index
    %195 = vector.load %arg8[%c0_114, %c0_115] : memref<2x32xf32, #tpu.memory_space<vmem>>, vector<2x32xf32>
    tpu.vector_store %arg8[%c0_114, %c0_115], %194 {strides = array<i32>} : memref<2x32xf32, #tpu.memory_space<vmem>>, vector<2x32xf32>,
    %196 = arith.truncf %189 : vector<2x32xf32> to vector<2x32xbf16>
    %c0_116 = arith.constant 0 : index
    %197 = arith.index_cast %144 : i32 to index
    %c0_117 = arith.constant 0 : index
    %c0_118 = arith.constant 0 : index
    %198 = vector.load %arg7[%c0_116, %197, %c0_117, %c0_118] : memref<1x8x2x32xbf16, #tpu.memory_space<vmem>>, vector<1x1x2x32xbf16>
    %199 = vector.shape_cast %198 : vector<1x1x2x32xbf16> to vector<2x32xbf16>
    %200 = vector.shape_cast %196 : vector<2x32xbf16> to vector<1x1x2x32xbf16>
    tpu.vector_store %arg7[%c0_116, %197, %c0_117, %c0_118], %200 {strides = array<i32>} : memref<1x8x2x32xbf16, #tpu.memory_space<vmem>>, vector<1x1x2x32xbf16>,
    %c3_i32 = arith.constant 3 : i32
    %c0_i32_119 = arith.constant 0 : i32
    %201 = arith.cmpi eq, %arg0, %c0_i32_119 : i32
    %c7_i32_120 = arith.constant 7 : i32
    %202 = arith.subi %c7_i32_120, %c3_i32 : i32
    %203 = arith.select %201, %c3_i32, %202 : i32
    %c0_i32_121 = arith.constant 0 : i32
    %204 = arith.cmpi eq, %arg0, %c0_i32_121 : i32
    %c0_i32_122 = arith.constant 0 : i32
    %205 = arith.subi %c0_i32_122, %arg1 : i32
    %206 = arith.select %204, %arg1, %205 : i32
    %c8_i32_123 = arith.constant 8 : i32
    %207 = arith.muli %206, %c8_i32_123 : i32
    %208 = arith.addi %207, %203 : i32
    %c8_i32_124 = arith.constant 8 : i32
    %209 = arith.cmpi slt, %208, %c8_i32_124 : i32
    %210 = arith.index_cast %203 : i32 to index
    %c0_125 = arith.constant 0 : index
    %c0_126 = arith.constant 0 : index
    %211 = vector.load %arg10[%210, %c0_125, %c0_126] : memref<8x2x128xf32, #tpu.memory_space<vmem>>, vector<1x2x128xf32>
    %212 = vector.shape_cast %211 : vector<1x2x128xf32> to vector<2x128xf32>
    %c0_127 = arith.constant 0 : index
    %c0_128 = arith.constant 0 : index
    %213 = vector.load %arg8[%c0_127, %c0_128] : memref<2x32xf32, #tpu.memory_space<vmem>>, vector<2x32xf32>
    %214 = arith.truncf %213 : vector<2x32xf32> to vector<2x32xbf16>
    %cst_129 = arith.constant dense<0.000000e+00> : vector<2x128xf32>
    %215 = tpu.matmul %214, %23, %cst_129 {dimension_numbers = #tpu.dot_dimension_numbers<[1], [0], [0], [1], [0, 0, 1, 1], [], []>} : vector<2x32xbf16>, vector<32x128xbf16>, vector<2x128xf32> -> vector<2x128xf32>
    %216 = arith.addf %212, %215 : vector<2x128xf32>
    %217 = vector.extract_strided_slice %216 {offsets = [0, 0], sizes = [2, 32], strides = [1, 1]} : vector<2x128xf32> to vector<2x32xf32>
    %cst_130 = arith.constant 5.000000e-01 : f32
    %218 = vector.broadcast %cst_130 : f32 to vector<2x32xf32>
    %219 = arith.mulf %218, %217 : vector<2x32xf32>
    %220 = math.tanh %219 : vector<2x32xf32>
    %cst_131 = arith.constant 1.000000e+00 : f32
    %221 = vector.broadcast %cst_131 : f32 to vector<2x32xf32>
    %222 = arith.addf %220, %221 : vector<2x32xf32>
    %cst_132 = arith.constant 5.000000e-01 : f32
    %223 = vector.broadcast %cst_132 : f32 to vector<2x32xf32>
    %224 = arith.mulf %223, %222 : vector<2x32xf32>
    %225 = vector.extract_strided_slice %216 {offsets = [0, 32], sizes = [2, 32], strides = [1, 1]} : vector<2x128xf32> to vector<2x32xf32>
    %cst_133 = arith.constant 5.000000e-01 : f32
    %226 = vector.broadcast %cst_133 : f32 to vector<2x32xf32>
    %227 = arith.mulf %226, %225 : vector<2x32xf32>
    %228 = math.tanh %227 : vector<2x32xf32>
    %cst_134 = arith.constant 1.000000e+00 : f32
    %229 = vector.broadcast %cst_134 : f32 to vector<2x32xf32>
    %230 = arith.addf %228, %229 : vector<2x32xf32>
    %cst_135 = arith.constant 5.000000e-01 : f32
    %231 = vector.broadcast %cst_135 : f32 to vector<2x32xf32>
    %232 = arith.mulf %231, %230 : vector<2x32xf32>
    %233 = vector.extract_strided_slice %216 {offsets = [0, 64], sizes = [2, 32], strides = [1, 1]} : vector<2x128xf32> to vector<2x32xf32>
    %234 = math.tanh %233 : vector<2x32xf32>
    %235 = vector.extract_strided_slice %216 {offsets = [0, 96], sizes = [2, 32], strides = [1, 1]} : vector<2x128xf32> to vector<2x32xf32>
    %cst_136 = arith.constant 5.000000e-01 : f32
    %236 = vector.broadcast %cst_136 : f32 to vector<2x32xf32>
    %237 = arith.mulf %236, %235 : vector<2x32xf32>
    %238 = math.tanh %237 : vector<2x32xf32>
    %cst_137 = arith.constant 1.000000e+00 : f32
    %239 = vector.broadcast %cst_137 : f32 to vector<2x32xf32>
    %240 = arith.addf %238, %239 : vector<2x32xf32>
    %cst_138 = arith.constant 5.000000e-01 : f32
    %241 = vector.broadcast %cst_138 : f32 to vector<2x32xf32>
    %242 = arith.mulf %241, %240 : vector<2x32xf32>
    %c0_139 = arith.constant 0 : index
    %c0_140 = arith.constant 0 : index
    %243 = vector.load %arg9[%c0_139, %c0_140] : memref<2x32xf32, #tpu.memory_space<vmem>>, vector<2x32xf32>
    %244 = arith.mulf %232, %243 : vector<2x32xf32>
    %245 = arith.mulf %224, %234 : vector<2x32xf32>
    %246 = arith.addf %244, %245 : vector<2x32xf32>
    %247 = math.tanh %246 : vector<2x32xf32>
    %248 = arith.mulf %242, %247 : vector<2x32xf32>
    %c0_141 = arith.constant 0 : index
    %c0_142 = arith.constant 0 : index
    %249 = vector.load %arg9[%c0_141, %c0_142] : memref<2x32xf32, #tpu.memory_space<vmem>>, vector<2x32xf32>
    %250 = arith.select %209, %246, %249 : vector<2x32xf32>
    %c0_143 = arith.constant 0 : index
    %c0_144 = arith.constant 0 : index
    %251 = vector.load %arg9[%c0_143, %c0_144] : memref<2x32xf32, #tpu.memory_space<vmem>>, vector<2x32xf32>
    tpu.vector_store %arg9[%c0_143, %c0_144], %250 {strides = array<i32>} : memref<2x32xf32, #tpu.memory_space<vmem>>, vector<2x32xf32>,
    %c0_145 = arith.constant 0 : index
    %c0_146 = arith.constant 0 : index
    %252 = vector.load %arg8[%c0_145, %c0_146] : memref<2x32xf32, #tpu.memory_space<vmem>>, vector<2x32xf32>
    %253 = arith.select %209, %248, %252 : vector<2x32xf32>
    %c0_147 = arith.constant 0 : index
    %c0_148 = arith.constant 0 : index
    %254 = vector.load %arg8[%c0_147, %c0_148] : memref<2x32xf32, #tpu.memory_space<vmem>>, vector<2x32xf32>
    tpu.vector_store %arg8[%c0_147, %c0_148], %253 {strides = array<i32>} : memref<2x32xf32, #tpu.memory_space<vmem>>, vector<2x32xf32>,
    %255 = arith.truncf %248 : vector<2x32xf32> to vector<2x32xbf16>
    %c0_149 = arith.constant 0 : index
    %256 = arith.index_cast %203 : i32 to index
    %c0_150 = arith.constant 0 : index
    %c0_151 = arith.constant 0 : index
    %257 = vector.load %arg7[%c0_149, %256, %c0_150, %c0_151] : memref<1x8x2x32xbf16, #tpu.memory_space<vmem>>, vector<1x1x2x32xbf16>
    %258 = vector.shape_cast %257 : vector<1x1x2x32xbf16> to vector<2x32xbf16>
    %259 = vector.shape_cast %255 : vector<2x32xbf16> to vector<1x1x2x32xbf16>
    tpu.vector_store %arg7[%c0_149, %256, %c0_150, %c0_151], %259 {strides = array<i32>} : memref<1x8x2x32xbf16, #tpu.memory_space<vmem>>, vector<1x1x2x32xbf16>,
    %c4_i32 = arith.constant 4 : i32
    %c0_i32_152 = arith.constant 0 : i32
    %260 = arith.cmpi eq, %arg0, %c0_i32_152 : i32
    %c7_i32_153 = arith.constant 7 : i32
    %261 = arith.subi %c7_i32_153, %c4_i32 : i32
    %262 = arith.select %260, %c4_i32, %261 : i32
    %c0_i32_154 = arith.constant 0 : i32
    %263 = arith.cmpi eq, %arg0, %c0_i32_154 : i32
    %c0_i32_155 = arith.constant 0 : i32
    %264 = arith.subi %c0_i32_155, %arg1 : i32
    %265 = arith.select %263, %arg1, %264 : i32
    %c8_i32_156 = arith.constant 8 : i32
    %266 = arith.muli %265, %c8_i32_156 : i32
    %267 = arith.addi %266, %262 : i32
    %c8_i32_157 = arith.constant 8 : i32
    %268 = arith.cmpi slt, %267, %c8_i32_157 : i32
    %269 = arith.index_cast %262 : i32 to index
    %c0_158 = arith.constant 0 : index
    %c0_159 = arith.constant 0 : index
    %270 = vector.load %arg10[%269, %c0_158, %c0_159] : memref<8x2x128xf32, #tpu.memory_space<vmem>>, vector<1x2x128xf32>
    %271 = vector.shape_cast %270 : vector<1x2x128xf32> to vector<2x128xf32>
    %c0_160 = arith.constant 0 : index
    %c0_161 = arith.constant 0 : index
    %272 = vector.load %arg8[%c0_160, %c0_161] : memref<2x32xf32, #tpu.memory_space<vmem>>, vector<2x32xf32>
    %273 = arith.truncf %272 : vector<2x32xf32> to vector<2x32xbf16>
    %cst_162 = arith.constant dense<0.000000e+00> : vector<2x128xf32>
    %274 = tpu.matmul %273, %23, %cst_162 {dimension_numbers = #tpu.dot_dimension_numbers<[1], [0], [0], [1], [0, 0, 1, 1], [], []>} : vector<2x32xbf16>, vector<32x128xbf16>, vector<2x128xf32> -> vector<2x128xf32>
    %275 = arith.addf %271, %274 : vector<2x128xf32>
    %276 = vector.extract_strided_slice %275 {offsets = [0, 0], sizes = [2, 32], strides = [1, 1]} : vector<2x128xf32> to vector<2x32xf32>
    %cst_163 = arith.constant 5.000000e-01 : f32
    %277 = vector.broadcast %cst_163 : f32 to vector<2x32xf32>
    %278 = arith.mulf %277, %276 : vector<2x32xf32>
    %279 = math.tanh %278 : vector<2x32xf32>
    %cst_164 = arith.constant 1.000000e+00 : f32
    %280 = vector.broadcast %cst_164 : f32 to vector<2x32xf32>
    %281 = arith.addf %279, %280 : vector<2x32xf32>
    %cst_165 = arith.constant 5.000000e-01 : f32
    %282 = vector.broadcast %cst_165 : f32 to vector<2x32xf32>
    %283 = arith.mulf %282, %281 : vector<2x32xf32>
    %284 = vector.extract_strided_slice %275 {offsets = [0, 32], sizes = [2, 32], strides = [1, 1]} : vector<2x128xf32> to vector<2x32xf32>
    %cst_166 = arith.constant 5.000000e-01 : f32
    %285 = vector.broadcast %cst_166 : f32 to vector<2x32xf32>
    %286 = arith.mulf %285, %284 : vector<2x32xf32>
    %287 = math.tanh %286 : vector<2x32xf32>
    %cst_167 = arith.constant 1.000000e+00 : f32
    %288 = vector.broadcast %cst_167 : f32 to vector<2x32xf32>
    %289 = arith.addf %287, %288 : vector<2x32xf32>
    %cst_168 = arith.constant 5.000000e-01 : f32
    %290 = vector.broadcast %cst_168 : f32 to vector<2x32xf32>
    %291 = arith.mulf %290, %289 : vector<2x32xf32>
    %292 = vector.extract_strided_slice %275 {offsets = [0, 64], sizes = [2, 32], strides = [1, 1]} : vector<2x128xf32> to vector<2x32xf32>
    %293 = math.tanh %292 : vector<2x32xf32>
    %294 = vector.extract_strided_slice %275 {offsets = [0, 96], sizes = [2, 32], strides = [1, 1]} : vector<2x128xf32> to vector<2x32xf32>
    %cst_169 = arith.constant 5.000000e-01 : f32
    %295 = vector.broadcast %cst_169 : f32 to vector<2x32xf32>
    %296 = arith.mulf %295, %294 : vector<2x32xf32>
    %297 = math.tanh %296 : vector<2x32xf32>
    %cst_170 = arith.constant 1.000000e+00 : f32
    %298 = vector.broadcast %cst_170 : f32 to vector<2x32xf32>
    %299 = arith.addf %297, %298 : vector<2x32xf32>
    %cst_171 = arith.constant 5.000000e-01 : f32
    %300 = vector.broadcast %cst_171 : f32 to vector<2x32xf32>
    %301 = arith.mulf %300, %299 : vector<2x32xf32>
    %c0_172 = arith.constant 0 : index
    %c0_173 = arith.constant 0 : index
    %302 = vector.load %arg9[%c0_172, %c0_173] : memref<2x32xf32, #tpu.memory_space<vmem>>, vector<2x32xf32>
    %303 = arith.mulf %291, %302 : vector<2x32xf32>
    %304 = arith.mulf %283, %293 : vector<2x32xf32>
    %305 = arith.addf %303, %304 : vector<2x32xf32>
    %306 = math.tanh %305 : vector<2x32xf32>
    %307 = arith.mulf %301, %306 : vector<2x32xf32>
    %c0_174 = arith.constant 0 : index
    %c0_175 = arith.constant 0 : index
    %308 = vector.load %arg9[%c0_174, %c0_175] : memref<2x32xf32, #tpu.memory_space<vmem>>, vector<2x32xf32>
    %309 = arith.select %268, %305, %308 : vector<2x32xf32>
    %c0_176 = arith.constant 0 : index
    %c0_177 = arith.constant 0 : index
    %310 = vector.load %arg9[%c0_176, %c0_177] : memref<2x32xf32, #tpu.memory_space<vmem>>, vector<2x32xf32>
    tpu.vector_store %arg9[%c0_176, %c0_177], %309 {strides = array<i32>} : memref<2x32xf32, #tpu.memory_space<vmem>>, vector<2x32xf32>,
    %c0_178 = arith.constant 0 : index
    %c0_179 = arith.constant 0 : index
    %311 = vector.load %arg8[%c0_178, %c0_179] : memref<2x32xf32, #tpu.memory_space<vmem>>, vector<2x32xf32>
    %312 = arith.select %268, %307, %311 : vector<2x32xf32>
    %c0_180 = arith.constant 0 : index
    %c0_181 = arith.constant 0 : index
    %313 = vector.load %arg8[%c0_180, %c0_181] : memref<2x32xf32, #tpu.memory_space<vmem>>, vector<2x32xf32>
    tpu.vector_store %arg8[%c0_180, %c0_181], %312 {strides = array<i32>} : memref<2x32xf32, #tpu.memory_space<vmem>>, vector<2x32xf32>,
    %314 = arith.truncf %307 : vector<2x32xf32> to vector<2x32xbf16>
    %c0_182 = arith.constant 0 : index
    %315 = arith.index_cast %262 : i32 to index
    %c0_183 = arith.constant 0 : index
    %c0_184 = arith.constant 0 : index
    %316 = vector.load %arg7[%c0_182, %315, %c0_183, %c0_184] : memref<1x8x2x32xbf16, #tpu.memory_space<vmem>>, vector<1x1x2x32xbf16>
    %317 = vector.shape_cast %316 : vector<1x1x2x32xbf16> to vector<2x32xbf16>
    %318 = vector.shape_cast %314 : vector<2x32xbf16> to vector<1x1x2x32xbf16>
    tpu.vector_store %arg7[%c0_182, %315, %c0_183, %c0_184], %318 {strides = array<i32>} : memref<1x8x2x32xbf16, #tpu.memory_space<vmem>>, vector<1x1x2x32xbf16>,
    %c5_i32 = arith.constant 5 : i32
    %c0_i32_185 = arith.constant 0 : i32
    %319 = arith.cmpi eq, %arg0, %c0_i32_185 : i32
    %c7_i32_186 = arith.constant 7 : i32
    %320 = arith.subi %c7_i32_186, %c5_i32 : i32
    %321 = arith.select %319, %c5_i32, %320 : i32
    %c0_i32_187 = arith.constant 0 : i32
    %322 = arith.cmpi eq, %arg0, %c0_i32_187 : i32
    %c0_i32_188 = arith.constant 0 : i32
    %323 = arith.subi %c0_i32_188, %arg1 : i32
    %324 = arith.select %322, %arg1, %323 : i32
    %c8_i32_189 = arith.constant 8 : i32
    %325 = arith.muli %324, %c8_i32_189 : i32
    %326 = arith.addi %325, %321 : i32
    %c8_i32_190 = arith.constant 8 : i32
    %327 = arith.cmpi slt, %326, %c8_i32_190 : i32
    %328 = arith.index_cast %321 : i32 to index
    %c0_191 = arith.constant 0 : index
    %c0_192 = arith.constant 0 : index
    %329 = vector.load %arg10[%328, %c0_191, %c0_192] : memref<8x2x128xf32, #tpu.memory_space<vmem>>, vector<1x2x128xf32>
    %330 = vector.shape_cast %329 : vector<1x2x128xf32> to vector<2x128xf32>
    %c0_193 = arith.constant 0 : index
    %c0_194 = arith.constant 0 : index
    %331 = vector.load %arg8[%c0_193, %c0_194] : memref<2x32xf32, #tpu.memory_space<vmem>>, vector<2x32xf32>
    %332 = arith.truncf %331 : vector<2x32xf32> to vector<2x32xbf16>
    %cst_195 = arith.constant dense<0.000000e+00> : vector<2x128xf32>
    %333 = tpu.matmul %332, %23, %cst_195 {dimension_numbers = #tpu.dot_dimension_numbers<[1], [0], [0], [1], [0, 0, 1, 1], [], []>} : vector<2x32xbf16>, vector<32x128xbf16>, vector<2x128xf32> -> vector<2x128xf32>
    %334 = arith.addf %330, %333 : vector<2x128xf32>
    %335 = vector.extract_strided_slice %334 {offsets = [0, 0], sizes = [2, 32], strides = [1, 1]} : vector<2x128xf32> to vector<2x32xf32>
    %cst_196 = arith.constant 5.000000e-01 : f32
    %336 = vector.broadcast %cst_196 : f32 to vector<2x32xf32>
    %337 = arith.mulf %336, %335 : vector<2x32xf32>
    %338 = math.tanh %337 : vector<2x32xf32>
    %cst_197 = arith.constant 1.000000e+00 : f32
    %339 = vector.broadcast %cst_197 : f32 to vector<2x32xf32>
    %340 = arith.addf %338, %339 : vector<2x32xf32>
    %cst_198 = arith.constant 5.000000e-01 : f32
    %341 = vector.broadcast %cst_198 : f32 to vector<2x32xf32>
    %342 = arith.mulf %341, %340 : vector<2x32xf32>
    %343 = vector.extract_strided_slice %334 {offsets = [0, 32], sizes = [2, 32], strides = [1, 1]} : vector<2x128xf32> to vector<2x32xf32>
    %cst_199 = arith.constant 5.000000e-01 : f32
    %344 = vector.broadcast %cst_199 : f32 to vector<2x32xf32>
    %345 = arith.mulf %344, %343 : vector<2x32xf32>
    %346 = math.tanh %345 : vector<2x32xf32>
    %cst_200 = arith.constant 1.000000e+00 : f32
    %347 = vector.broadcast %cst_200 : f32 to vector<2x32xf32>
    %348 = arith.addf %346, %347 : vector<2x32xf32>
    %cst_201 = arith.constant 5.000000e-01 : f32
    %349 = vector.broadcast %cst_201 : f32 to vector<2x32xf32>
    %350 = arith.mulf %349, %348 : vector<2x32xf32>
    %351 = vector.extract_strided_slice %334 {offsets = [0, 64], sizes = [2, 32], strides = [1, 1]} : vector<2x128xf32> to vector<2x32xf32>
    %352 = math.tanh %351 : vector<2x32xf32>
    %353 = vector.extract_strided_slice %334 {offsets = [0, 96], sizes = [2, 32], strides = [1, 1]} : vector<2x128xf32> to vector<2x32xf32>
    %cst_202 = arith.constant 5.000000e-01 : f32
    %354 = vector.broadcast %cst_202 : f32 to vector<2x32xf32>
    %355 = arith.mulf %354, %353 : vector<2x32xf32>
    %356 = math.tanh %355 : vector<2x32xf32>
    %cst_203 = arith.constant 1.000000e+00 : f32
    %357 = vector.broadcast %cst_203 : f32 to vector<2x32xf32>
    %358 = arith.addf %356, %357 : vector<2x32xf32>
    %cst_204 = arith.constant 5.000000e-01 : f32
    %359 = vector.broadcast %cst_204 : f32 to vector<2x32xf32>
    %360 = arith.mulf %359, %358 : vector<2x32xf32>
    %c0_205 = arith.constant 0 : index
    %c0_206 = arith.constant 0 : index
    %361 = vector.load %arg9[%c0_205, %c0_206] : memref<2x32xf32, #tpu.memory_space<vmem>>, vector<2x32xf32>
    %362 = arith.mulf %350, %361 : vector<2x32xf32>
    %363 = arith.mulf %342, %352 : vector<2x32xf32>
    %364 = arith.addf %362, %363 : vector<2x32xf32>
    %365 = math.tanh %364 : vector<2x32xf32>
    %366 = arith.mulf %360, %365 : vector<2x32xf32>
    %c0_207 = arith.constant 0 : index
    %c0_208 = arith.constant 0 : index
    %367 = vector.load %arg9[%c0_207, %c0_208] : memref<2x32xf32, #tpu.memory_space<vmem>>, vector<2x32xf32>
    %368 = arith.select %327, %364, %367 : vector<2x32xf32>
    %c0_209 = arith.constant 0 : index
    %c0_210 = arith.constant 0 : index
    %369 = vector.load %arg9[%c0_209, %c0_210] : memref<2x32xf32, #tpu.memory_space<vmem>>, vector<2x32xf32>
    tpu.vector_store %arg9[%c0_209, %c0_210], %368 {strides = array<i32>} : memref<2x32xf32, #tpu.memory_space<vmem>>, vector<2x32xf32>,
    %c0_211 = arith.constant 0 : index
    %c0_212 = arith.constant 0 : index
    %370 = vector.load %arg8[%c0_211, %c0_212] : memref<2x32xf32, #tpu.memory_space<vmem>>, vector<2x32xf32>
    %371 = arith.select %327, %366, %370 : vector<2x32xf32>
    %c0_213 = arith.constant 0 : index
    %c0_214 = arith.constant 0 : index
    %372 = vector.load %arg8[%c0_213, %c0_214] : memref<2x32xf32, #tpu.memory_space<vmem>>, vector<2x32xf32>
    tpu.vector_store %arg8[%c0_213, %c0_214], %371 {strides = array<i32>} : memref<2x32xf32, #tpu.memory_space<vmem>>, vector<2x32xf32>,
    %373 = arith.truncf %366 : vector<2x32xf32> to vector<2x32xbf16>
    %c0_215 = arith.constant 0 : index
    %374 = arith.index_cast %321 : i32 to index
    %c0_216 = arith.constant 0 : index
    %c0_217 = arith.constant 0 : index
    %375 = vector.load %arg7[%c0_215, %374, %c0_216, %c0_217] : memref<1x8x2x32xbf16, #tpu.memory_space<vmem>>, vector<1x1x2x32xbf16>
    %376 = vector.shape_cast %375 : vector<1x1x2x32xbf16> to vector<2x32xbf16>
    %377 = vector.shape_cast %373 : vector<2x32xbf16> to vector<1x1x2x32xbf16>
    tpu.vector_store %arg7[%c0_215, %374, %c0_216, %c0_217], %377 {strides = array<i32>} : memref<1x8x2x32xbf16, #tpu.memory_space<vmem>>, vector<1x1x2x32xbf16>,
    %c6_i32 = arith.constant 6 : i32
    %c0_i32_218 = arith.constant 0 : i32
    %378 = arith.cmpi eq, %arg0, %c0_i32_218 : i32
    %c7_i32_219 = arith.constant 7 : i32
    %379 = arith.subi %c7_i32_219, %c6_i32 : i32
    %380 = arith.select %378, %c6_i32, %379 : i32
    %c0_i32_220 = arith.constant 0 : i32
    %381 = arith.cmpi eq, %arg0, %c0_i32_220 : i32
    %c0_i32_221 = arith.constant 0 : i32
    %382 = arith.subi %c0_i32_221, %arg1 : i32
    %383 = arith.select %381, %arg1, %382 : i32
    %c8_i32_222 = arith.constant 8 : i32
    %384 = arith.muli %383, %c8_i32_222 : i32
    %385 = arith.addi %384, %380 : i32
    %c8_i32_223 = arith.constant 8 : i32
    %386 = arith.cmpi slt, %385, %c8_i32_223 : i32
    %387 = arith.index_cast %380 : i32 to index
    %c0_224 = arith.constant 0 : index
    %c0_225 = arith.constant 0 : index
    %388 = vector.load %arg10[%387, %c0_224, %c0_225] : memref<8x2x128xf32, #tpu.memory_space<vmem>>, vector<1x2x128xf32>
    %389 = vector.shape_cast %388 : vector<1x2x128xf32> to vector<2x128xf32>
    %c0_226 = arith.constant 0 : index
    %c0_227 = arith.constant 0 : index
    %390 = vector.load %arg8[%c0_226, %c0_227] : memref<2x32xf32, #tpu.memory_space<vmem>>, vector<2x32xf32>
    %391 = arith.truncf %390 : vector<2x32xf32> to vector<2x32xbf16>
    %cst_228 = arith.constant dense<0.000000e+00> : vector<2x128xf32>
    %392 = tpu.matmul %391, %23, %cst_228 {dimension_numbers = #tpu.dot_dimension_numbers<[1], [0], [0], [1], [0, 0, 1, 1], [], []>} : vector<2x32xbf16>, vector<32x128xbf16>, vector<2x128xf32> -> vector<2x128xf32>
    %393 = arith.addf %389, %392 : vector<2x128xf32>
    %394 = vector.extract_strided_slice %393 {offsets = [0, 0], sizes = [2, 32], strides = [1, 1]} : vector<2x128xf32> to vector<2x32xf32>
    %cst_229 = arith.constant 5.000000e-01 : f32
    %395 = vector.broadcast %cst_229 : f32 to vector<2x32xf32>
    %396 = arith.mulf %395, %394 : vector<2x32xf32>
    %397 = math.tanh %396 : vector<2x32xf32>
    %cst_230 = arith.constant 1.000000e+00 : f32
    %398 = vector.broadcast %cst_230 : f32 to vector<2x32xf32>
    %399 = arith.addf %397, %398 : vector<2x32xf32>
    %cst_231 = arith.constant 5.000000e-01 : f32
    %400 = vector.broadcast %cst_231 : f32 to vector<2x32xf32>
    %401 = arith.mulf %400, %399 : vector<2x32xf32>
    %402 = vector.extract_strided_slice %393 {offsets = [0, 32], sizes = [2, 32], strides = [1, 1]} : vector<2x128xf32> to vector<2x32xf32>
    %cst_232 = arith.constant 5.000000e-01 : f32
    %403 = vector.broadcast %cst_232 : f32 to vector<2x32xf32>
    %404 = arith.mulf %403, %402 : vector<2x32xf32>
    %405 = math.tanh %404 : vector<2x32xf32>
    %cst_233 = arith.constant 1.000000e+00 : f32
    %406 = vector.broadcast %cst_233 : f32 to vector<2x32xf32>
    %407 = arith.addf %405, %406 : vector<2x32xf32>
    %cst_234 = arith.constant 5.000000e-01 : f32
    %408 = vector.broadcast %cst_234 : f32 to vector<2x32xf32>
    %409 = arith.mulf %408, %407 : vector<2x32xf32>
    %410 = vector.extract_strided_slice %393 {offsets = [0, 64], sizes = [2, 32], strides = [1, 1]} : vector<2x128xf32> to vector<2x32xf32>
    %411 = math.tanh %410 : vector<2x32xf32>
    %412 = vector.extract_strided_slice %393 {offsets = [0, 96], sizes = [2, 32], strides = [1, 1]} : vector<2x128xf32> to vector<2x32xf32>
    %cst_235 = arith.constant 5.000000e-01 : f32
    %413 = vector.broadcast %cst_235 : f32 to vector<2x32xf32>
    %414 = arith.mulf %413, %412 : vector<2x32xf32>
    %415 = math.tanh %414 : vector<2x32xf32>
    %cst_236 = arith.constant 1.000000e+00 : f32
    %416 = vector.broadcast %cst_236 : f32 to vector<2x32xf32>
    %417 = arith.addf %415, %416 : vector<2x32xf32>
    %cst_237 = arith.constant 5.000000e-01 : f32
    %418 = vector.broadcast %cst_237 : f32 to vector<2x32xf32>
    %419 = arith.mulf %418, %417 : vector<2x32xf32>
    %c0_238 = arith.constant 0 : index
    %c0_239 = arith.constant 0 : index
    %420 = vector.load %arg9[%c0_238, %c0_239] : memref<2x32xf32, #tpu.memory_space<vmem>>, vector<2x32xf32>
    %421 = arith.mulf %409, %420 : vector<2x32xf32>
    %422 = arith.mulf %401, %411 : vector<2x32xf32>
    %423 = arith.addf %421, %422 : vector<2x32xf32>
    %424 = math.tanh %423 : vector<2x32xf32>
    %425 = arith.mulf %419, %424 : vector<2x32xf32>
    %c0_240 = arith.constant 0 : index
    %c0_241 = arith.constant 0 : index
    %426 = vector.load %arg9[%c0_240, %c0_241] : memref<2x32xf32, #tpu.memory_space<vmem>>, vector<2x32xf32>
    %427 = arith.select %386, %423, %426 : vector<2x32xf32>
    %c0_242 = arith.constant 0 : index
    %c0_243 = arith.constant 0 : index
    %428 = vector.load %arg9[%c0_242, %c0_243] : memref<2x32xf32, #tpu.memory_space<vmem>>, vector<2x32xf32>
    tpu.vector_store %arg9[%c0_242, %c0_243], %427 {strides = array<i32>} : memref<2x32xf32, #tpu.memory_space<vmem>>, vector<2x32xf32>,
    %c0_244 = arith.constant 0 : index
    %c0_245 = arith.constant 0 : index
    %429 = vector.load %arg8[%c0_244, %c0_245] : memref<2x32xf32, #tpu.memory_space<vmem>>, vector<2x32xf32>
    %430 = arith.select %386, %425, %429 : vector<2x32xf32>
    %c0_246 = arith.constant 0 : index
    %c0_247 = arith.constant 0 : index
    %431 = vector.load %arg8[%c0_246, %c0_247] : memref<2x32xf32, #tpu.memory_space<vmem>>, vector<2x32xf32>
    tpu.vector_store %arg8[%c0_246, %c0_247], %430 {strides = array<i32>} : memref<2x32xf32, #tpu.memory_space<vmem>>, vector<2x32xf32>,
    %432 = arith.truncf %425 : vector<2x32xf32> to vector<2x32xbf16>
    %c0_248 = arith.constant 0 : index
    %433 = arith.index_cast %380 : i32 to index
    %c0_249 = arith.constant 0 : index
    %c0_250 = arith.constant 0 : index
    %434 = vector.load %arg7[%c0_248, %433, %c0_249, %c0_250] : memref<1x8x2x32xbf16, #tpu.memory_space<vmem>>, vector<1x1x2x32xbf16>
    %435 = vector.shape_cast %434 : vector<1x1x2x32xbf16> to vector<2x32xbf16>
    %436 = vector.shape_cast %432 : vector<2x32xbf16> to vector<1x1x2x32xbf16>
    tpu.vector_store %arg7[%c0_248, %433, %c0_249, %c0_250], %436 {strides = array<i32>} : memref<1x8x2x32xbf16, #tpu.memory_space<vmem>>, vector<1x1x2x32xbf16>,
    %c7_i32_251 = arith.constant 7 : i32
    %c0_i32_252 = arith.constant 0 : i32
    %437 = arith.cmpi eq, %arg0, %c0_i32_252 : i32
    %c7_i32_253 = arith.constant 7 : i32
    %438 = arith.subi %c7_i32_253, %c7_i32_251 : i32
    %439 = arith.select %437, %c7_i32_251, %438 : i32
    %c0_i32_254 = arith.constant 0 : i32
    %440 = arith.cmpi eq, %arg0, %c0_i32_254 : i32
    %c0_i32_255 = arith.constant 0 : i32
    %441 = arith.subi %c0_i32_255, %arg1 : i32
    %442 = arith.select %440, %arg1, %441 : i32
    %c8_i32_256 = arith.constant 8 : i32
    %443 = arith.muli %442, %c8_i32_256 : i32
    %444 = arith.addi %443, %439 : i32
    %c8_i32_257 = arith.constant 8 : i32
    %445 = arith.cmpi slt, %444, %c8_i32_257 : i32
    %446 = arith.index_cast %439 : i32 to index
    %c0_258 = arith.constant 0 : index
    %c0_259 = arith.constant 0 : index
    %447 = vector.load %arg10[%446, %c0_258, %c0_259] : memref<8x2x128xf32, #tpu.memory_space<vmem>>, vector<1x2x128xf32>
    %448 = vector.shape_cast %447 : vector<1x2x128xf32> to vector<2x128xf32>
    %c0_260 = arith.constant 0 : index
    %c0_261 = arith.constant 0 : index
    %449 = vector.load %arg8[%c0_260, %c0_261] : memref<2x32xf32, #tpu.memory_space<vmem>>, vector<2x32xf32>
    %450 = arith.truncf %449 : vector<2x32xf32> to vector<2x32xbf16>
    %cst_262 = arith.constant dense<0.000000e+00> : vector<2x128xf32>
    %451 = tpu.matmul %450, %23, %cst_262 {dimension_numbers = #tpu.dot_dimension_numbers<[1], [0], [0], [1], [0, 0, 1, 1], [], []>} : vector<2x32xbf16>, vector<32x128xbf16>, vector<2x128xf32> -> vector<2x128xf32>
    %452 = arith.addf %448, %451 : vector<2x128xf32>
    %453 = vector.extract_strided_slice %452 {offsets = [0, 0], sizes = [2, 32], strides = [1, 1]} : vector<2x128xf32> to vector<2x32xf32>
    %cst_263 = arith.constant 5.000000e-01 : f32
    %454 = vector.broadcast %cst_263 : f32 to vector<2x32xf32>
    %455 = arith.mulf %454, %453 : vector<2x32xf32>
    %456 = math.tanh %455 : vector<2x32xf32>
    %cst_264 = arith.constant 1.000000e+00 : f32
    %457 = vector.broadcast %cst_264 : f32 to vector<2x32xf32>
    %458 = arith.addf %456, %457 : vector<2x32xf32>
    %cst_265 = arith.constant 5.000000e-01 : f32
    %459 = vector.broadcast %cst_265 : f32 to vector<2x32xf32>
    %460 = arith.mulf %459, %458 : vector<2x32xf32>
    %461 = vector.extract_strided_slice %452 {offsets = [0, 32], sizes = [2, 32], strides = [1, 1]} : vector<2x128xf32> to vector<2x32xf32>
    %cst_266 = arith.constant 5.000000e-01 : f32
    %462 = vector.broadcast %cst_266 : f32 to vector<2x32xf32>
    %463 = arith.mulf %462, %461 : vector<2x32xf32>
    %464 = math.tanh %463 : vector<2x32xf32>
    %cst_267 = arith.constant 1.000000e+00 : f32
    %465 = vector.broadcast %cst_267 : f32 to vector<2x32xf32>
    %466 = arith.addf %464, %465 : vector<2x32xf32>
    %cst_268 = arith.constant 5.000000e-01 : f32
    %467 = vector.broadcast %cst_268 : f32 to vector<2x32xf32>
    %468 = arith.mulf %467, %466 : vector<2x32xf32>
    %469 = vector.extract_strided_slice %452 {offsets = [0, 64], sizes = [2, 32], strides = [1, 1]} : vector<2x128xf32> to vector<2x32xf32>
    %470 = math.tanh %469 : vector<2x32xf32>
    %471 = vector.extract_strided_slice %452 {offsets = [0, 96], sizes = [2, 32], strides = [1, 1]} : vector<2x128xf32> to vector<2x32xf32>
    %cst_269 = arith.constant 5.000000e-01 : f32
    %472 = vector.broadcast %cst_269 : f32 to vector<2x32xf32>
    %473 = arith.mulf %472, %471 : vector<2x32xf32>
    %474 = math.tanh %473 : vector<2x32xf32>
    %cst_270 = arith.constant 1.000000e+00 : f32
    %475 = vector.broadcast %cst_270 : f32 to vector<2x32xf32>
    %476 = arith.addf %474, %475 : vector<2x32xf32>
    %cst_271 = arith.constant 5.000000e-01 : f32
    %477 = vector.broadcast %cst_271 : f32 to vector<2x32xf32>
    %478 = arith.mulf %477, %476 : vector<2x32xf32>
    %c0_272 = arith.constant 0 : index
    %c0_273 = arith.constant 0 : index
    %479 = vector.load %arg9[%c0_272, %c0_273] : memref<2x32xf32, #tpu.memory_space<vmem>>, vector<2x32xf32>
    %480 = arith.mulf %468, %479 : vector<2x32xf32>
    %481 = arith.mulf %460, %470 : vector<2x32xf32>
    %482 = arith.addf %480, %481 : vector<2x32xf32>
    %483 = math.tanh %482 : vector<2x32xf32>
    %484 = arith.mulf %478, %483 : vector<2x32xf32>
    %c0_274 = arith.constant 0 : index
    %c0_275 = arith.constant 0 : index
    %485 = vector.load %arg9[%c0_274, %c0_275] : memref<2x32xf32, #tpu.memory_space<vmem>>, vector<2x32xf32>
    %486 = arith.select %445, %482, %485 : vector<2x32xf32>
    %c0_276 = arith.constant 0 : index
    %c0_277 = arith.constant 0 : index
    %487 = vector.load %arg9[%c0_276, %c0_277] : memref<2x32xf32, #tpu.memory_space<vmem>>, vector<2x32xf32>
    tpu.vector_store %arg9[%c0_276, %c0_277], %486 {strides = array<i32>} : memref<2x32xf32, #tpu.memory_space<vmem>>, vector<2x32xf32>,
    %c0_278 = arith.constant 0 : index
    %c0_279 = arith.constant 0 : index
    %488 = vector.load %arg8[%c0_278, %c0_279] : memref<2x32xf32, #tpu.memory_space<vmem>>, vector<2x32xf32>
    %489 = arith.select %445, %484, %488 : vector<2x32xf32>
    %c0_280 = arith.constant 0 : index
    %c0_281 = arith.constant 0 : index
    %490 = vector.load %arg8[%c0_280, %c0_281] : memref<2x32xf32, #tpu.memory_space<vmem>>, vector<2x32xf32>
    tpu.vector_store %arg8[%c0_280, %c0_281], %489 {strides = array<i32>} : memref<2x32xf32, #tpu.memory_space<vmem>>, vector<2x32xf32>,
    %491 = arith.truncf %484 : vector<2x32xf32> to vector<2x32xbf16>
    %c0_282 = arith.constant 0 : index
    %492 = arith.index_cast %439 : i32 to index
    %c0_283 = arith.constant 0 : index
    %c0_284 = arith.constant 0 : index
    %493 = vector.load %arg7[%c0_282, %492, %c0_283, %c0_284] : memref<1x8x2x32xbf16, #tpu.memory_space<vmem>>, vector<1x1x2x32xbf16>
    %494 = vector.shape_cast %493 : vector<1x1x2x32xbf16> to vector<2x32xbf16>
    %495 = vector.shape_cast %491 : vector<2x32xbf16> to vector<1x1x2x32xbf16>
    tpu.vector_store %arg7[%c0_282, %492, %c0_283, %c0_284], %495 {strides = array<i32>} : memref<1x8x2x32xbf16, #tpu.memory_space<vmem>>, vector<1x1x2x32xbf16>,
    %c8_i32_285 = arith.constant 8 : i32
    return
  }
  func.func @transform_0(%arg0: i32, %arg1: i32) -> (i32, i32, i32, i32) {
    %c0_i32 = arith.constant 0 : i32
    %0 = arith.muli %arg0, %c0_i32 : i32
    %c2_i32 = arith.constant 2 : i32
    %1 = arith.muli %c2_i32, %arg0 : i32
    %c1_i32 = arith.constant 1 : i32
    %2 = arith.subi %c1_i32, %1 : i32
    %3 = arith.muli %2, %arg1 : i32
    %4 = arith.addi %0, %3 : i32
    %c0_i32_0 = arith.constant 0 : i32
    %c0_i32_1 = arith.constant 0 : i32
    %c0_i32_2 = arith.constant 0 : i32
    %c0_i32_3 = arith.constant 0 : i32
    return %c0_i32_0, %4, %c0_i32_1, %c0_i32_2 : i32, i32, i32, i32
  }
  func.func @transform_1(%arg0: i32, %arg1: i32) -> (i32, i32, i32, i32) {
    %c0_i32 = arith.constant 0 : i32
    %0 = arith.muli %arg0, %c0_i32 : i32
    %c2_i32 = arith.constant 2 : i32
    %1 = arith.muli %c2_i32, %arg0 : i32
    %c1_i32 = arith.constant 1 : i32
    %2 = arith.subi %c1_i32, %1 : i32
    %3 = arith.muli %2, %arg1 : i32
    %4 = arith.addi %0, %3 : i32
    %c1_i32_0 = arith.constant 1 : i32
    %c0_i32_1 = arith.constant 0 : i32
    %c0_i32_2 = arith.constant 0 : i32
    %c0_i32_3 = arith.constant 0 : i32
    return %c1_i32_0, %4, %c0_i32_1, %c0_i32_2 : i32, i32, i32, i32
  }
  func.func @transform_2(%arg0: i32, %arg1: i32) -> (i32, i32, i32) {
    %c0_i32 = arith.constant 0 : i32
    %c0_i32_0 = arith.constant 0 : i32
    %c0_i32_1 = arith.constant 0 : i32
    return %arg0, %c0_i32, %c0_i32_0 : i32, i32, i32
  }
  func.func @transform_3(%arg0: i32, %arg1: i32) -> (i32, i32, i32) {
    %c0_i32 = arith.constant 0 : i32
    %c0_i32_0 = arith.constant 0 : i32
    %c0_i32_1 = arith.constant 0 : i32
    return %arg0, %c0_i32, %c0_i32_0 : i32, i32, i32
  }
  func.func @transform_4(%arg0: i32, %arg1: i32) -> (i32, i32, i32) {
    %c0_i32 = arith.constant 0 : i32
    %c0_i32_0 = arith.constant 0 : i32
    %c0_i32_1 = arith.constant 0 : i32
    return %arg0, %c0_i32, %c0_i32_0 : i32, i32, i32
  }
  func.func @transform_5(%arg0: i32, %arg1: i32) -> (i32, i32, i32, i32) {
    %c0_i32 = arith.constant 0 : i32
    %0 = arith.muli %arg0, %c0_i32 : i32
    %c2_i32 = arith.constant 2 : i32
    %1 = arith.muli %c2_i32, %arg0 : i32
    %c1_i32 = arith.constant 1 : i32
    %2 = arith.subi %c1_i32, %1 : i32
    %3 = arith.muli %2, %arg1 : i32
    %4 = arith.addi %0, %3 : i32
    %c0_i32_0 = arith.constant 0 : i32
    %c0_i32_1 = arith.constant 0 : i32
    %c0_i32_2 = arith.constant 0 : i32
    return %arg0, %4, %c0_i32_0, %c0_i32_1 : i32, i32, i32, i32
  }
}

</mosaic_0001>

<bundles_post_ra>
// kernel: ctc_transcription_forward.5
= control target key start
LH: loop header
LB: loop body
LE: loop exit
PB: predicated region body
PF: predicated region fallthrough
CT: control target
= control target key end

     0   :  { %v64_v1 = vlaneseq  ;;  %v457_v2 = vmov 0.0   ;;  %vm458_vm0 = vmmov 0   ;;  %v459_v15 = vmov 1966171168   ;;  %s573_s0 = inlined_call_operand.vmem [shape: bf16[2,8,2,32], index: 0, kind: input, shape index: {}, may-alias: {0,1}]   ;;  %s574_s1 = inlined_call_operand.vmem [shape: bf16[2,8,2,32], index: 1, kind: input, shape index: {}, may-alias: {0,1}]   ;;  %s575_s2 = inlined_call_operand.vmem [shape: bf16[32,128], index: 2, kind: input, shape index: {}]   ;;  %s576_s3 = inlined_call_operand.vmem [shape: bf16[32,128], index: 3, kind: input, shape index: {}]   ;;  %s577_s4 = inlined_call_operand.vmem [shape: f32[1,128], index: 4, kind: input, shape index: {}]   ;;  %s578_s5 = inlined_call_operand.hbm [shape: f32[8,2,128], index: 5, kind: output, shape index: {}]  }
   0x1   :  { %v421_v0 = vld [vmem:[%s576_s3] sm:$0xff]   ;;  %398 = vmatprep.subr.bf16.mxu0 %v457_v2  ;;  %406 = vmatprep.subr.bf16.mxu1 %v457_v2  ;;  %v423_v4 = vld [vmem:[%s576_s3 + $0x8] sm:$0xff]   ;;  %v62_v16 = vunpack.c.l.s4 %v459_v15 }
   0x2   :  { %v422_v3 = vld [vmem:[%s575_s2] sm:$0xff]   ;;  %399 = vmatpush3.bf16.msra.mxu0 %v421_v0  ;;  %402 = vmatprep.mubr.msk.bf16.mxu0 %vm458_vm0, %v457_v2  ;;  %v424_v5 = vld [vmem:[%s575_s2 + $0x8] sm:$0xff]   ;;  %v506_v6 = vshrl.u32 %v64_v1, 7 }
   0x3   :  { %407 = vmatpush3.bf16.msra.mxu1 %v422_v3  ;;  %400 = vmatprep.subr.bf16.mxu0 %v457_v2  ;;  %v373_v7 = vld [vmem:[%s574_s1 + $0x8] sm:$0x1]  ;;  %v374_v8 = vld [vmem:[%s574_s1 + $0x9] sm:$0x1]  ;;  %v375_v9 = vld [vmem:[%s574_s1 + $0xa] sm:$0x1]  ;;  %v63_v27 = vunpack.c.0.s8 %v62_v16 }
   0x4   :  { %408 = vmatprep.subr.bf16.mxu1 %v457_v2  ;;  %410 = vmatprep.mubr.msk.bf16.mxu1 %vm458_vm0, %v457_v2  ;;  %v376_v10 = vld [vmem:[%s574_s1 + $0xb] sm:$0x1]  ;;  %v377_v11 = vld [vmem:[%s574_s1 + $0xc] sm:$0x1]  ;;  %v378_v12 = vld [vmem:[%s574_s1 + $0xd] sm:$0x1]  ;;  %v57_v20 = vcombine.low %v373_v7, %v374_v8 }
   0x5   :  { %v379_v13 = vld [vmem:[%s574_s1 + $0xe] sm:$0x1]  ;;  %v380_v14 = vld [vmem:[%s574_s1 + $0xf] sm:$0x1]  ;;  %v25_v17 = vld [vmem:[%s573_s0] sm:$0x1]  ;;  %v58_v24 = vcombine.low %v375_v9, %v376_v10  ;;  %v59_v25 = vcombine.low %v377_v11, %v378_v12 }
   0x6   :  { %401 = vmatpush3.bf16.msra.mxu0 %v423_v4  ;;  %v26_v18 = vld [vmem:[%s573_s0 + $0x1] sm:$0x1]  ;;  %v27_v19 = vld [vmem:[%s573_s0 + $0x2] sm:$0x1]  ;;  %v28_v21 = vld [vmem:[%s573_s0 + $0x3] sm:$0x1]  ;;  %v60_v26 = vcombine.low %v379_v13, %v380_v14 }
   0x7   :  { %409 = vmatpush3.bf16.msra.mxu1 %v424_v5  ;;  %v29_v22 = vld [vmem:[%s573_s0 + $0x4] sm:$0x1]  ;;  %v30_v23 = vld [vmem:[%s573_s0 + $0x5] sm:$0x1]  ;;  %v31_v28 = vld [vmem:[%s573_s0 + $0x6] sm:$0x1] }
   0x8   :  { %v32_v29 = vld [vmem:[%s573_s0 + $0x7] sm:$0x1] }
   0x9   :  { %10 = vsyncpa [#allocation3], 0  ;;  %v171_v30 = vcombine.low %v25_v17, %v26_v18  ;;  %v172_v31 = vcombine.low %v27_v19, %v28_v21  ;;  %v173_v32 = vcombine.low %v29_v22, %v30_v23  ;;  %v174_v33 = vcombine.low %v31_v28, %v32_v29  ;;  %v387_v56 = vld [vmem:[%s577_s4] ss:$0 sm:$0xff]  ;;  %s461_s4 = smov [#allocation2]  }
   0xa   :  { %v66_v34 = vsub.s32 %v63_v27, %v506_v6  ;;  %vm118_vm1 = vcmask 261120   ;;  %v460_v12 = vmov 1983009808   ;;  %s362_s30 = sshll.u32 %s461_s4, 4  ;;  %s363_s30 = int_to_ptr.vmem [resolvable:$true] %s362_s30 }
   0xb   :  { %v309_v13 = vunpack.c.l.s4 %v460_v12  ;;  %s433_s6 = scalar_lea.vmem %s363_s30, 256  ;;  %p438_p1 = scmp.lt.s32.totalorder %s363_s30, %s363_s30 }
   0xc   :  { %v67_v35 = vrot.slane %v57_v20, %v66_v34  ;;  %v74_v36 = vrot.slane %v58_v24, %v66_v34  ;;  %v81_v37 = vrot.slane %v59_v25, %v66_v34  ;;  %v88_v38 = vrot.slane %v60_v26, %v66_v34  ;;  %p434_p0 = scmp.ne.s32.totalorder %s363_s30, %s433_s6  ;;  %p439_p2 = scmp.lt.s32.totalorder %s433_s6, %s433_s6 }
   0xd   :  { %v181_v39 = vrot.slane %v171_v30, %v66_v34  ;;  %v188_v40 = vrot.slane %v172_v31, %v66_v34  ;;  %v195_v41 = vrot.slane %v173_v32, %v66_v34  ;;  %v202_v42 = vrot.slane %v174_v33, %v66_v34 }
   0xe   :  { %v89_v43 = vcombine.low %v67_v35, %v74_v36  ;;  %v90_v44 = vcombine.low %v81_v37, %v88_v38  ;;  %v310_v15 = vunpack.c.0.s8 %v309_v13  ;;  %p440_p3 = por %p439_p2, %p438_p1 }
   0xf   :  { %v203_v45 = vcombine.low %v181_v39, %v188_v40  ;;  %v204_v46 = vcombine.low %v195_v41, %v202_v42 }
  0x10   :  { %v97_v47 = vrot.slane %v89_v43, %v66_v34  ;;  %v104_v48 = vrot.slane %v90_v44, %v66_v34  ;;  %v313_v17 = vsub.s32 %v310_v15, %v506_v6  ;;  %p441_p4 = pnand %p440_p3, %p434_p0 }
  0x11   :  { %v211_v49 = vrot.slane %v203_v45, %v66_v34  ;;  %v218_v50 = vrot.slane %v204_v46, %v66_v34 }
  0x12   :  { %v105_v51 = vcombine.low %v97_v47, %v104_v48 }
  0x13   :  { %v219_v52 = vcombine.low %v211_v49, %v218_v50 }
  0x14   :  { %403 = vmatmul.mubr.msk.bf16.vlgmr.msra.gmra.mrb[0].mxu0 %vm118_vm1, %v105_v51 }
  0x15   :  { %411 = vmatmul.mubr.msk.bf16.vlgmr.msra.gmra.mrb[0].mxu1 %vm118_vm1, %v219_v52 }
  0xe7   :  { %v156_v53 = vpop.f32.mrb[0].mxu0 }
  0xe8   :  { %v269_v54 = vpop.f32.mrb[0].mxu1  ;;  %v404_v55 = vpop.f32.mrb[1].mxu0 }
  0xe9   :  { %v270_v57 = vadd.f32 %v269_v54, %v156_v53  ;;  %v412_v58 = vpop.f32.mrb[1].mxu1  ;;  %v159_v59 = vpop.f32.mrb[2].mxu0 }
  0xea   :  { %v272_v60 = vpop.f32.mrb[2].mxu1  ;;  %v405_v61 = vpop.f32.mrb[3].mxu0 }
  0xeb   :  { %v273_v62 = vadd.f32 %v272_v60, %v159_v59  ;;  %v413_v63 = vpop.f32.mrb[3].mxu1  ;;  %v283_v0 = vadd.f32 %v387_v56, %v270_v57 }
  0xed   :  { %285 = vmax.xlane.f32.xlu0 %v283_v0  ;;  %v284_v1 = vadd.f32 %v387_v56, %v273_v62 }
  0xf1   :  { %287 = vmax.xlane.f32.xlu0 %v284_v1 }
 0x17a   :  { %v286_v2 = vpop.xlane.xlu0 %285 }
 0x17b   :  { %v289_v3 = vsub.f32 %v283_v0, %v286_v2 }
 0x17d   :  { %v291_v4 = vmul.f32 1.442695, %v289_v3 }
 0x17e   :  { %v288_v5 = vpop.xlane.xlu0 %287 }
 0x17f   :  { %v290_v7 = vsub.f32 %v284_v1, %v288_v5  ;;  %425 = vpow2.f32 %v291_v4 }
 0x181   :  { %v293_v8 = vmul.f32 1.442695, %v290_v7 }
 0x183   :  { %427 = vpow2.f32 %v293_v8 }
 0x189   :  { %v426_v9 = vpop.eup %425 }
 0x18a   :  { %295 = vadd.xlane.f32.xlu1 %v426_v9 }
 0x18d   :  { %v428_v10 = vpop.eup %427 }
 0x18e   :  { %297 = vadd.xlane.f32.xlu1 %v428_v10 }
 0x217   :  { %v296_v11 = vpop.xlane.xlu1 %295 }
 0x218   :  { %429 = vlog2.f32 %v296_v11 }
 0x21b   :  { %v298_v14 = vpop.xlane.xlu1 %297 }
 0x21c   :  { %431 = vlog2.f32 %v298_v14 }
 0x222   :  { %v430_v16 = vpop.eup %429 }
 0x223   :  { %v300_v18 = vmul.f32 0.6931472, %v430_v16 }
 0x225   :  { %v303_v19 = vsub.f32 %v289_v3, %v300_v18 }
 0x226   :  { %v432_v20 = vpop.eup %431 }
 0x227   :  { %v307_v21 = vcombine.high %v303_v19, %v303_v19  ;;  %v314_v22 = vrot.slane %v303_v19, %v313_v17  ;;  %388 = vst.sshfl [vmem:[#allocation2] sm:$0x3 pattern:$0x76325410] %v303_v19  ;;  %v302_v23 = vmul.f32 0.6931472, %v432_v20 }
 0x229   :  { %v321_v24 = vrot.slane %v307_v21, %v313_v17  ;;  %v322_v25 = vcombine.high %v314_v22, %v314_v22  ;;  %389 = vst.sshfl [vmem:[#allocation2 + $0x4] sm:$0x3 pattern:$0x76325410] %v307_v21  ;;  %v304_v26 = vsub.f32 %v290_v7, %v302_v23 }
 0x22b   :  { %v323_v27 = vcombine.high %v321_v24, %v321_v24  ;;  %350 = vst [vmem:[#allocation2 + $0x2] sm:$0x3] %v322_v25  ;;  %v324_v28 = vcombine.high %v304_v26, %v304_v26  ;;  %v331_v29 = vrot.slane %v304_v26, %v313_v17  ;;  %390 = vst.sshfl [vmem:[#allocation2 + $0x8] sm:$0x3 pattern:$0x76325410] %v304_v26 }
 0x22d   :  { %352 = vst [vmem:[#allocation2 + $0x6] sm:$0x3] %v323_v27  ;;  %v338_v6 = vrot.slane %v324_v28, %v313_v17  ;;  %v339_v30 = vcombine.high %v331_v29, %v331_v29  ;;  %391 = vst.sshfl [vmem:[#allocation2 + $0xc] sm:$0x3 pattern:$0x76325410] %v324_v28 }
 0x22f   :  { %v340_v31 = vcombine.high %v338_v6, %v338_v6  ;;  %354 = vst [vmem:[#allocation2 + $0xa] sm:$0x3] %v339_v30 }
 0x231   :  { %356 = vst [vmem:[#allocation2 + $0xe] sm:$0x3] %v340_v31 }
 0x232   :  { %444 = shalt.err (!%p441_p4)
}
 0x233   :  { %s445_s8 = scalar_lea.hbm %s578_s5, 256 }
 0x234   :  { %p446_p5 = scmp.ne.s32.totalorder %s578_s5, %s445_s8  ;;  %p449_p6 = scmp.lt.u32.totalorder %s445_s8, %s578_s5 }
 0x236   :  { %p451_p7 = pnand %p449_p6, %p446_p5 }
 0x238   :  { %454 = shalt.err (!%p451_p7)
}
 0x239   :  { %s462_s13 = smov 32   ;;  %s463_s14 = smov 2  }
 0x23a   :  { %368 = dma.vmem_to_hbm [thread:$0]  %s363_s30, 256, %s578_s5, [#allocation3], %s462_s13, %s462_s13, %s463_s14  }
 0x23b   :  { %455 = dma.done.wait [#allocation3], 256  }
 0x23c   :  { %456 = vsyncadd [#allocation3], 4294967040 }
 0x23d   :  { %372 = vsyncpa [#allocation3], 1 }

// kernel: ctc_transcription_forward.3
= control target key start
LH: loop header
LB: loop body
LE: loop exit
PB: predicated region body
PF: predicated region fallthrough
CT: control target
= control target key end

     0   :  { %s1894_s15 = smov 0   ;;  %s1896_s16 = smov 0   ;;  %s2238_s0 = inlined_call_operand.vmem [shape: bf16[1,8,2,16], index: 0, kind: input, shape index: {}]   ;;  %s2239_s1 = inlined_call_operand.vmem [shape: bf16[2,16,128], index: 1, kind: input, shape index: {}]   ;;  %s2240_s2 = inlined_call_operand.vmem [shape: f32[2,1,128], index: 2, kind: input, shape index: {}]   ;;  %s2241_s3 = inlined_call_operand.vmem [shape: bf16[2,32,128], index: 3, kind: input, shape index: {}]   ;;  %s2242_s4 = inlined_call_operand.vmem [shape: bf16[2,8,2,32], index: 4, kind: output, shape index: {}]  }
   0x1   :  { %s1898_s17 = smov 0  }
   0x2 LB: > { %s26_s18 = sadd.s32 1, %s1856_s16  ;;  %p1623_p0 = scmp.ge.s32.totalorder %s1860_s17, 1  ;;  %s1860_s17 = sphi %s1898_s17, %s14_s17   ;;  %s1856_s16 = sphi %s1896_s16, %s2244_s16   ;;  %s1852_s15 = sphi %s1894_s15, %s2243_s15  }
   0x3   : > { %p28_p1 = scmp.ge.s32.totalorder %s26_s18, 2  ;;  %p222_p2 = scmp.lt.s32.totalorder %s1860_s17, 3 }
   0x5   : > { %s2246_s18 = smov (%p28_p1, %s26_s18), 0  ;;  %p223_p3 = pnand %p1623_p0, %p222_p2 }
   0x6   : > { %p280_p4 = scmp.lt.s32.totalorder (!%p223_p3), %s1852_s15, 1  ;;  %v316_v0 = vld [vmem:[%s2238_s0] sm:$0x1] (!%p223_p3)  ;;  %v348_v1 = vlaneseq (!%p223_p3)  ;;  %v1862_v2 = vmov (!%p223_p3), 0.0   ;;  %vm1863_vm0 = vmmov (!%p223_p3), 0   ;;  %vm313_vm1 = vcmask (!%p223_p3), 254976  }
   0x7   : > { %226 = sbr.rel (%p223_p3) target bundleno = 5735 (0x1667), region = 36  ;;  %1686 = vmatprep.subr.bf16.mxu0 (!%p223_p3), %v1862_v2  ;;  %1688 = vmatprep.mubr.msk.bf16.mxu0 (!%p223_p3), %vm1863_vm0, %v1862_v2  ;;  %v317_v3 = vld [vmem:[%s2238_s0 + $0x1] sm:$0x1] (!%p223_p3)  ;;  %v318_v4 = vld [vmem:[%s2238_s0 + $0x2] sm:$0x1] (!%p223_p3)  ;;  %vm521_vm2 = vcmask (!%p223_p3), 261120  }
   0x8   : > { %v319_v5 = vld [vmem:[%s2238_s0 + $0x3] sm:$0x1] (!%p223_p3)  ;;  %v320_v6 = vld [vmem:[%s2238_s0 + $0x4] sm:$0x1] (!%p223_p3)  ;;  %v321_v7 = vld [vmem:[%s2238_s0 + $0x5] sm:$0x1] (!%p223_p3)  ;;  %1692 = vmatprep.subr.bf16.mxu1 (!%p223_p3), %v1862_v2  ;;  %1696 = vmatprep.mubr.msk.bf16.mxu1 (!%p223_p3), %vm1863_vm0, %v1862_v2  ;;  %v341_v13 = vcombine.low (!%p223_p3), %v316_v0, %v317_v3 }
   0x9   : > { %v322_v8 = vld [vmem:[%s2238_s0 + $0x6] sm:$0x1] (!%p223_p3)  ;;  %v323_v9 = vld [vmem:[%s2238_s0 + $0x7] sm:$0x1] (!%p223_p3)  ;;  %v1864_v10 = vmov (!%p223_p3), 1966171168   ;;  %v342_v15 = vcombine.low (!%p223_p3), %v318_v4, %v319_v5  ;;  %v343_v16 = vcombine.low (!%p223_p3), %v320_v6, %v321_v7 }
   0xa   : > { %v346_v11 = vunpack.c.l.s4 (!%p223_p3), %v1864_v10  ;;  %v349_v12 = vshrl.u32 (!%p223_p3), %v348_v1, 7  ;;  %314 = vst.msk [vmem:[#allocation2] sm:$0x3] (!%p223_p3), %vm313_vm1, %v1862_v2  ;;  %315 = vst.msk [vmem:[#allocation3] sm:$0x3] (!%p223_p3), %vm313_vm1, %v1862_v2  ;;  %v344_v17 = vcombine.low (!%p223_p3), %v322_v8, %v323_v9  ;;  %vm396_vm3 = vcmask (!%p223_p3), 130048  }
   0xb   : > { %v1865_v33 = vmov (!%p223_p3), 1983009808   ;;  %p497_p5 = scmp.eq.s32.totalorder (!%p223_p3), %s1852_s15, 0  ;;  %s1866_s29 = smov (!%p223_p3), 64   ;;  %vm634_vm4 = vcmask (!%p223_p3), 253952  }
   0xc   : > { %v347_v18 = vunpack.c.0.s8 (!%p223_p3), %v346_v11  ;;  %v445_v34 = vunpack.c.l.s4 (!%p223_p3), %v1865_v33  ;;  %s1867_s30 = smov (!%p223_p3), 32   ;;  %s1868_s5 = smov (!%p223_p3), 96  }
   0xe   : > { %s1931_s27 = scalar_select %p280_p4, %s1852_s15, 1  ;;  %v1964_v20 = vsub.s32 %v347_v18, %v349_v12  ;;  %v446_v35 = vunpack.c.0.s8 %v445_v34 }
   0xf   : > { %s1999_s25 = scalar_select %p497_p5, 0, 7 }
  0x10   : > { %s1658_s10 = sshll.u32 %s1931_s27, 3  ;;  %s1659_s11 = sshll.u32 %s1931_s27, 4  ;;  %v351_v22 = vrot.slane %v341_v13, %v1964_v20  ;;  %v358_v23 = vrot.slane %v342_v15, %v1964_v20  ;;  %v365_v24 = vrot.slane %v343_v16, %v1964_v20  ;;  %v372_v25 = vrot.slane %v344_v17, %v1964_v20 }
  0x11   : > { %s284_s14 = scalar_lea.vmem %s2239_s1, %s1658_s10  ;;  %s292_s21 = scalar_lea.vmem %s2241_s3, %s1659_s11  ;;  %v507_v28 = vld [vmem:[#allocation2] sm:$0x3]  ;;  %v449_v37 = vsub.s32 %v446_v35, %v349_v12  ;;  %v571_v61 = vld [vmem:[#allocation3] sm:$0x3] }
  0x12   : > { %v1787_v14 = vld [vmem:[%s284_s14] sm:$0xff]   ;;  %v1967_v21 = vld [vmem:[%s292_s21 + $0x8] sm:$0xff]   ;;  %v373_v26 = vcombine.low %v351_v22, %v358_v23  ;;  %v374_v27 = vcombine.low %v365_v24, %v372_v25  ;;  %v508_v29 = vpack.c.bf16 %v507_v28, %v507_v28  ;;  %s287_s24 = scalar_lea.vmem %s2240_s2, %s1931_s27  ;;  %s1638_s26 = sshll.u32 %s1999_s25, 1 }
  0x13   : > { %1687 = vmatpush3.bf16.msra.mxu0 %v1787_v14  ;;  %v1962_v19 = vld [vmem:[%s292_s21] sm:$0xff]   ;;  %s505_s28 = scalar_lea.vmem [#allocation4], %s1638_s26 }
  0x14   : > { %1700 = vmatprep.subr.bf16.mxu0 %v1862_v2  ;;  %1693 = vmatpush3.bf16.msra.mxu1 %v1962_v19  ;;  %v381_v30 = vrot.slane %v373_v26, %v1964_v20  ;;  %v388_v31 = vrot.slane %v374_v27, %v1964_v20  ;;  %v1631_v36 = vld [vmem:[%s287_s24] ss:$0 sm:$0xff]  ;;  %s2024_s6 = scalar_select %p497_p5, 1, 6 }
  0x15   : > { %1694 = vmatprep.subr.bf16.mxu1 %v1862_v2  ;;  %v603_v62 = vld [vmem:[#allocation2] sm:$0x3]  ;;  %s2048_s9 = scalar_select %p497_p5, 2, 5 }
  0x16   : > { %v389_v32 = vcombine.low %v381_v30, %v388_v31  ;;  %s1642_s7 = sshll.u32 %s2024_s6, 1 }
  0x17   : > { %s640_s8 = scalar_lea.vmem [#allocation4], %s1642_s7  ;;  %s1644_s11 = sshll.u32 %s2048_s9, 1 }
  0x18   : > { %1695 = vmatpush3.bf16.msra.mxu1 %v1967_v21  ;;  %1689 = vmatmul.mubr.msk.bf16.vlgmr.msra.gmra.mrb[0].mxu0 %vm396_vm3, %v389_v32  ;;  %s760_s12 = scalar_lea.vmem [#allocation4], %s1644_s11 }
  0x19   : > { %1708 = vmatprep.subr.bf16.mxu1 %v1862_v2  ;;  %1701 = vmatpush3.bf16.msra.mxu0 %v1962_v19  ;;  %s2072_s13 = scalar_select %p497_p5, 3, 4 }
  0x1a   : > { %1704 = vmatprep.mubr.msk.bf16.mxu0 %vm1863_vm0, %v1862_v2  ;;  %1702 = vmatprep.subr.bf16.mxu0 %v1862_v2  ;;  %s2095_s20 = scalar_select %p497_p5, 4, 3 }
  0x1b   : > { %1697 = vmatmul.mubr.msk.bf16.vlgmr.msra.gmra.mrb[0].mxu1 %vm521_vm2, %v508_v29  ;;  %s1646_s14 = sshll.u32 %s2072_s13, 1 }
  0x1c   : > { %1709 = vmatpush3.bf16.msra.mxu1 %v1962_v19  ;;  %1712 = vmatprep.mubr.msk.bf16.mxu1 %vm1863_vm0, %v1862_v2  ;;  %s880_s19 = scalar_lea.vmem [#allocation4], %s1646_s14  ;;  %s1648_s21 = sshll.u32 %s2095_s20, 1 }
  0x1d   : > { %1710 = vmatprep.subr.bf16.mxu1 %v1862_v2  ;;  %1703 = vmatpush3.bf16.msra.mxu0 %v1967_v21  ;;  %s1000_s22 = scalar_lea.vmem [#allocation4], %s1648_s21 }
  0x1e   : > { %1716 = vmatprep.subr.bf16.mxu0 %v1862_v2  ;;  %s2118_s23 = scalar_select %p497_p5, 5, 2 }
  0x1f   : > { %s2151_s11 = scalar_select %p497_p5, 7, 0 }
  0x20   : > { %1711 = vmatpush3.bf16.msra.mxu1 %v1967_v21  ;;  %s1650_s24 = sshll.u32 %s2118_s23, 1 }
  0x21   : > { %1724 = vmatprep.subr.bf16.mxu1 %v1862_v2  ;;  %s1120_s26 = scalar_lea.vmem [#allocation4], %s1650_s24 }
  0xeb   : > { %v434_v39 = vpop.f32.mrb[0].mxu0 }
  0xec   : > { %v435_v41 = vadd.f32 %v1631_v36, %v434_v39  ;;  %v1690_v42 = vpop.f32.mrb[1].mxu0 }
  0xed   : > { %v437_v44 = vpop.f32.mrb[2].mxu0 }
  0xee   : > { %v559_v38 = vpop.f32.mrb[0].mxu1  ;;  %v443_v46 = vcombine.high %v435_v41, %v435_v41  ;;  %v450_v47 = vrot.slane %v435_v41, %v449_v37  ;;  %1634 = vst.sshfl [vmem:[#allocation4] sm:$0x3 pattern:$0x76325410] %v435_v41  ;;  %v438_v48 = vadd.f32 %v1631_v36, %v437_v44  ;;  %v1691_v49 = vpop.f32.mrb[3].mxu0 }
  0xef   : > { %v1698_v40 = vpop.f32.mrb[1].mxu1 }
  0xf0   : > { %v562_v43 = vpop.f32.mrb[2].mxu1  ;;  %v457_v50 = vrot.slane %v443_v46, %v449_v37  ;;  %v458_v51 = vcombine.high %v450_v47, %v450_v47  ;;  %1635 = vst.sshfl [vmem:[#allocation4 + $0x4] sm:$0x3 pattern:$0x76325410] %v443_v46  ;;  %v460_v52 = vcombine.high %v438_v48, %v438_v48  ;;  %v467_v53 = vrot.slane %v438_v48, %v449_v37 }
  0xf1   : > { %v1699_v45 = vpop.f32.mrb[3].mxu1  ;;  %1636 = vst.sshfl [vmem:[#allocation4 + $0x8] sm:$0x3 pattern:$0x76325410] %v438_v48 }
  0xf2   : > { %v459_v54 = vcombine.high %v457_v50, %v457_v50  ;;  %486 = vst [vmem:[#allocation4 + $0x2] sm:$0x3] %v458_v51  ;;  %v474_v55 = vrot.slane %v460_v52, %v449_v37  ;;  %v475_v56 = vcombine.high %v467_v53, %v467_v53  ;;  %1637 = vst.sshfl [vmem:[#allocation4 + $0xc] sm:$0x3 pattern:$0x76325410] %v460_v52 }
  0xf4   : > { %488 = vst [vmem:[#allocation4 + $0x6] sm:$0x3] %v459_v54  ;;  %v476_v57 = vcombine.high %v474_v55, %v474_v55  ;;  %490 = vst [vmem:[#allocation4 + $0xa] sm:$0x3] %v475_v56 }
  0xf6   : > { %492 = vst [vmem:[#allocation4 + $0xe] sm:$0x3] %v476_v57 }
  0xfd   : > { %v506_v58 = vld [vmem:[%s505_s28] sm:$0x3]  ;;  %s2136_s28 = scalar_select %p497_p5, 6, 1 }
  0xfe   : > { %v565_v59 = vadd.f32 %v559_v38, %v506_v58  ;;  %v641_v22 = vld [vmem:[%s640_s8] sm:$0x3] }
  0xff   : > { %v761_v49 = vld [vmem:[%s760_s12] sm:$0x3]  ;;  %s1652_s7 = sshll.u32 %s2136_s28, 1  ;;  %s1654_s12 = sshll.u32 %s2151_s11, 1 }
 0x100   : > { %1790 = vtanh.f32 %v565_v59  ;;  %v566_v63 = vmul.f32 0.5, %v565_v59  ;;  %s1240_s8 = scalar_lea.vmem [#allocation4], %s1652_s7  ;;  %s1360_s14 = scalar_lea.vmem [#allocation4], %s1654_s12 }
 0x102   : > { %1792 = vtanh.f32 %v566_v63 }
 0x10a   : > { %v1791_v60 = vpop.eup %1790 }
 0x10b   : > { %578 = vrot.lane.b32.xlu0 %v1791_v60, %s1866_s29 }
 0x10c   : > { %v1793_v0 = vpop.eup %1792 }
 0x10d   : > { %v568_v1 = vadd.f32 1.0, %v1793_v0 }
 0x10f   : > { %573 = vrot.lane.b32.xlu0 %v571_v61, %s1867_s30  ;;  %v569_v3 = vmul.f32 0.5, %v568_v1 }
 0x113   : > { %605 = vrot.lane.b32.xlu0 %v603_v62, %s1868_s5 }
 0x17d   : > { %v579_v4 = vpop.permute.xlu0 %578 }
 0x17e   : > { %v581_v5 = vmul.f32 %v579_v4, %v569_v3 }
 0x180   : > { %583 = vrot.lane.b32.xlu1 %v581_v5, %s1867_s30 }
 0x181   : > { %v574_v6 = vpop.permute.xlu0 %573 }
 0x182   : > { %v576_v7 = vmul.f32 %v574_v6, %v569_v3 }
 0x185   : > { %v606_v11 = vpop.permute.xlu0 %605 }
 0x1f2   : > { %v584_v8 = vpop.permute.xlu1 %583 }
 0x1f3   : > { %v586_v9 = vadd.f32 %v584_v8, %v576_v7 }
 0x1f5   : > { %1794 = vtanh.f32 %v586_v9  ;;  %598 = vrot.lane.b32.xlu0 %v586_v9, %s1868_s5 }
 0x1ff   : > { %v1795_v10 = vpop.eup %1794 }
 0x200   : > { %589 = vrot.lane.b32.xlu1 %v1795_v10, %s1866_s29 }
 0x267   : > { %v599_v12 = vpop.permute.xlu0 %598 }
 0x268   : > { %602 = vst.msk [vmem:[#allocation3] sm:$0x3] %vm313_vm1, %v599_v12 }
 0x26f   : > { %v693_v13 = vld [vmem:[#allocation3] sm:$0x3] }
 0x270   : > { %695 = vrot.lane.b32.xlu0 %v693_v13, %s1867_s30  ;;  %v881_v13 = vld [vmem:[%s880_s19] sm:$0x3] }
 0x272   : > { %v590_v14 = vpop.permute.xlu1 %589 }
 0x273   : > { %v2010_v15 = vmul.f32 %v590_v14, %v569_v3 }
 0x275   : > { %610 = vrot.lane.b32.xlu1 %v2010_v15, %s1867_s30 }
 0x2e2   : > { %v696_v36 = vpop.permute.xlu0 %695 }
 0x2e7   : > { %v611_v16 = vpop.permute.xlu1 %610 }
 0x2e8   : > { %613 = vst.msk [vmem:[#allocation2] sm:$0x3] %vm313_vm1, %v611_v16 }
 0x2ef   : > { %v642_v17 = vld [vmem:[#allocation2] sm:$0x3] }
 0x2f0   : > { %v643_v18 = vpack.c.bf16 %v642_v17, %v642_v17  ;;  %v724_v35 = vld [vmem:[#allocation2] sm:$0x3] }
 0x2f2   : > { %1705 = vmatmul.mubr.msk.bf16.vlgmr.msra.gmra.mrb[4].mxu0 %vm521_vm2, %v643_v18 }
 0x2f3   : > { %1717 = vmatpush3.bf16.msra.mxu0 %v1962_v19  ;;  %1720 = vmatprep.mubr.msk.bf16.mxu0 %vm1863_vm0, %v1862_v2 }
 0x2f4   : > { %1718 = vmatprep.subr.bf16.mxu0 %v1862_v2 }
 0x2f7   : > { %1719 = vmatpush3.bf16.msra.mxu0 %v1967_v21 }
 0x2f8   : > { %1732 = vmatprep.subr.bf16.mxu0 %v1862_v2 }
 0x3c5   : > { %v681_v23 = vpop.f32.mrb[4].mxu0 }
 0x3c6   : > { %v687_v24 = vadd.f32 %v681_v23, %v641_v22  ;;  %v1706_v25 = vpop.f32.mrb[5].mxu0 }
 0x3c7   : > { %v684_v26 = vpop.f32.mrb[6].mxu0 }
 0x3c8   : > { %1796 = vtanh.f32 %v687_v24  ;;  %v1707_v27 = vpop.f32.mrb[7].mxu0  ;;  %v688_v29 = vmul.f32 0.5, %v687_v24 }
 0x3ca   : > { %1798 = vtanh.f32 %v688_v29 }
 0x3d2   : > { %v1797_v28 = vpop.eup %1796 }
 0x3d3   : > { %700 = vrot.lane.b32.xlu1 %v1797_v28, %s1866_s29 }
 0x3d4   : > { %v1799_v30 = vpop.eup %1798 }
 0x3d5   : > { %v690_v31 = vadd.f32 1.0, %v1799_v30 }
 0x3d7   : > { %v691_v32 = vmul.f32 0.5, %v690_v31 }
 0x3d9   : > { %v698_v37 = vmul.f32 %v696_v36, %v691_v32 }
 0x445   : > { %v701_v33 = vpop.permute.xlu1 %700 }
 0x446   : > { %v703_v34 = vmul.f32 %v701_v33, %v691_v32 }
 0x448   : > { %705 = vrot.lane.b32.xlu1 %v703_v34, %s1867_s30 }
 0x44c   : > { %726 = vrot.lane.b32.xlu1 %v724_v35, %s1868_s5 }
 0x4ba   : > { %v706_v38 = vpop.permute.xlu1 %705 }
 0x4bb   : > { %v708_v39 = vadd.f32 %v706_v38, %v698_v37 }
 0x4bd   : > { %1800 = vtanh.f32 %v708_v39  ;;  %720 = vrot.lane.b32.xlu1 %v708_v39, %s1868_s5 }
 0x4be   : > { %v727_v41 = vpop.permute.xlu1 %726 }
 0x4c7   : > { %v1801_v40 = vpop.eup %1800 }
 0x4c8   : > { %711 = vrot.lane.b32.xlu0 %v1801_v40, %s1866_s29 }
 0x52f   : > { %v721_v42 = vpop.permute.xlu1 %720 }
 0x530   : > { %723 = vst.msk [vmem:[#allocation3] sm:$0x3] %vm313_vm1, %v721_v42 }
 0x537   : > { %v813_v43 = vld [vmem:[#allocation3] sm:$0x3] }
 0x538   : > { %815 = vrot.lane.b32.xlu1 %v813_v43, %s1867_s30 }
 0x53a   : > { %v712_v44 = vpop.permute.xlu0 %711 }
 0x53b   : > { %v2034_v45 = vmul.f32 %v712_v44, %v691_v32  ;;  %v1001_v44 = vld [vmem:[%s1000_s22] sm:$0x3] }
 0x53d   : > { %731 = vrot.lane.b32.xlu0 %v2034_v45, %s1867_s30 }
 0x5aa   : > { %v816_v63 = vpop.permute.xlu1 %815 }
 0x5af   : > { %v732_v46 = vpop.permute.xlu0 %731 }
 0x5b0   : > { %734 = vst.msk [vmem:[#allocation2] sm:$0x3] %vm313_vm1, %v732_v46 }
 0x5b7   : > { %v762_v47 = vld [vmem:[#allocation2] sm:$0x3] }
 0x5b8   : > { %v763_v48 = vpack.c.bf16 %v762_v47, %v762_v47  ;;  %v844_v62 = vld [vmem:[#allocation2] sm:$0x3] }
 0x5ba   : > { %1713 = vmatmul.mubr.msk.bf16.vlgmr.msra.gmra.mrb[4].mxu1 %vm521_vm2, %v763_v48 }
 0x5bb   : > { %1725 = vmatpush3.bf16.msra.mxu1 %v1962_v19  ;;  %1728 = vmatprep.mubr.msk.bf16.mxu1 %vm1863_vm0, %v1862_v2 }
 0x5bc   : > { %1726 = vmatprep.subr.bf16.mxu1 %v1862_v2 }
 0x5bf   : > { %1727 = vmatpush3.bf16.msra.mxu1 %v1967_v21 }
 0x5c0   : > { %1740 = vmatprep.subr.bf16.mxu1 %v1862_v2 }
 0x68d   : > { %v801_v50 = vpop.f32.mrb[4].mxu1 }
 0x68e   : > { %v807_v51 = vadd.f32 %v801_v50, %v761_v49  ;;  %v1714_v52 = vpop.f32.mrb[5].mxu1 }
 0x68f   : > { %v804_v53 = vpop.f32.mrb[6].mxu1 }
 0x690   : > { %1802 = vtanh.f32 %v807_v51  ;;  %v1715_v54 = vpop.f32.mrb[7].mxu1  ;;  %v808_v56 = vmul.f32 0.5, %v807_v51 }
 0x692   : > { %1804 = vtanh.f32 %v808_v56 }
 0x69a   : > { %v1803_v55 = vpop.eup %1802 }
 0x69b   : > { %820 = vrot.lane.b32.xlu0 %v1803_v55, %s1866_s29 }
 0x69c   : > { %v1805_v57 = vpop.eup %1804 }
 0x69d   : > { %v810_v58 = vadd.f32 1.0, %v1805_v57 }
 0x69f   : > { %v811_v59 = vmul.f32 0.5, %v810_v58 }
 0x6a1   : > { %v818_v0 = vmul.f32 %v816_v63, %v811_v59 }
 0x70d   : > { %v821_v60 = vpop.permute.xlu0 %820 }
 0x70e   : > { %v823_v61 = vmul.f32 %v821_v60, %v811_v59 }
 0x710   : > { %825 = vrot.lane.b32.xlu0 %v823_v61, %s1867_s30 }
 0x714   : > { %846 = vrot.lane.b32.xlu0 %v844_v62, %s1868_s5 }
 0x782   : > { %v826_v1 = vpop.permute.xlu0 %825 }
 0x783   : > { %v828_v3 = vadd.f32 %v826_v1, %v818_v0 }
 0x785   : > { %1806 = vtanh.f32 %v828_v3  ;;  %840 = vrot.lane.b32.xlu0 %v828_v3, %s1868_s5 }
 0x786   : > { %v847_v5 = vpop.permute.xlu0 %846 }
 0x78f   : > { %v1807_v4 = vpop.eup %1806 }
 0x790   : > { %831 = vrot.lane.b32.xlu1 %v1807_v4, %s1866_s29 }
 0x7f7   : > { %v841_v6 = vpop.permute.xlu0 %840 }
 0x7f8   : > { %843 = vst.msk [vmem:[#allocation3] sm:$0x3] %vm313_vm1, %v841_v6 }
 0x7ff   : > { %v933_v7 = vld [vmem:[#allocation3] sm:$0x3] }
 0x800   : > { %935 = vrot.lane.b32.xlu0 %v933_v7, %s1867_s30 }
 0x802   : > { %v832_v8 = vpop.permute.xlu1 %831 }
 0x803   : > { %v2058_v9 = vmul.f32 %v832_v8, %v811_v59 }
 0x805   : > { %851 = vrot.lane.b32.xlu1 %v2058_v9, %s1867_s30 }
 0x872   : > { %v936_v31 = vpop.permute.xlu0 %935 }
 0x877   : > { %v852_v10 = vpop.permute.xlu1 %851 }
 0x878   : > { %854 = vst.msk [vmem:[#allocation2] sm:$0x3] %vm313_vm1, %v852_v10  ;;  %v1121_v10 = vld [vmem:[%s1120_s26] sm:$0x3] }
 0x87f   : > { %v882_v11 = vld [vmem:[#allocation2] sm:$0x3] }
 0x880   : > { %v883_v12 = vpack.c.bf16 %v882_v11, %v882_v11  ;;  %v964_v30 = vld [vmem:[#allocation2] sm:$0x3] }
 0x882   : > { %1721 = vmatmul.mubr.msk.bf16.vlgmr.msra.gmra.mrb[8].mxu0 %vm521_vm2, %v883_v12 }
 0x883   : > { %1733 = vmatpush3.bf16.msra.mxu0 %v1962_v19  ;;  %1736 = vmatprep.mubr.msk.bf16.mxu0 %vm1863_vm0, %v1862_v2 }
 0x884   : > { %1734 = vmatprep.subr.bf16.mxu0 %v1862_v2 }
 0x887   : > { %1735 = vmatpush3.bf16.msra.mxu0 %v1967_v21 }
 0x888   : > { %1748 = vmatprep.subr.bf16.mxu0 %v1862_v2 }
 0x955   : > { %v921_v14 = vpop.f32.mrb[8].mxu0 }
 0x956   : > { %v927_v16 = vadd.f32 %v921_v14, %v881_v13  ;;  %v1722_v17 = vpop.f32.mrb[9].mxu0 }
 0x957   : > { %v924_v18 = vpop.f32.mrb[10].mxu0 }
 0x958   : > { %1808 = vtanh.f32 %v927_v16  ;;  %v1723_v22 = vpop.f32.mrb[11].mxu0  ;;  %v928_v24 = vmul.f32 0.5, %v927_v16 }
 0x95a   : > { %1810 = vtanh.f32 %v928_v24 }
 0x962   : > { %v1809_v23 = vpop.eup %1808 }
 0x963   : > { %940 = vrot.lane.b32.xlu1 %v1809_v23, %s1866_s29 }
 0x964   : > { %v1811_v25 = vpop.eup %1810 }
 0x965   : > { %v930_v26 = vadd.f32 1.0, %v1811_v25 }
 0x967   : > { %v931_v27 = vmul.f32 0.5, %v930_v26 }
 0x969   : > { %v938_v32 = vmul.f32 %v936_v31, %v931_v27 }
 0x9d5   : > { %v941_v28 = vpop.permute.xlu1 %940 }
 0x9d6   : > { %v943_v29 = vmul.f32 %v941_v28, %v931_v27 }
 0x9d8   : > { %945 = vrot.lane.b32.xlu1 %v943_v29, %s1867_s30 }
 0x9dc   : > { %966 = vrot.lane.b32.xlu1 %v964_v30, %s1868_s5 }
 0xa4a   : > { %v946_v33 = vpop.permute.xlu1 %945 }
 0xa4b   : > { %v948_v34 = vadd.f32 %v946_v33, %v938_v32 }
 0xa4d   : > { %1812 = vtanh.f32 %v948_v34  ;;  %960 = vrot.lane.b32.xlu1 %v948_v34, %s1868_s5 }
 0xa4e   : > { %v967_v36 = vpop.permute.xlu1 %966 }
 0xa57   : > { %v1813_v35 = vpop.eup %1812 }
 0xa58   : > { %951 = vrot.lane.b32.xlu0 %v1813_v35, %s1866_s29 }
 0xabf   : > { %v961_v37 = vpop.permute.xlu1 %960 }
 0xac0   : > { %963 = vst.msk [vmem:[#allocation3] sm:$0x3] %vm313_vm1, %v961_v37 }
 0xac7   : > { %v1053_v38 = vld [vmem:[#allocation3] sm:$0x3] }
 0xac8   : > { %1055 = vrot.lane.b32.xlu1 %v1053_v38, %s1867_s30  ;;  %v1241_v38 = vld [vmem:[%s1240_s8] sm:$0x3] }
 0xaca   : > { %v952_v39 = vpop.permute.xlu0 %951 }
 0xacb   : > { %v2082_v40 = vmul.f32 %v952_v39, %v931_v27 }
 0xacd   : > { %971 = vrot.lane.b32.xlu0 %v2082_v40, %s1867_s30 }
 0xb3a   : > { %v1056_v59 = vpop.permute.xlu1 %1055 }
 0xb3f   : > { %v972_v41 = vpop.permute.xlu0 %971 }
 0xb40   : > { %974 = vst.msk [vmem:[#allocation2] sm:$0x3] %vm313_vm1, %v972_v41 }
 0xb47   : > { %v1002_v42 = vld [vmem:[#allocation2] sm:$0x3] }
 0xb48   : > { %v1003_v43 = vpack.c.bf16 %v1002_v42, %v1002_v42  ;;  %v1084_v58 = vld [vmem:[#allocation2] sm:$0x3] }
 0xb4a   : > { %1729 = vmatmul.mubr.msk.bf16.vlgmr.msra.gmra.mrb[8].mxu1 %vm521_vm2, %v1003_v43 }
 0xb4b   : > { %1741 = vmatpush3.bf16.msra.mxu1 %v1962_v19  ;;  %1744 = vmatprep.mubr.msk.bf16.mxu1 %vm1863_vm0, %v1862_v2 }
 0xb4c   : > { %1742 = vmatprep.subr.bf16.mxu1 %v1862_v2 }
 0xb4f   : > { %1743 = vmatpush3.bf16.msra.mxu1 %v1967_v21 }
 0xc1d   : > { %v1041_v46 = vpop.f32.mrb[8].mxu1 }
 0xc1e   : > { %v1047_v47 = vadd.f32 %v1041_v46, %v1001_v44  ;;  %v1730_v48 = vpop.f32.mrb[9].mxu1 }
 0xc1f   : > { %v1044_v49 = vpop.f32.mrb[10].mxu1 }
 0xc20   : > { %1814 = vtanh.f32 %v1047_v47  ;;  %v1731_v50 = vpop.f32.mrb[11].mxu1  ;;  %v1048_v52 = vmul.f32 0.5, %v1047_v47 }
 0xc22   : > { %1816 = vtanh.f32 %v1048_v52 }
 0xc2a   : > { %v1815_v51 = vpop.eup %1814 }
 0xc2b   : > { %1060 = vrot.lane.b32.xlu0 %v1815_v51, %s1866_s29 }
 0xc2c   : > { %v1817_v53 = vpop.eup %1816 }
 0xc2d   : > { %v1050_v54 = vadd.f32 1.0, %v1817_v53 }
 0xc2f   : > { %v1051_v55 = vmul.f32 0.5, %v1050_v54 }
 0xc31   : > { %v1058_v60 = vmul.f32 %v1056_v59, %v1051_v55 }
 0xc9d   : > { %v1061_v56 = vpop.permute.xlu0 %1060 }
 0xc9e   : > { %v1063_v57 = vmul.f32 %v1061_v56, %v1051_v55 }
 0xca0   : > { %1065 = vrot.lane.b32.xlu0 %v1063_v57, %s1867_s30 }
 0xca4   : > { %1086 = vrot.lane.b32.xlu0 %v1084_v58, %s1868_s5 }
 0xd12   : > { %v1066_v61 = vpop.permute.xlu0 %1065 }
 0xd13   : > { %v1068_v62 = vadd.f32 %v1066_v61, %v1058_v60 }
 0xd15   : > { %1818 = vtanh.f32 %v1068_v62  ;;  %1080 = vrot.lane.b32.xlu0 %v1068_v62, %s1868_s5 }
 0xd16   : > { %v1087_v0 = vpop.permute.xlu0 %1086 }
 0xd1f   : > { %v1819_v63 = vpop.eup %1818 }
 0xd20   : > { %1071 = vrot.lane.b32.xlu1 %v1819_v63, %s1866_s29 }
 0xd87   : > { %v1081_v1 = vpop.permute.xlu0 %1080 }
 0xd88   : > { %1083 = vst.msk [vmem:[#allocation3] sm:$0x3] %vm313_vm1, %v1081_v1 }
 0xd8f   : > { %v1173_v3 = vld [vmem:[#allocation3] sm:$0x3] }
 0xd90   : > { %1175 = vrot.lane.b32.xlu0 %v1173_v3, %s1867_s30 }
 0xd92   : > { %v1072_v4 = vpop.permute.xlu1 %1071 }
 0xd93   : > { %v2105_v5 = vmul.f32 %v1072_v4, %v1051_v55  ;;  %v1361_v4 = vld [vmem:[%s1360_s14] sm:$0x3] }
 0xd95   : > { %1091 = vrot.lane.b32.xlu1 %v2105_v5, %s1867_s30 }
 0xe02   : > { %v1176_v25 = vpop.permute.xlu0 %1175 }
 0xe07   : > { %v1092_v6 = vpop.permute.xlu1 %1091 }
 0xe08   : > { %1094 = vst.msk [vmem:[#allocation2] sm:$0x3] %vm313_vm1, %v1092_v6 }
 0xe0f   : > { %v1122_v7 = vld [vmem:[#allocation2] sm:$0x3] }
 0xe10   : > { %v1123_v8 = vpack.c.bf16 %v1122_v7, %v1122_v7  ;;  %v1204_v24 = vld [vmem:[#allocation2] sm:$0x3] }
 0xe12   : > { %1737 = vmatmul.mubr.msk.bf16.vlgmr.msra.gmra.mrb[12].mxu0 %vm521_vm2, %v1123_v8 }
 0xe13   : > { %1749 = vmatpush3.bf16.msra.mxu0 %v1962_v19  ;;  %1752 = vmatprep.mubr.msk.bf16.mxu0 %vm1863_vm0, %v1862_v2 }
 0xe14   : > { %1750 = vmatprep.subr.bf16.mxu0 %v1862_v2 }
 0xe17   : > { %1751 = vmatpush3.bf16.msra.mxu0 %v1967_v21 }
 0xee5   : > { %v1161_v11 = vpop.f32.mrb[12].mxu0 }
 0xee6   : > { %v1167_v12 = vadd.f32 %v1161_v11, %v1121_v10  ;;  %v1738_v13 = vpop.f32.mrb[13].mxu0 }
 0xee7   : > { %v1164_v14 = vpop.f32.mrb[14].mxu0 }
 0xee8   : > { %1820 = vtanh.f32 %v1167_v12  ;;  %v1739_v19 = vpop.f32.mrb[15].mxu0  ;;  %v1168_v17 = vmul.f32 0.5, %v1167_v12 }
 0xeea   : > { %1822 = vtanh.f32 %v1168_v17 }
 0xef2   : > { %v1821_v16 = vpop.eup %1820 }
 0xef3   : > { %1180 = vrot.lane.b32.xlu1 %v1821_v16, %s1866_s29 }
 0xef4   : > { %v1823_v2 = vpop.eup %1822 }
 0xef5   : > { %v1170_v21 = vadd.f32 1.0, %v1823_v2  ;;  %v735_v2 = vpack.c.bf16 %v2034_v45, %v2034_v45 }
 0xef7   : > { %v1171_v18 = vmul.f32 0.5, %v1170_v21 }
 0xef9   : > { %v1178_v26 = vmul.f32 %v1176_v25, %v1171_v18 }
 0xf65   : > { %v1181_v22 = vpop.permute.xlu1 %1180 }
 0xf66   : > { %v1183_v23 = vmul.f32 %v1181_v22, %v1171_v18  ;;  %v975_v22 = vpack.c.bf16 %v2082_v40, %v2082_v40 }
 0xf68   : > { %1185 = vrot.lane.b32.xlu1 %v1183_v23, %s1867_s30 }
 0xf6c   : > { %1206 = vrot.lane.b32.xlu1 %v1204_v24, %s1868_s5  ;;  %v983_v24 = vrot.slane %v975_v22, %v1964_v20 }
 0xfda   : > { %v1186_v27 = vpop.permute.xlu1 %1185 }
 0xfdb   : > { %v1188_v28 = vadd.f32 %v1186_v27, %v1178_v26  ;;  %v990_v27 = vrot.slane %v983_v24, %v1964_v20 }
 0xfdd   : > { %1824 = vtanh.f32 %v1188_v28  ;;  %1200 = vrot.lane.b32.xlu1 %v1188_v28, %s1868_s5 }
 0xfde   : > { %v1207_v30 = vpop.permute.xlu1 %1206 }
 0xfe7   : > { %v1825_v29 = vpop.eup %1824 }
 0xfe8   : > { %1191 = vrot.lane.b32.xlu0 %v1825_v29, %s1866_s29 }
0x104f   : > { %v1201_v31 = vpop.permute.xlu1 %1200 }
0x1050   : > { %1203 = vst.msk [vmem:[#allocation3] sm:$0x3] %vm313_vm1, %v1201_v31 }
0x1057   : > { %v1293_v32 = vld [vmem:[#allocation3] sm:$0x3] }
0x1058   : > { %1295 = vrot.lane.b32.xlu1 %v1293_v32, %s1867_s30  ;;  %v614_v32 = vpack.c.bf16 %v2010_v15, %v2010_v15 }
0x105a   : > { %v1192_v33 = vpop.permute.xlu0 %1191 }
0x105b   : > { %v2128_v34 = vmul.f32 %v1192_v33, %v1171_v18  ;;  %v743_v18 = vrot.slane %v735_v2, %v1964_v20  ;;  %v622_v33 = vrot.slane %v614_v32, %v1964_v20 }
0x105d   : > { %1211 = vrot.lane.b32.xlu0 %v2128_v34, %s1867_s30  ;;  %v1215_v25 = vpack.c.bf16 %v2128_v34, %v2128_v34  ;;  %v750_v26 = vrot.slane %v743_v18, %v1964_v20  ;;  %v855_v34 = vpack.c.bf16 %v2058_v9, %v2058_v9 }
0x105f   : > { %v1223_v45 = vrot.slane %v1215_v25, %v1964_v20 }
0x1061   : > { %v1230_v40 = vrot.slane %v1223_v45, %v1964_v20 }
0x10ca   : > { %v1296_v54 = vpop.permute.xlu1 %1295 }
0x10cf   : > { %v1212_v35 = vpop.permute.xlu0 %1211 }
0x10d0   : > { %1214 = vst.msk [vmem:[#allocation2] sm:$0x3] %vm313_vm1, %v1212_v35 }
0x10d7   : > { %v1242_v36 = vld [vmem:[#allocation2] sm:$0x3] }
0x10d8   : > { %v1243_v37 = vpack.c.bf16 %v1242_v36, %v1242_v36  ;;  %v1324_v53 = vld [vmem:[#allocation2] sm:$0x3]  ;;  %v863_v36 = vrot.slane %v855_v34, %v1964_v20 }
0x10da   : > { %1745 = vmatmul.mubr.msk.bf16.vlgmr.msra.gmra.mrb[12].mxu1 %vm521_vm2, %v1243_v37  ;;  %v1095_v37 = vpack.c.bf16 %v2105_v5, %v2105_v5 }
0x10dc   : > { %v1103_v15 = vrot.slane %v1095_v37, %v1964_v20 }
0x11ad   : > { %v1281_v39 = vpop.f32.mrb[12].mxu1 }
0x11ae   : > { %v1287_v41 = vadd.f32 %v1281_v39, %v1241_v38  ;;  %v1746_v42 = vpop.f32.mrb[13].mxu1  ;;  %v629_v38 = vrot.slane %v622_v33, %v1964_v20 }
0x11af   : > { %v1284_v43 = vpop.f32.mrb[14].mxu1  ;;  %v1110_v42 = vrot.slane %v1103_v15, %v1964_v20 }
0x11b0   : > { %1826 = vtanh.f32 %v1287_v41  ;;  %v1747_v44 = vpop.f32.mrb[15].mxu1  ;;  %v1288_v47 = vmul.f32 0.5, %v1287_v41  ;;  %v870_v41 = vrot.slane %v863_v36, %v1964_v20 }
0x11b2   : > { %1828 = vtanh.f32 %v1288_v47 }
0x11ba   : > { %v1827_v46 = vpop.eup %1826 }
0x11bb   : > { %1300 = vrot.lane.b32.xlu0 %v1827_v46, %s1866_s29 }
0x11bc   : > { %v1829_v48 = vpop.eup %1828 }
0x11bd   : > { %v1290_v49 = vadd.f32 1.0, %v1829_v48 }
0x11bf   : > { %v1291_v50 = vmul.f32 0.5, %v1290_v49 }
0x11c1   : > { %v1298_v55 = vmul.f32 %v1296_v54, %v1291_v50 }
0x122d   : > { %v1301_v51 = vpop.permute.xlu0 %1300 }
0x122e   : > { %v1303_v52 = vmul.f32 %v1301_v51, %v1291_v50 }
0x1230   : > { %1305 = vrot.lane.b32.xlu0 %v1303_v52, %s1867_s30 }
0x1234   : > { %1326 = vrot.lane.b32.xlu0 %v1324_v53, %s1868_s5 }
0x12a2   : > { %v1306_v56 = vpop.permute.xlu0 %1305 }
0x12a3   : > { %v1308_v57 = vadd.f32 %v1306_v56, %v1298_v55 }
0x12a5   : > { %1830 = vtanh.f32 %v1308_v57  ;;  %1320 = vrot.lane.b32.xlu0 %v1308_v57, %s1868_s5 }
0x12a6   : > { %v1327_v59 = vpop.permute.xlu0 %1326 }
0x12af   : > { %v1831_v58 = vpop.eup %1830 }
0x12b0   : > { %1311 = vrot.lane.b32.xlu1 %v1831_v58, %s1866_s29 }
0x1317   : > { %v1321_v60 = vpop.permute.xlu0 %1320 }
0x1318   : > { %1323 = vst.msk [vmem:[#allocation3] sm:$0x3] %vm313_vm1, %v1321_v60 }
0x131f   : > { %v1413_v61 = vld [vmem:[#allocation3] sm:$0x3] }
0x1320   : > { %1415 = vrot.lane.b32.xlu0 %v1413_v61, %s1867_s30 }
0x1322   : > { %v1312_v62 = vpop.permute.xlu1 %1311 }
0x1323   : > { %v1314_v63 = vmul.f32 %v1312_v62, %v1291_v50 }
0x1325   : > { %1331 = vrot.lane.b32.xlu1 %v1314_v63, %s1867_s30  ;;  %v1335_v39 = vpack.c.bf16 %v1314_v63, %v1314_v63 }
0x1327   : > { %v1343_v9 = vrot.slane %v1335_v39, %v1964_v20 }
0x1329   : > { %v1350_v5 = vrot.slane %v1343_v9, %v1964_v20 }
0x1392   : > { %v1416_v28 = vpop.permute.xlu0 %1415 }
0x1397   : > { %v1332_v0 = vpop.permute.xlu1 %1331 }
0x1398   : > { %1334 = vst.msk [vmem:[#allocation2] sm:$0x3] %vm313_vm1, %v1332_v0 }
0x139f   : > { %v1362_v1 = vld [vmem:[#allocation2] sm:$0x3] }
0x13a0   : > { %v1363_v3 = vpack.c.bf16 %v1362_v1, %v1362_v1  ;;  %v1444_v23 = vld [vmem:[#allocation2] sm:$0x3] }
0x13a2   : > { %1753 = vmatmul.mubr.msk.bf16.vlgmr.msra.gmra.mrb[16].mxu0 %vm521_vm2, %v1363_v3 }
0x1475   : > { %v1401_v6 = vpop.f32.mrb[16].mxu0 }
0x1476   : > { %v1407_v7 = vadd.f32 %v1401_v6, %v1361_v4  ;;  %v1754_v8 = vpop.f32.mrb[17].mxu0 }
0x1477   : > { %v1404_v10 = vpop.f32.mrb[18].mxu0 }
0x1478   : > { %1832 = vtanh.f32 %v1407_v7  ;;  %v1755_v11 = vpop.f32.mrb[19].mxu0  ;;  %v1408_v13 = vmul.f32 0.5, %v1407_v7 }
0x147a   : > { %1834 = vtanh.f32 %v1408_v13 }
0x1482   : > { %v1833_v12 = vpop.eup %1832 }
0x1483   : > { %1420 = vrot.lane.b32.xlu1 %v1833_v12, %s1866_s29 }
0x1484   : > { %v1835_v14 = vpop.eup %1834 }
0x1485   : > { %v1410_v19 = vadd.f32 1.0, %v1835_v14 }
0x1487   : > { %v1411_v16 = vmul.f32 0.5, %v1410_v19 }
0x1489   : > { %v1418_v29 = vmul.f32 %v1416_v28, %v1411_v16 }
0x14f5   : > { %v1421_v17 = vpop.permute.xlu1 %1420 }
0x14f6   : > { %v1423_v21 = vmul.f32 %v1421_v17, %v1411_v16 }
0x14f8   : > { %1425 = vrot.lane.b32.xlu1 %v1423_v21, %s1867_s30 }
0x14fc   : > { %1446 = vrot.lane.b32.xlu1 %v1444_v23, %s1868_s5 }
0x1500   : > { %751 = vrot.lane.b32.xlu1 %v750_v26, %s1867_s30 }
0x1504   : > { %991 = vrot.lane.b32.xlu1 %v990_v27, %s1867_s30 }
0x1508   : > { %1231 = vrot.lane.b32.xlu1 %v1230_v40, %s1867_s30 }
0x156a   : > { %v1426_v30 = vpop.permute.xlu1 %1425 }
0x156b   : > { %v1428_v31 = vadd.f32 %v1426_v30, %v1418_v29 }
0x156d   : > { %1836 = vtanh.f32 %v1428_v31  ;;  %1440 = vrot.lane.b32.xlu1 %v1428_v31, %s1868_s5  ;;  %s2198_s5 = scalar_lea.vmem %s2242_s4, %s1658_s10 }
0x156e   : > { %v1447_v43 = vpop.permute.xlu1 %1446  ;;  %s633_s19 = scalar_lea.vmem %s2198_s5, %s1999_s25  ;;  %s754_s21 = scalar_lea.vmem %s2198_s5, %s2024_s6 }
0x156f   : > { %s874_s27 = scalar_lea.vmem %s2198_s5, %s2048_s9  ;;  %s994_s10 = scalar_lea.vmem %s2198_s5, %s2072_s13 }
0x1570   : > { %s1114_s25 = scalar_lea.vmem %s2198_s5, %s2095_s20  ;;  %s1234_s6 = scalar_lea.vmem %s2198_s5, %s2118_s23 }
0x1571   : > { %s1354_s9 = scalar_lea.vmem %s2198_s5, %s2136_s28  ;;  %s1474_s13 = scalar_lea.vmem %s2198_s5, %s2151_s11 }
0x1572   : > { %v752_v44 = vpop.permute.xlu1 %751 }
0x1576   : > { %v992_v46 = vpop.permute.xlu1 %991 }
0x1577   : > { %v1837_v35 = vpop.eup %1836 }
0x1578   : > { %1431 = vrot.lane.b32.xlu0 %v1837_v35, %s1866_s29 }
0x157a   : > { %v1232_v47 = vpop.permute.xlu1 %1231 }
0x157c   : > { %630 = vrot.lane.b32.xlu0 %v629_v38, %s1867_s30 }
0x1580   : > { %871 = vrot.lane.b32.xlu0 %v870_v41, %s1867_s30 }
0x1584   : > { %1111 = vrot.lane.b32.xlu0 %v1110_v42, %s1867_s30 }
0x1588   : > { %1351 = vrot.lane.b32.xlu0 %v1350_v5, %s1867_s30 }
0x15df   : > { %v1441_v48 = vpop.permute.xlu1 %1440 }
0x15e0   : > { %1443 = vst.msk [vmem:[#allocation3] sm:$0x3] %vm313_vm1, %v1441_v48 }
0x15ea   : > { %v1432_v49 = vpop.permute.xlu0 %1431 }
0x15eb   : > { %v1434_v50 = vmul.f32 %v1432_v49, %v1411_v16 }
0x15ed   : > { %v1455_v51 = vpack.c.bf16 %v1434_v50, %v1434_v50  ;;  %1451 = vrot.lane.b32.xlu0 %v1434_v50, %s1867_s30 }
0x15ee   : > { %v631_v52 = vpop.permute.xlu0 %630 }
0x15ef   : > { %v1463_v53 = vrot.slane %v1455_v51, %v1964_v20  ;;  %635 = vst.msk [vmem:[%s633_s19] sm:$0x1] %vm634_vm4, %v631_v52 }
0x15f0   : > { %755 = vst.msk [vmem:[%s754_s21] sm:$0x1] %vm634_vm4, %v752_v44 }
0x15f1   : > { %v1470_v54 = vrot.slane %v1463_v53, %v1964_v20 }
0x15f2   : > { %v872_v55 = vpop.permute.xlu0 %871 }
0x15f3   : > { %875 = vst.msk [vmem:[%s874_s27] sm:$0x1] %vm634_vm4, %v872_v55  ;;  %1471 = vrot.lane.b32.xlu1 %v1470_v54, %s1867_s30 }
0x15f4   : > { %995 = vst.msk [vmem:[%s994_s10] sm:$0x1] %vm634_vm4, %v992_v46 }
0x15f6   : > { %v1112_v56 = vpop.permute.xlu0 %1111 }
0x15f7   : > { %1115 = vst.msk [vmem:[%s1114_s25] sm:$0x1] %vm634_vm4, %v1112_v56 }
0x15f8   : > { %1235 = vst.msk [vmem:[%s1234_s6] sm:$0x1] %vm634_vm4, %v1232_v47 }
0x15fa   : > { %v1352_v57 = vpop.permute.xlu0 %1351 }
0x15fb   : > { %1355 = vst.msk [vmem:[%s1354_s9] sm:$0x1] %vm634_vm4, %v1352_v57 }
0x165f   : > { %v1452_v58 = vpop.permute.xlu0 %1451 }
0x1660   : > { %1454 = vst.msk [vmem:[#allocation2] sm:$0x3] %vm313_vm1, %v1452_v58 }
0x1665   : > { %v1472_v20 = vpop.permute.xlu1 %1471 }
0x1666   : > { %1475 = vst.msk [vmem:[%s1474_s13] sm:$0x1] %vm634_vm4, %v1472_v20 }
0x1667 PF: > { %s14_s17 = sadd.s32 1, %s1860_s17   ;;  %s2243_s15 = smov %s1856_s16 }
0x1668   : > { %p11_p6 = scmp.ge.s32.totalorder %s14_s17, 4   ;;  %s2244_s16 = smov %s2246_s18 }
0x166a   :  { %13 = sbr.rel (!%p11_p6) target bundleno = 2 (0x2), region = 95 }

// kernel: ctc_transcription_forward.4
= control target key start
LH: loop header
LB: loop body
LE: loop exit
PB: predicated region body
PF: predicated region fallthrough
CT: control target
= control target key end

     0   :  { %s2148_s18 = smov 0   ;;  %s2150_s19 = smov 0   ;;  %s2534_s0 = inlined_call_operand.vmem [shape: bf16[2,8,2,32], index: 0, kind: input, shape index: {}, may-alias: {0,1}]   ;;  %s2535_s1 = inlined_call_operand.vmem [shape: bf16[2,8,2,32], index: 1, kind: input, shape index: {}, may-alias: {0,1}]   ;;  %s2536_s2 = inlined_call_operand.vmem [shape: bf16[2,64,128], index: 2, kind: input, shape index: {}]   ;;  %s2537_s3 = inlined_call_operand.vmem [shape: f32[2,1,128], index: 3, kind: input, shape index: {}]   ;;  %s2538_s4 = inlined_call_operand.vmem [shape: bf16[2,32,128], index: 4, kind: input, shape index: {}]   ;;  %s2539_s5 = inlined_call_operand.vmem [shape: bf16[2,8,2,32], index: 5, kind: output, shape index: {}]  }
   0x1   :  { %s2152_s20 = smov 0  }
   0x2 LB: > { %s27_s21 = sadd.s32 1, %s2105_s19  ;;  %p1842_p0 = scmp.ge.s32.totalorder %s2109_s20, 1  ;;  %s2109_s20 = sphi %s2152_s20, %s15_s20   ;;  %s2105_s19 = sphi %s2150_s19, %s2541_s19   ;;  %s2101_s18 = sphi %s2148_s18, %s2540_s18  }
   0x3   : > { %p29_p1 = scmp.ge.s32.totalorder %s27_s21, 2  ;;  %p270_p2 = scmp.lt.s32.totalorder %s2109_s20, 3 }
   0x5   : > { %s2543_s21 = smov (%p29_p1, %s27_s21), 0  ;;  %p271_p3 = pnand %p1842_p0, %p270_p2 }
   0x6   : > { %p350_p4 = scmp.lt.s32.totalorder (!%p271_p3), %s2101_s18, 1  ;;  %v1851_v0 = vld [vmem:[%s2535_s1 + $0x8] sm:$0x1] (!%p271_p3)  ;;  %v425_v1 = vlaneseq (!%p271_p3)  ;;  %v2111_v2 = vmov (!%p271_p3), 0.0   ;;  %v1852_v3 = vld [vmem:[%s2535_s1 + $0x9] sm:$0x1] (!%p271_p3) }
   0x7   : > { %274 = sbr.rel (%p271_p3) target bundleno = 5739 (0x166b), region = 40  ;;  %1922 = vmatprep.subr.bf16.mxu0 (!%p271_p3), %v2111_v2  ;;  %1930 = vmatprep.subr.bf16.mxu1 (!%p271_p3), %v2111_v2  ;;  %v1853_v4 = vld [vmem:[%s2535_s1 + $0xa] sm:$0x1] (!%p271_p3)  ;;  %v1854_v5 = vld [vmem:[%s2535_s1 + $0xb] sm:$0x1] (!%p271_p3)  ;;  %vm2112_vm0 = vmmov (!%p271_p3), 0   ;;  %v418_v15 = vcombine.low (!%p271_p3), %v1851_v0, %v1852_v3 }
   0x8   : > { %1926 = vmatprep.mubr.msk.bf16.mxu0 (!%p271_p3), %vm2112_vm0, %v2111_v2  ;;  %1934 = vmatprep.mubr.msk.bf16.mxu1 (!%p271_p3), %vm2112_vm0, %v2111_v2  ;;  %v1855_v6 = vld [vmem:[%s2535_s1 + $0xc] sm:$0x1] (!%p271_p3)  ;;  %v1856_v7 = vld [vmem:[%s2535_s1 + $0xd] sm:$0x1] (!%p271_p3)  ;;  %v1857_v8 = vld [vmem:[%s2535_s1 + $0xe] sm:$0x1] (!%p271_p3)  ;;  %v419_v16 = vcombine.low (!%p271_p3), %v1853_v4, %v1854_v5 }
   0x9   : > { %v1858_v9 = vld [vmem:[%s2535_s1 + $0xf] sm:$0x1] (!%p271_p3)  ;;  %v2113_v10 = vmov (!%p271_p3), 1966171168   ;;  %v2203_v12 = vshrl.u32 (!%p271_p3), %v425_v1, 7  ;;  %v420_v20 = vcombine.low (!%p271_p3), %v1855_v6, %v1856_v7  ;;  %vm383_vm1 = vcmask (!%p271_p3), 254976  }
   0xa   : > { %v423_v11 = vunpack.c.l.s4 (!%p271_p3), %v2113_v10  ;;  %v386_v13 = vld [vmem:[%s2534_s0] sm:$0x1] (!%p271_p3)  ;;  %v387_v14 = vld [vmem:[%s2534_s0 + $0x1] sm:$0x1] (!%p271_p3)  ;;  %v388_v17 = vld [vmem:[%s2534_s0 + $0x2] sm:$0x1] (!%p271_p3)  ;;  %v421_v21 = vcombine.low (!%p271_p3), %v1857_v8, %v1858_v9 }
   0xb   : > { %v389_v18 = vld [vmem:[%s2534_s0 + $0x3] sm:$0x1] (!%p271_p3)  ;;  %v390_v23 = vld [vmem:[%s2534_s0 + $0x4] sm:$0x1] (!%p271_p3)  ;;  %v532_v25 = vcombine.low (!%p271_p3), %v386_v13, %v387_v14  ;;  %384 = vst.msk [vmem:[#allocation2] sm:$0x3] (!%p271_p3), %vm383_vm1, %v2111_v2 }
   0xc   : > { %v424_v22 = vunpack.c.0.s8 (!%p271_p3), %v423_v11  ;;  %v533_v26 = vcombine.low (!%p271_p3), %v388_v17, %v389_v18  ;;  %385 = vst.msk [vmem:[#allocation3] sm:$0x3] (!%p271_p3), %vm383_vm1, %v2111_v2  ;;  %v391_v34 = vld [vmem:[%s2534_s0 + $0x5] sm:$0x1] (!%p271_p3)  ;;  %v392_v35 = vld [vmem:[%s2534_s0 + $0x6] sm:$0x1] (!%p271_p3) }
   0xd   : > { %v393_v36 = vld [vmem:[%s2534_s0 + $0x7] sm:$0x1] (!%p271_p3)  ;;  %v534_v37 = vcombine.low (!%p271_p3), %v390_v23, %v391_v34  ;;  %vm479_vm2 = vcmask (!%p271_p3), 261120   ;;  %v2114_v57 = vmov (!%p271_p3), 1983009808   ;;  %p702_p5 = scmp.eq.s32.totalorder (!%p271_p3), %s2101_s18, 0 }
   0xe   : > { %s2184_s30 = scalar_select %p350_p4, %s2101_s18, 1  ;;  %v2229_v28 = vsub.s32 %v424_v22, %v2203_v12  ;;  %v535_v38 = vcombine.low %v392_v35, %v393_v36  ;;  %v650_v58 = vunpack.c.l.s4 %v2114_v57  ;;  %vm838_vm3 = vcmask 253952  }
   0xf   : > { %s2115_s28 = smov 64   ;;  %s2116_s29 = smov 32  }
  0x10   : > { %s1890_s14 = sshll.u32 %s2184_s30, 5  ;;  %s1891_s8 = sshll.u32 %s2184_s30, 4  ;;  %v428_v30 = vrot.slane %v418_v15, %v2229_v28  ;;  %v435_v31 = vrot.slane %v419_v16, %v2229_v28  ;;  %v442_v32 = vrot.slane %v420_v20, %v2229_v28  ;;  %v449_v33 = vrot.slane %v421_v21, %v2229_v28 }
  0x11   : > { %s354_s25 = scalar_lea.vmem %s2536_s2, %s1890_s14  ;;  %s2235_s11 = scalar_lea.vmem %s2538_s4, %s1891_s8  ;;  %v542_v39 = vrot.slane %v532_v25, %v2229_v28  ;;  %v549_v40 = vrot.slane %v533_v26, %v2229_v28  ;;  %v556_v43 = vrot.slane %v534_v37, %v2229_v28  ;;  %v563_v44 = vrot.slane %v535_v38, %v2229_v28 }
  0x12   : > { %v2033_v19 = vld [vmem:[%s354_s25 + $0x10] sm:$0xff]   ;;  %v2034_v24 = vld [vmem:[%s354_s25] sm:$0xff]   ;;  %v2035_v27 = vld [vmem:[%s354_s25 + $0x18] sm:$0xff]   ;;  %v450_v41 = vcombine.low %v428_v30, %v435_v31  ;;  %v451_v42 = vcombine.low %v442_v32, %v449_v33  ;;  %s357_s24 = scalar_lea.vmem %s2537_s3, %s2184_s30  ;;  %v651_v60 = vunpack.c.0.s8 %v650_v58  ;;  %s2117_s6 = smov 96  }
  0x13   : > { %1923 = vmatpush3.bf16.msra.mxu0 %v2033_v19  ;;  %1931 = vmatpush3.bf16.msra.mxu1 %v2034_v24  ;;  %v2036_v29 = vld [vmem:[%s354_s25 + $0x8] sm:$0xff]   ;;  %v564_v45 = vcombine.low %v542_v39, %v549_v40  ;;  %v565_v48 = vcombine.low %v556_v43, %v563_v44  ;;  %v2261_v50 = vld [vmem:[%s2235_s11] sm:$0xff]   ;;  %s2296_s25 = scalar_select %p702_p5, 0, 7 }
  0x14   : > { %1924 = vmatprep.subr.bf16.mxu0 %v2111_v2  ;;  %1932 = vmatprep.subr.bf16.mxu1 %v2111_v2  ;;  %v458_v46 = vrot.slane %v450_v41, %v2229_v28  ;;  %v465_v47 = vrot.slane %v451_v42, %v2229_v28  ;;  %v2267_v54 = vld [vmem:[%s2235_s11 + $0x8] sm:$0xff]   ;;  %v712_v55 = vld [vmem:[#allocation2] sm:$0x3]  ;;  %v654_v4 = vsub.s32 %v651_v60, %v2203_v12  ;;  %s2321_s7 = scalar_select %p702_p5, 1, 6 }
  0x15   : > { %v572_v49 = vrot.slane %v564_v45, %v2229_v28  ;;  %v579_v52 = vrot.slane %v565_v48, %v2229_v28  ;;  %v713_v56 = vpack.c.bf16 %v712_v55, %v712_v55  ;;  %v1865_v0 = vld [vmem:[%s357_s24] ss:$0 sm:$0xff]  ;;  %s1870_s26 = sshll.u32 %s2296_s25, 1  ;;  %s1850_s18 = sshll.u32 %s2184_s30, 3 }
  0x16   : > { %v466_v51 = vcombine.low %v458_v46, %v465_v47  ;;  %s710_s27 = scalar_lea.vmem [#allocation4], %s1870_s26  ;;  %v807_v30 = vld [vmem:[#allocation2] sm:$0x3]  ;;  %s1874_s8 = sshll.u32 %s2321_s7, 1 }
  0x17   : > { %1925 = vmatpush3.bf16.msra.mxu0 %v2035_v27  ;;  %1933 = vmatpush3.bf16.msra.mxu1 %v2036_v29  ;;  %v580_v53 = vcombine.low %v572_v49, %v579_v52  ;;  %v775_v29 = vld [vmem:[#allocation3] sm:$0x3]  ;;  %s844_s9 = scalar_lea.vmem [#allocation4], %s1874_s8 }
  0x18   : > { %1938 = vmatprep.subr.bf16.mxu0 %v2111_v2  ;;  %1946 = vmatprep.subr.bf16.mxu1 %v2111_v2  ;;  %s2345_s10 = scalar_select %p702_p5, 2, 5 }
  0x19   : > { %s2369_s13 = scalar_select %p702_p5, 3, 4 }
  0x1a   : > { %1927 = vmatmul.mubr.msk.bf16.vlgmr.msra.gmra.mrb[0].mxu0 %vm479_vm2, %v466_v51  ;;  %1935 = vmatmul.mubr.msk.bf16.vlgmr.msra.gmra.mrb[0].mxu1 %vm479_vm2, %v580_v53  ;;  %s1876_s11 = sshll.u32 %s2345_s10, 1 }
  0x1b   : > { %1939 = vmatpush3.bf16.msra.mxu0 %v2261_v50  ;;  %1942 = vmatprep.mubr.msk.bf16.mxu0 %vm2112_vm0, %v2111_v2  ;;  %s964_s12 = scalar_lea.vmem [#allocation4], %s1876_s11  ;;  %s1878_s14 = sshll.u32 %s2369_s13, 1 }
  0x1c   : > { %1940 = vmatprep.subr.bf16.mxu0 %v2111_v2  ;;  %1947 = vmatpush3.bf16.msra.mxu1 %v2261_v50  ;;  %s1084_s15 = scalar_lea.vmem [#allocation4], %s1878_s14 }
  0x1d   : > { %1950 = vmatprep.mubr.msk.bf16.mxu1 %vm2112_vm0, %v2111_v2  ;;  %1948 = vmatprep.subr.bf16.mxu1 %v2111_v2  ;;  %s2392_s16 = scalar_select %p702_p5, 4, 3 }
  0x1e   : > { %s2415_s23 = scalar_select %p702_p5, 5, 2 }
  0x1f   : > { %1941 = vmatpush3.bf16.msra.mxu0 %v2267_v54  ;;  %s1880_s17 = sshll.u32 %s2392_s16, 1 }
  0x20   : > { %1954 = vmatprep.subr.bf16.mxu0 %v2111_v2  ;;  %1949 = vmatpush3.bf16.msra.mxu1 %v2267_v54  ;;  %s1204_s22 = scalar_lea.vmem [#allocation4], %s1880_s17  ;;  %s1882_s24 = sshll.u32 %s2415_s23, 1 }
  0x21   : > { %1962 = vmatprep.subr.bf16.mxu1 %v2111_v2  ;;  %s1324_s26 = scalar_lea.vmem [#allocation4], %s1882_s24 }
  0x22   : > { %1943 = vmatmul.mubr.msk.bf16.vlgmr.msra.gmra.mrb[4].mxu0 %vm479_vm2, %v713_v56  ;;  %s2448_s11 = scalar_select %p702_p5, 7, 0 }
  0x23   : > { %1955 = vmatpush3.bf16.msra.mxu0 %v2261_v50  ;;  %1958 = vmatprep.mubr.msk.bf16.mxu0 %vm2112_vm0, %v2111_v2 }
  0x24   : > { %1956 = vmatprep.subr.bf16.mxu0 %v2111_v2 }
  0x27   : > { %1957 = vmatpush3.bf16.msra.mxu0 %v2267_v54 }
  0x28   : > { %1970 = vmatprep.subr.bf16.mxu0 %v2111_v2 }
  0xed   : > { %v517_v59 = vpop.f32.mrb[0].mxu0  ;;  %v630_v63 = vpop.f32.mrb[0].mxu1 }
  0xee   : > { %v1928_v61 = vpop.f32.mrb[1].mxu0  ;;  %v631_v3 = vadd.f32 %v630_v63, %v517_v59  ;;  %v1936_v5 = vpop.f32.mrb[1].mxu1 }
  0xef   : > { %v520_v62 = vpop.f32.mrb[2].mxu0  ;;  %v633_v6 = vpop.f32.mrb[2].mxu1 }
  0xf0   : > { %v1929_v1 = vpop.f32.mrb[3].mxu0  ;;  %v644_v7 = vadd.f32 %v1865_v0, %v631_v3  ;;  %v634_v8 = vadd.f32 %v633_v6, %v520_v62  ;;  %v1937_v9 = vpop.f32.mrb[3].mxu1 }
  0xf2   : > { %v648_v10 = vcombine.high %v644_v7, %v644_v7  ;;  %v655_v11 = vrot.slane %v644_v7, %v654_v4  ;;  %1866 = vst.sshfl [vmem:[#allocation4] sm:$0x3 pattern:$0x76325410] %v644_v7  ;;  %v645_v13 = vadd.f32 %v1865_v0, %v634_v8 }
  0xf4   : > { %v662_v16 = vrot.slane %v648_v10, %v654_v4  ;;  %v663_v17 = vcombine.high %v655_v11, %v655_v11  ;;  %1867 = vst.sshfl [vmem:[#allocation4 + $0x4] sm:$0x3 pattern:$0x76325410] %v648_v10  ;;  %v665_v18 = vcombine.high %v645_v13, %v645_v13  ;;  %v672_v19 = vrot.slane %v645_v13, %v654_v4 }
  0xf5   : > { %v763_v14 = vpop.f32.mrb[4].mxu0  ;;  %1868 = vst.sshfl [vmem:[#allocation4 + $0x8] sm:$0x3 pattern:$0x76325410] %v645_v13 }
  0xf6   : > { %v1944_v15 = vpop.f32.mrb[5].mxu0  ;;  %v664_v21 = vcombine.high %v662_v16, %v662_v16  ;;  %691 = vst [vmem:[#allocation4 + $0x2] sm:$0x3] %v663_v17  ;;  %v679_v22 = vrot.slane %v665_v18, %v654_v4  ;;  %v680_v23 = vcombine.high %v672_v19, %v672_v19 }
  0xf7   : > { %v766_v12 = vpop.f32.mrb[6].mxu0  ;;  %1869 = vst.sshfl [vmem:[#allocation4 + $0xc] sm:$0x3 pattern:$0x76325410] %v665_v18 }
  0xf8   : > { %v1945_v20 = vpop.f32.mrb[7].mxu0  ;;  %693 = vst [vmem:[#allocation4 + $0x6] sm:$0x3] %v664_v21  ;;  %v681_v24 = vcombine.high %v679_v22, %v679_v22  ;;  %695 = vst [vmem:[#allocation4 + $0xa] sm:$0x3] %v680_v23 }
  0xfa   : > { %697 = vst [vmem:[#allocation4 + $0xe] sm:$0x3] %v681_v24 }
 0x101   : > { %v711_v25 = vld [vmem:[%s710_s27] sm:$0x3]  ;;  %s2433_s27 = scalar_select %p702_p5, 6, 1 }
 0x102   : > { %v769_v26 = vadd.f32 %v763_v14, %v711_v25  ;;  %v845_v51 = vld [vmem:[%s844_s9] sm:$0x3] }
 0x103   : > { %v965_v17 = vld [vmem:[%s964_s12] sm:$0x3]  ;;  %s1884_s8 = sshll.u32 %s2433_s27, 1  ;;  %s1886_s12 = sshll.u32 %s2448_s11, 1 }
 0x104   : > { %2039 = vtanh.f32 %v769_v26  ;;  %v770_v31 = vmul.f32 0.5, %v769_v26  ;;  %s1444_s9 = scalar_lea.vmem [#allocation4], %s1884_s8  ;;  %s1564_s14 = scalar_lea.vmem [#allocation4], %s1886_s12 }
 0x106   : > { %2041 = vtanh.f32 %v770_v31 }
 0x10e   : > { %v2040_v27 = vpop.eup %2039 }
 0x10f   : > { %782 = vrot.lane.b32.xlu0 %v2040_v27, %s2115_s28 }
 0x110   : > { %v2042_v32 = vpop.eup %2041 }
 0x111   : > { %v772_v33 = vadd.f32 1.0, %v2042_v32 }
 0x113   : > { %777 = vrot.lane.b32.xlu0 %v775_v29, %s2116_s29  ;;  %v773_v34 = vmul.f32 0.5, %v772_v33 }
 0x117   : > { %809 = vrot.lane.b32.xlu0 %v807_v30, %s2117_s6 }
 0x181   : > { %v783_v35 = vpop.permute.xlu0 %782 }
 0x182   : > { %v785_v36 = vmul.f32 %v783_v35, %v773_v34 }
 0x184   : > { %787 = vrot.lane.b32.xlu1 %v785_v36, %s2116_s29 }
 0x185   : > { %v778_v37 = vpop.permute.xlu0 %777 }
 0x186   : > { %v780_v38 = vmul.f32 %v778_v37, %v773_v34 }
 0x189   : > { %v810_v42 = vpop.permute.xlu0 %809 }
 0x1f6   : > { %v788_v39 = vpop.permute.xlu1 %787 }
 0x1f7   : > { %v790_v40 = vadd.f32 %v788_v39, %v780_v38 }
 0x1f9   : > { %2043 = vtanh.f32 %v790_v40  ;;  %802 = vrot.lane.b32.xlu0 %v790_v40, %s2117_s6 }
 0x203   : > { %v2044_v41 = vpop.eup %2043 }
 0x204   : > { %793 = vrot.lane.b32.xlu1 %v2044_v41, %s2115_s28 }
 0x26b   : > { %v803_v43 = vpop.permute.xlu0 %802 }
 0x26c   : > { %806 = vst.msk [vmem:[#allocation3] sm:$0x3] %vm383_vm1, %v803_v43 }
 0x273   : > { %v897_v44 = vld [vmem:[#allocation3] sm:$0x3] }
 0x274   : > { %899 = vrot.lane.b32.xlu0 %v897_v44, %s2116_s29  ;;  %v1085_v44 = vld [vmem:[%s1084_s15] sm:$0x3]  ;;  %s2494_s15 = scalar_lea.vmem %s2539_s5, %s1850_s18 }
 0x275   : > { %s837_s17 = scalar_lea.vmem %s2494_s15, %s2296_s25  ;;  %s1078_s30 = scalar_lea.vmem %s2494_s15, %s2345_s10 }
 0x276   : > { %v794_v45 = vpop.permute.xlu1 %793  ;;  %s1198_s24 = scalar_lea.vmem %s2494_s15, %s2369_s13  ;;  %s1318_s25 = scalar_lea.vmem %s2494_s15, %s2392_s16 }
 0x277   : > { %v2307_v46 = vmul.f32 %v794_v45, %v773_v34  ;;  %s1558_s10 = scalar_lea.vmem %s2494_s15, %s2433_s27  ;;  %s1678_s13 = scalar_lea.vmem %s2494_s15, %s2448_s11 }
 0x279   : > { %814 = vrot.lane.b32.xlu1 %v2307_v46, %s2116_s29 }
 0x2e6   : > { %v900_v3 = vpop.permute.xlu0 %899 }
 0x2eb   : > { %v815_v47 = vpop.permute.xlu1 %814 }
 0x2ec   : > { %817 = vst.msk [vmem:[#allocation2] sm:$0x3] %vm383_vm1, %v815_v47 }
 0x2f3   : > { %v846_v48 = vld [vmem:[#allocation2] sm:$0x3] }
 0x2f4   : > { %v847_v49 = vpack.c.bf16 %v846_v48, %v846_v48  ;;  %v928_v1 = vld [vmem:[#allocation2] sm:$0x3] }
 0x2f6   : > { %1951 = vmatmul.mubr.msk.bf16.vlgmr.msra.gmra.mrb[4].mxu1 %vm479_vm2, %v847_v49 }
 0x2f7   : > { %1963 = vmatpush3.bf16.msra.mxu1 %v2261_v50  ;;  %1966 = vmatprep.mubr.msk.bf16.mxu1 %vm2112_vm0, %v2111_v2 }
 0x2f8   : > { %1964 = vmatprep.subr.bf16.mxu1 %v2111_v2 }
 0x2fb   : > { %1965 = vmatpush3.bf16.msra.mxu1 %v2267_v54 }
 0x2fc   : > { %1978 = vmatprep.subr.bf16.mxu1 %v2111_v2 }
 0x3c9   : > { %v885_v52 = vpop.f32.mrb[4].mxu1 }
 0x3ca   : > { %v891_v53 = vadd.f32 %v885_v52, %v845_v51  ;;  %v1952_v55 = vpop.f32.mrb[5].mxu1 }
 0x3cb   : > { %v888_v56 = vpop.f32.mrb[6].mxu1 }
 0x3cc   : > { %2045 = vtanh.f32 %v891_v53  ;;  %v1953_v57 = vpop.f32.mrb[7].mxu1  ;;  %v892_v59 = vmul.f32 0.5, %v891_v53 }
 0x3ce   : > { %2047 = vtanh.f32 %v892_v59 }
 0x3d6   : > { %v2046_v58 = vpop.eup %2045 }
 0x3d7   : > { %904 = vrot.lane.b32.xlu1 %v2046_v58, %s2115_s28 }
 0x3d8   : > { %v2048_v60 = vpop.eup %2047 }
 0x3d9   : > { %v894_v61 = vadd.f32 1.0, %v2048_v60 }
 0x3db   : > { %v895_v62 = vmul.f32 0.5, %v894_v61 }
 0x3dd   : > { %v902_v4 = vmul.f32 %v900_v3, %v895_v62 }
 0x449   : > { %v905_v63 = vpop.permute.xlu1 %904 }
 0x44a   : > { %v907_v0 = vmul.f32 %v905_v63, %v895_v62 }
 0x44c   : > { %909 = vrot.lane.b32.xlu1 %v907_v0, %s2116_s29 }
 0x450   : > { %930 = vrot.lane.b32.xlu1 %v928_v1, %s2117_s6 }
 0x4be   : > { %v910_v5 = vpop.permute.xlu1 %909 }
 0x4bf   : > { %v912_v6 = vadd.f32 %v910_v5, %v902_v4 }
 0x4c1   : > { %2049 = vtanh.f32 %v912_v6  ;;  %924 = vrot.lane.b32.xlu1 %v912_v6, %s2117_s6 }
 0x4c2   : > { %v931_v8 = vpop.permute.xlu1 %930 }
 0x4cb   : > { %v2050_v7 = vpop.eup %2049 }
 0x4cc   : > { %915 = vrot.lane.b32.xlu0 %v2050_v7, %s2115_s28 }
 0x533   : > { %v925_v9 = vpop.permute.xlu1 %924 }
 0x534   : > { %927 = vst.msk [vmem:[#allocation3] sm:$0x3] %vm383_vm1, %v925_v9 }
 0x53b   : > { %v1017_v10 = vld [vmem:[#allocation3] sm:$0x3] }
 0x53c   : > { %1019 = vrot.lane.b32.xlu1 %v1017_v10, %s2116_s29 }
 0x53e   : > { %v916_v11 = vpop.permute.xlu0 %915 }
 0x53f   : > { %v2331_v13 = vmul.f32 %v916_v11, %v895_v62  ;;  %v1205_v11 = vld [vmem:[%s1204_s22] sm:$0x3]  ;;  %s958_s22 = scalar_lea.vmem %s2494_s15, %s2321_s7  ;;  %s1438_s7 = scalar_lea.vmem %s2494_s15, %s2415_s23 }
 0x541   : > { %935 = vrot.lane.b32.xlu0 %v2331_v13, %s2116_s29 }
 0x5ae   : > { %v1020_v31 = vpop.permute.xlu1 %1019 }
 0x5b3   : > { %v936_v14 = vpop.permute.xlu0 %935 }
 0x5b4   : > { %938 = vst.msk [vmem:[#allocation2] sm:$0x3] %vm383_vm1, %v936_v14 }
 0x5bb   : > { %v966_v15 = vld [vmem:[#allocation2] sm:$0x3] }
 0x5bc   : > { %v967_v16 = vpack.c.bf16 %v966_v15, %v966_v15  ;;  %v1048_v30 = vld [vmem:[#allocation2] sm:$0x3] }
 0x5be   : > { %1959 = vmatmul.mubr.msk.bf16.vlgmr.msra.gmra.mrb[8].mxu0 %vm479_vm2, %v967_v16 }
 0x5bf   : > { %1971 = vmatpush3.bf16.msra.mxu0 %v2261_v50  ;;  %1974 = vmatprep.mubr.msk.bf16.mxu0 %vm2112_vm0, %v2111_v2 }
 0x5c0   : > { %1972 = vmatprep.subr.bf16.mxu0 %v2111_v2 }
 0x5c3   : > { %1973 = vmatpush3.bf16.msra.mxu0 %v2267_v54 }
 0x5c4   : > { %1986 = vmatprep.subr.bf16.mxu0 %v2111_v2 }
 0x691   : > { %v1005_v18 = vpop.f32.mrb[8].mxu0 }
 0x692   : > { %v1011_v19 = vadd.f32 %v1005_v18, %v965_v17  ;;  %v1960_v12 = vpop.f32.mrb[9].mxu0 }
 0x693   : > { %v1008_v20 = vpop.f32.mrb[10].mxu0 }
 0x694   : > { %2051 = vtanh.f32 %v1011_v19  ;;  %v1961_v21 = vpop.f32.mrb[11].mxu0  ;;  %v1012_v23 = vmul.f32 0.5, %v1011_v19 }
 0x696   : > { %2053 = vtanh.f32 %v1012_v23 }
 0x69e   : > { %v2052_v22 = vpop.eup %2051 }
 0x69f   : > { %1024 = vrot.lane.b32.xlu0 %v2052_v22, %s2115_s28 }
 0x6a0   : > { %v2054_v24 = vpop.eup %2053 }
 0x6a1   : > { %v1014_v25 = vadd.f32 1.0, %v2054_v24 }
 0x6a3   : > { %v1015_v26 = vmul.f32 0.5, %v1014_v25 }
 0x6a5   : > { %v1022_v32 = vmul.f32 %v1020_v31, %v1015_v26 }
 0x711   : > { %v1025_v27 = vpop.permute.xlu0 %1024 }
 0x712   : > { %v1027_v29 = vmul.f32 %v1025_v27, %v1015_v26 }
 0x714   : > { %1029 = vrot.lane.b32.xlu0 %v1027_v29, %s2116_s29 }
 0x718   : > { %1050 = vrot.lane.b32.xlu0 %v1048_v30, %s2117_s6 }
 0x786   : > { %v1030_v33 = vpop.permute.xlu0 %1029 }
 0x787   : > { %v1032_v34 = vadd.f32 %v1030_v33, %v1022_v32 }
 0x789   : > { %2055 = vtanh.f32 %v1032_v34  ;;  %1044 = vrot.lane.b32.xlu0 %v1032_v34, %s2117_s6 }
 0x78a   : > { %v1051_v36 = vpop.permute.xlu0 %1050 }
 0x793   : > { %v2056_v35 = vpop.eup %2055 }
 0x794   : > { %1035 = vrot.lane.b32.xlu1 %v2056_v35, %s2115_s28 }
 0x7fb   : > { %v1045_v37 = vpop.permute.xlu0 %1044 }
 0x7fc   : > { %1047 = vst.msk [vmem:[#allocation3] sm:$0x3] %vm383_vm1, %v1045_v37 }
 0x803   : > { %v1137_v38 = vld [vmem:[#allocation3] sm:$0x3] }
 0x804   : > { %1139 = vrot.lane.b32.xlu0 %v1137_v38, %s2116_s29 }
 0x806   : > { %v1036_v39 = vpop.permute.xlu1 %1035 }
 0x807   : > { %v2355_v40 = vmul.f32 %v1036_v39, %v1015_v26 }
 0x809   : > { %1055 = vrot.lane.b32.xlu1 %v2355_v40, %s2116_s29 }
 0x876   : > { %v1140_v61 = vpop.permute.xlu0 %1139 }
 0x87b   : > { %v1056_v41 = vpop.permute.xlu1 %1055 }
 0x87c   : > { %1058 = vst.msk [vmem:[#allocation2] sm:$0x3] %vm383_vm1, %v1056_v41  ;;  %v1325_v41 = vld [vmem:[%s1324_s26] sm:$0x3] }
 0x883   : > { %v1086_v42 = vld [vmem:[#allocation2] sm:$0x3] }
 0x884   : > { %v1087_v43 = vpack.c.bf16 %v1086_v42, %v1086_v42  ;;  %v1168_v60 = vld [vmem:[#allocation2] sm:$0x3] }
 0x886   : > { %1967 = vmatmul.mubr.msk.bf16.vlgmr.msra.gmra.mrb[8].mxu1 %vm479_vm2, %v1087_v43 }
 0x887   : > { %1979 = vmatpush3.bf16.msra.mxu1 %v2261_v50  ;;  %1982 = vmatprep.mubr.msk.bf16.mxu1 %vm2112_vm0, %v2111_v2 }
 0x888   : > { %1980 = vmatprep.subr.bf16.mxu1 %v2111_v2 }
 0x88b   : > { %1981 = vmatpush3.bf16.msra.mxu1 %v2267_v54 }
 0x88c   : > { %1994 = vmatprep.subr.bf16.mxu1 %v2111_v2 }
 0x959   : > { %v1125_v45 = vpop.f32.mrb[8].mxu1 }
 0x95a   : > { %v1131_v47 = vadd.f32 %v1125_v45, %v1085_v44  ;;  %v1968_v48 = vpop.f32.mrb[9].mxu1 }
 0x95b   : > { %v1128_v49 = vpop.f32.mrb[10].mxu1 }
 0x95c   : > { %2057 = vtanh.f32 %v1131_v47  ;;  %v1969_v51 = vpop.f32.mrb[11].mxu1  ;;  %v1132_v53 = vmul.f32 0.5, %v1131_v47 }
 0x95e   : > { %2059 = vtanh.f32 %v1132_v53 }
 0x966   : > { %v2058_v52 = vpop.eup %2057 }
 0x967   : > { %1144 = vrot.lane.b32.xlu1 %v2058_v52, %s2115_s28 }
 0x968   : > { %v2060_v55 = vpop.eup %2059 }
 0x969   : > { %v1134_v56 = vadd.f32 1.0, %v2060_v55 }
 0x96b   : > { %v1135_v57 = vmul.f32 0.5, %v1134_v56 }
 0x96d   : > { %v1142_v62 = vmul.f32 %v1140_v61, %v1135_v57 }
 0x9d9   : > { %v1145_v58 = vpop.permute.xlu1 %1144 }
 0x9da   : > { %v1147_v59 = vmul.f32 %v1145_v58, %v1135_v57 }
 0x9dc   : > { %1149 = vrot.lane.b32.xlu1 %v1147_v59, %s2116_s29 }
 0x9e0   : > { %1170 = vrot.lane.b32.xlu1 %v1168_v60, %s2117_s6 }
 0xa4e   : > { %v1150_v63 = vpop.permute.xlu1 %1149 }
 0xa4f   : > { %v1152_v0 = vadd.f32 %v1150_v63, %v1142_v62 }
 0xa51   : > { %2061 = vtanh.f32 %v1152_v0  ;;  %1164 = vrot.lane.b32.xlu1 %v1152_v0, %s2117_s6 }
 0xa52   : > { %v1171_v3 = vpop.permute.xlu1 %1170 }
 0xa5b   : > { %v2062_v1 = vpop.eup %2061 }
 0xa5c   : > { %1155 = vrot.lane.b32.xlu0 %v2062_v1, %s2115_s28 }
 0xac3   : > { %v1165_v4 = vpop.permute.xlu1 %1164 }
 0xac4   : > { %1167 = vst.msk [vmem:[#allocation3] sm:$0x3] %vm383_vm1, %v1165_v4 }
 0xacb   : > { %v1257_v5 = vld [vmem:[#allocation3] sm:$0x3] }
 0xacc   : > { %1259 = vrot.lane.b32.xlu1 %v1257_v5, %s2116_s29  ;;  %v1445_v5 = vld [vmem:[%s1444_s9] sm:$0x3] }
 0xace   : > { %v1156_v6 = vpop.permute.xlu0 %1155 }
 0xacf   : > { %v2379_v7 = vmul.f32 %v1156_v6, %v1135_v57 }
 0xad1   : > { %1175 = vrot.lane.b32.xlu0 %v2379_v7, %s2116_s29 }
 0xb3e   : > { %v1260_v26 = vpop.permute.xlu1 %1259 }
 0xb43   : > { %v1176_v8 = vpop.permute.xlu0 %1175 }
 0xb44   : > { %1178 = vst.msk [vmem:[#allocation2] sm:$0x3] %vm383_vm1, %v1176_v8 }
 0xb4b   : > { %v1206_v9 = vld [vmem:[#allocation2] sm:$0x3] }
 0xb4c   : > { %v1207_v10 = vpack.c.bf16 %v1206_v9, %v1206_v9  ;;  %v1288_v25 = vld [vmem:[#allocation2] sm:$0x3] }
 0xb4e   : > { %1975 = vmatmul.mubr.msk.bf16.vlgmr.msra.gmra.mrb[12].mxu0 %vm479_vm2, %v1207_v10 }
 0xb4f   : > { %1987 = vmatpush3.bf16.msra.mxu0 %v2261_v50  ;;  %1990 = vmatprep.mubr.msk.bf16.mxu0 %vm2112_vm0, %v2111_v2 }
 0xb50   : > { %1988 = vmatprep.subr.bf16.mxu0 %v2111_v2 }
 0xb53   : > { %1989 = vmatpush3.bf16.msra.mxu0 %v2267_v54 }
 0xc21   : > { %v1245_v14 = vpop.f32.mrb[12].mxu0 }
 0xc22   : > { %v1251_v15 = vadd.f32 %v1245_v14, %v1205_v11  ;;  %v1976_v16 = vpop.f32.mrb[13].mxu0 }
 0xc23   : > { %v1248_v17 = vpop.f32.mrb[14].mxu0 }
 0xc24   : > { %2063 = vtanh.f32 %v1251_v15  ;;  %v1977_v18 = vpop.f32.mrb[15].mxu0  ;;  %v1252_v12 = vmul.f32 0.5, %v1251_v15 }
 0xc26   : > { %2065 = vtanh.f32 %v1252_v12 }
 0xc2e   : > { %v2064_v19 = vpop.eup %2063 }
 0xc2f   : > { %1264 = vrot.lane.b32.xlu0 %v2064_v19, %s2115_s28 }
 0xc30   : > { %v2066_v20 = vpop.eup %2065 }
 0xc31   : > { %v1254_v21 = vadd.f32 1.0, %v2066_v20 }
 0xc33   : > { %v1255_v22 = vmul.f32 0.5, %v1254_v21 }
 0xc35   : > { %v1262_v27 = vmul.f32 %v1260_v26, %v1255_v22 }
 0xca1   : > { %v1265_v23 = vpop.permute.xlu0 %1264 }
 0xca2   : > { %v1267_v24 = vmul.f32 %v1265_v23, %v1255_v22 }
 0xca4   : > { %1269 = vrot.lane.b32.xlu0 %v1267_v24, %s2116_s29 }
 0xca8   : > { %1290 = vrot.lane.b32.xlu0 %v1288_v25, %s2117_s6 }
 0xd16   : > { %v1270_v29 = vpop.permute.xlu0 %1269 }
 0xd17   : > { %v1272_v30 = vadd.f32 %v1270_v29, %v1262_v27 }
 0xd19   : > { %2067 = vtanh.f32 %v1272_v30  ;;  %1284 = vrot.lane.b32.xlu0 %v1272_v30, %s2117_s6 }
 0xd1a   : > { %v1291_v32 = vpop.permute.xlu0 %1290 }
 0xd23   : > { %v2068_v31 = vpop.eup %2067 }
 0xd24   : > { %1275 = vrot.lane.b32.xlu1 %v2068_v31, %s2115_s28 }
 0xd8b   : > { %v1285_v33 = vpop.permute.xlu0 %1284 }
 0xd8c   : > { %1287 = vst.msk [vmem:[#allocation3] sm:$0x3] %vm383_vm1, %v1285_v33 }
 0xd93   : > { %v1377_v34 = vld [vmem:[#allocation3] sm:$0x3] }
 0xd94   : > { %1379 = vrot.lane.b32.xlu0 %v1377_v34, %s2116_s29 }
 0xd96   : > { %v1276_v35 = vpop.permute.xlu1 %1275 }
 0xd97   : > { %v2402_v36 = vmul.f32 %v1276_v35, %v1255_v22  ;;  %v1565_v35 = vld [vmem:[%s1564_s14] sm:$0x3] }
 0xd99   : > { %1295 = vrot.lane.b32.xlu1 %v2402_v36, %s2116_s29 }
 0xe06   : > { %v1380_v55 = vpop.permute.xlu0 %1379 }
 0xe0b   : > { %v1296_v37 = vpop.permute.xlu1 %1295 }
 0xe0c   : > { %1298 = vst.msk [vmem:[#allocation2] sm:$0x3] %vm383_vm1, %v1296_v37 }
 0xe13   : > { %v1326_v38 = vld [vmem:[#allocation2] sm:$0x3] }
 0xe14   : > { %v1327_v39 = vpack.c.bf16 %v1326_v38, %v1326_v38  ;;  %v1408_v53 = vld [vmem:[#allocation2] sm:$0x3] }
 0xe16   : > { %1983 = vmatmul.mubr.msk.bf16.vlgmr.msra.gmra.mrb[12].mxu1 %vm479_vm2, %v1327_v39 }
 0xe17   : > { %1995 = vmatpush3.bf16.msra.mxu1 %v2261_v50  ;;  %1998 = vmatprep.mubr.msk.bf16.mxu1 %vm2112_vm0, %v2111_v2 }
 0xe18   : > { %1996 = vmatprep.subr.bf16.mxu1 %v2111_v2 }
 0xe1b   : > { %1997 = vmatpush3.bf16.msra.mxu1 %v2267_v54 }
 0xee9   : > { %v1365_v42 = vpop.f32.mrb[12].mxu1 }
 0xeea   : > { %v1371_v43 = vadd.f32 %v1365_v42, %v1325_v41  ;;  %v1984_v44 = vpop.f32.mrb[13].mxu1 }
 0xeeb   : > { %v1368_v45 = vpop.f32.mrb[14].mxu1 }
 0xeec   : > { %2069 = vtanh.f32 %v1371_v43  ;;  %v1985_v50 = vpop.f32.mrb[15].mxu1  ;;  %v1372_v48 = vmul.f32 0.5, %v1371_v43 }
 0xeee   : > { %2071 = vtanh.f32 %v1372_v48 }
 0xef6   : > { %v2070_v47 = vpop.eup %2069 }
 0xef7   : > { %1384 = vrot.lane.b32.xlu1 %v2070_v47, %s2115_s28 }
 0xef8   : > { %v2072_v2 = vpop.eup %2071 }
 0xef9   : > { %v1374_v54 = vadd.f32 1.0, %v2072_v2  ;;  %v939_v2 = vpack.c.bf16 %v2331_v13, %v2331_v13 }
 0xefb   : > { %v1375_v49 = vmul.f32 0.5, %v1374_v54 }
 0xefd   : > { %v1382_v56 = vmul.f32 %v1380_v55, %v1375_v49 }
 0xf69   : > { %v1385_v51 = vpop.permute.xlu1 %1384 }
 0xf6a   : > { %v1387_v52 = vmul.f32 %v1385_v51, %v1375_v49  ;;  %v1179_v51 = vpack.c.bf16 %v2379_v7, %v2379_v7 }
 0xf6c   : > { %1389 = vrot.lane.b32.xlu1 %v1387_v52, %s2116_s29 }
 0xf70   : > { %1410 = vrot.lane.b32.xlu1 %v1408_v53, %s2117_s6  ;;  %v1187_v53 = vrot.slane %v1179_v51, %v2229_v28 }
 0xfde   : > { %v1390_v57 = vpop.permute.xlu1 %1389 }
 0xfdf   : > { %v1392_v58 = vadd.f32 %v1390_v57, %v1382_v56  ;;  %v1194_v57 = vrot.slane %v1187_v53, %v2229_v28 }
 0xfe1   : > { %2073 = vtanh.f32 %v1392_v58  ;;  %1404 = vrot.lane.b32.xlu1 %v1392_v58, %s2117_s6 }
 0xfe2   : > { %v1411_v60 = vpop.permute.xlu1 %1410 }
 0xfeb   : > { %v2074_v59 = vpop.eup %2073 }
 0xfec   : > { %1395 = vrot.lane.b32.xlu0 %v2074_v59, %s2115_s28 }
0x1053   : > { %v1405_v61 = vpop.permute.xlu1 %1404 }
0x1054   : > { %1407 = vst.msk [vmem:[#allocation3] sm:$0x3] %vm383_vm1, %v1405_v61 }
0x105b   : > { %v1497_v62 = vld [vmem:[#allocation3] sm:$0x3] }
0x105c   : > { %1499 = vrot.lane.b32.xlu1 %v1497_v62, %s2116_s29  ;;  %v818_v62 = vpack.c.bf16 %v2307_v46, %v2307_v46 }
0x105e   : > { %v1396_v63 = vpop.permute.xlu0 %1395 }
0x105f   : > { %v2425_v0 = vmul.f32 %v1396_v63, %v1375_v49  ;;  %v947_v49 = vrot.slane %v939_v2, %v2229_v28  ;;  %v826_v63 = vrot.slane %v818_v62, %v2229_v28 }
0x1061   : > { %1415 = vrot.lane.b32.xlu0 %v2425_v0, %s2116_s29  ;;  %v1419_v55 = vpack.c.bf16 %v2425_v0, %v2425_v0  ;;  %v954_v56 = vrot.slane %v947_v49, %v2229_v28  ;;  %v1059_v0 = vpack.c.bf16 %v2355_v40, %v2355_v40 }
0x1063   : > { %v1427_v13 = vrot.slane %v1419_v55, %v2229_v28 }
0x1065   : > { %v1434_v7 = vrot.slane %v1427_v13, %v2229_v28 }
0x10ce   : > { %v1500_v21 = vpop.permute.xlu1 %1499 }
0x10d3   : > { %v1416_v1 = vpop.permute.xlu0 %1415 }
0x10d4   : > { %1418 = vst.msk [vmem:[#allocation2] sm:$0x3] %vm383_vm1, %v1416_v1 }
0x10db   : > { %v1446_v3 = vld [vmem:[#allocation2] sm:$0x3] }
0x10dc   : > { %v1447_v4 = vpack.c.bf16 %v1446_v3, %v1446_v3  ;;  %v1528_v20 = vld [vmem:[#allocation2] sm:$0x3]  ;;  %v1067_v3 = vrot.slane %v1059_v0, %v2229_v28 }
0x10de   : > { %1991 = vmatmul.mubr.msk.bf16.vlgmr.msra.gmra.mrb[16].mxu0 %vm479_vm2, %v1447_v4  ;;  %v1299_v4 = vpack.c.bf16 %v2402_v36, %v2402_v36 }
0x10e0   : > { %v1307_v46 = vrot.slane %v1299_v4, %v2229_v28 }
0x11b1   : > { %v1485_v6 = vpop.f32.mrb[16].mxu0 }
0x11b2   : > { %v1491_v8 = vadd.f32 %v1485_v6, %v1445_v5  ;;  %v1992_v9 = vpop.f32.mrb[17].mxu0  ;;  %v833_v5 = vrot.slane %v826_v63, %v2229_v28 }
0x11b3   : > { %v1488_v10 = vpop.f32.mrb[18].mxu0  ;;  %v1314_v9 = vrot.slane %v1307_v46, %v2229_v28 }
0x11b4   : > { %2075 = vtanh.f32 %v1491_v8  ;;  %v1993_v11 = vpop.f32.mrb[19].mxu0  ;;  %v1492_v15 = vmul.f32 0.5, %v1491_v8  ;;  %v1074_v8 = vrot.slane %v1067_v3, %v2229_v28 }
0x11b6   : > { %2077 = vtanh.f32 %v1492_v15 }
0x11be   : > { %v2076_v14 = vpop.eup %2075 }
0x11bf   : > { %1504 = vrot.lane.b32.xlu0 %v2076_v14, %s2115_s28 }
0x11c0   : > { %v2078_v16 = vpop.eup %2077 }
0x11c1   : > { %v1494_v17 = vadd.f32 1.0, %v2078_v16 }
0x11c3   : > { %v1495_v18 = vmul.f32 0.5, %v1494_v17 }
0x11c5   : > { %v1502_v22 = vmul.f32 %v1500_v21, %v1495_v18 }
0x1231   : > { %v1505_v19 = vpop.permute.xlu0 %1504 }
0x1232   : > { %v1507_v12 = vmul.f32 %v1505_v19, %v1495_v18 }
0x1234   : > { %1509 = vrot.lane.b32.xlu0 %v1507_v12, %s2116_s29 }
0x1238   : > { %1530 = vrot.lane.b32.xlu0 %v1528_v20, %s2117_s6 }
0x12a6   : > { %v1510_v23 = vpop.permute.xlu0 %1509 }
0x12a7   : > { %v1512_v24 = vadd.f32 %v1510_v23, %v1502_v22 }
0x12a9   : > { %2079 = vtanh.f32 %v1512_v24  ;;  %1524 = vrot.lane.b32.xlu0 %v1512_v24, %s2117_s6 }
0x12aa   : > { %v1531_v26 = vpop.permute.xlu0 %1530 }
0x12b3   : > { %v2080_v25 = vpop.eup %2079 }
0x12b4   : > { %1515 = vrot.lane.b32.xlu1 %v2080_v25, %s2115_s28 }
0x131b   : > { %v1525_v27 = vpop.permute.xlu0 %1524 }
0x131c   : > { %1527 = vst.msk [vmem:[#allocation3] sm:$0x3] %vm383_vm1, %v1525_v27 }
0x1323   : > { %v1617_v29 = vld [vmem:[#allocation3] sm:$0x3] }
0x1324   : > { %1619 = vrot.lane.b32.xlu0 %v1617_v29, %s2116_s29 }
0x1326   : > { %v1516_v30 = vpop.permute.xlu1 %1515 }
0x1327   : > { %v1518_v31 = vmul.f32 %v1516_v30, %v1495_v18 }
0x1329   : > { %1535 = vrot.lane.b32.xlu1 %v1518_v31, %s2116_s29  ;;  %v1539_v6 = vpack.c.bf16 %v1518_v31, %v1518_v31 }
0x132b   : > { %v1547_v40 = vrot.slane %v1539_v6, %v2229_v28 }
0x132d   : > { %v1554_v36 = vrot.slane %v1547_v40, %v2229_v28 }
0x1396   : > { %v1620_v58 = vpop.permute.xlu0 %1619 }
0x139b   : > { %v1536_v32 = vpop.permute.xlu1 %1535 }
0x139c   : > { %1538 = vst.msk [vmem:[#allocation2] sm:$0x3] %vm383_vm1, %v1536_v32 }
0x13a3   : > { %v1566_v33 = vld [vmem:[#allocation2] sm:$0x3] }
0x13a4   : > { %v1567_v34 = vpack.c.bf16 %v1566_v33, %v1566_v33  ;;  %v1648_v52 = vld [vmem:[#allocation2] sm:$0x3] }
0x13a6   : > { %1999 = vmatmul.mubr.msk.bf16.vlgmr.msra.gmra.mrb[16].mxu1 %vm479_vm2, %v1567_v34 }
0x1479   : > { %v1605_v37 = vpop.f32.mrb[16].mxu1 }
0x147a   : > { %v1611_v38 = vadd.f32 %v1605_v37, %v1565_v35  ;;  %v2000_v39 = vpop.f32.mrb[17].mxu1 }
0x147b   : > { %v1608_v41 = vpop.f32.mrb[18].mxu1 }
0x147c   : > { %2081 = vtanh.f32 %v1611_v38  ;;  %v2001_v42 = vpop.f32.mrb[19].mxu1  ;;  %v1612_v44 = vmul.f32 0.5, %v1611_v38 }
0x147e   : > { %2083 = vtanh.f32 %v1612_v44 }
0x1486   : > { %v2082_v43 = vpop.eup %2081 }
0x1487   : > { %1624 = vrot.lane.b32.xlu1 %v2082_v43, %s2115_s28 }
0x1488   : > { %v2084_v45 = vpop.eup %2083 }
0x1489   : > { %v1614_v50 = vadd.f32 1.0, %v2084_v45 }
0x148b   : > { %v1615_v47 = vmul.f32 0.5, %v1614_v50 }
0x148d   : > { %v1622_v59 = vmul.f32 %v1620_v58, %v1615_v47 }
0x14f9   : > { %v1625_v48 = vpop.permute.xlu1 %1624 }
0x14fa   : > { %v1627_v54 = vmul.f32 %v1625_v48, %v1615_v47 }
0x14fc   : > { %1629 = vrot.lane.b32.xlu1 %v1627_v54, %s2116_s29 }
0x1500   : > { %1650 = vrot.lane.b32.xlu1 %v1648_v52, %s2117_s6 }
0x1504   : > { %955 = vrot.lane.b32.xlu1 %v954_v56, %s2116_s29 }
0x1508   : > { %1195 = vrot.lane.b32.xlu1 %v1194_v57, %s2116_s29 }
0x150c   : > { %1435 = vrot.lane.b32.xlu1 %v1434_v7, %s2116_s29 }
0x156e   : > { %v1630_v60 = vpop.permute.xlu1 %1629 }
0x156f   : > { %v1632_v61 = vadd.f32 %v1630_v60, %v1622_v59 }
0x1571   : > { %2085 = vtanh.f32 %v1632_v61  ;;  %1644 = vrot.lane.b32.xlu1 %v1632_v61, %s2117_s6 }
0x1572   : > { %v1651_v10 = vpop.permute.xlu1 %1650 }
0x1576   : > { %v956_v11 = vpop.permute.xlu1 %955 }
0x157a   : > { %v1196_v14 = vpop.permute.xlu1 %1195 }
0x157b   : > { %v2086_v1 = vpop.eup %2085 }
0x157c   : > { %1635 = vrot.lane.b32.xlu0 %v2086_v1, %s2115_s28 }
0x157e   : > { %v1436_v15 = vpop.permute.xlu1 %1435 }
0x1580   : > { %834 = vrot.lane.b32.xlu0 %v833_v5, %s2116_s29 }
0x1584   : > { %1075 = vrot.lane.b32.xlu0 %v1074_v8, %s2116_s29 }
0x1588   : > { %1315 = vrot.lane.b32.xlu0 %v1314_v9, %s2116_s29 }
0x158c   : > { %1555 = vrot.lane.b32.xlu0 %v1554_v36, %s2116_s29 }
0x15e3   : > { %v1645_v16 = vpop.permute.xlu1 %1644 }
0x15e4   : > { %1647 = vst.msk [vmem:[#allocation3] sm:$0x3] %vm383_vm1, %v1645_v16 }
0x15ee   : > { %v1636_v17 = vpop.permute.xlu0 %1635 }
0x15ef   : > { %v1638_v18 = vmul.f32 %v1636_v17, %v1615_v47 }
0x15f1   : > { %v1659_v19 = vpack.c.bf16 %v1638_v18, %v1638_v18  ;;  %1655 = vrot.lane.b32.xlu0 %v1638_v18, %s2116_s29 }
0x15f2   : > { %v835_v12 = vpop.permute.xlu0 %834 }
0x15f3   : > { %v1667_v20 = vrot.slane %v1659_v19, %v2229_v28  ;;  %839 = vst.msk [vmem:[%s837_s17] sm:$0x1] %vm838_vm3, %v835_v12 }
0x15f4   : > { %959 = vst.msk [vmem:[%s958_s22] sm:$0x1] %vm838_vm3, %v956_v11 }
0x15f5   : > { %v1674_v21 = vrot.slane %v1667_v20, %v2229_v28 }
0x15f6   : > { %v1076_v22 = vpop.permute.xlu0 %1075 }
0x15f7   : > { %1079 = vst.msk [vmem:[%s1078_s30] sm:$0x1] %vm838_vm3, %v1076_v22  ;;  %1675 = vrot.lane.b32.xlu1 %v1674_v21, %s2116_s29 }
0x15f8   : > { %1199 = vst.msk [vmem:[%s1198_s24] sm:$0x1] %vm838_vm3, %v1196_v14 }
0x15fa   : > { %v1316_v23 = vpop.permute.xlu0 %1315 }
0x15fb   : > { %1319 = vst.msk [vmem:[%s1318_s25] sm:$0x1] %vm838_vm3, %v1316_v23 }
0x15fc   : > { %1439 = vst.msk [vmem:[%s1438_s7] sm:$0x1] %vm838_vm3, %v1436_v15 }
0x15fe   : > { %v1556_v24 = vpop.permute.xlu0 %1555 }
0x15ff   : > { %1559 = vst.msk [vmem:[%s1558_s10] sm:$0x1] %vm838_vm3, %v1556_v24 }
0x1663   : > { %v1656_v25 = vpop.permute.xlu0 %1655 }
0x1664   : > { %1658 = vst.msk [vmem:[#allocation2] sm:$0x3] %vm383_vm1, %v1656_v25 }
0x1669   : > { %v1676_v28 = vpop.permute.xlu1 %1675 }
0x166a   : > { %1679 = vst.msk [vmem:[%s1678_s13] sm:$0x1] %vm838_vm3, %v1676_v28 }
0x166b PF: > { %s15_s20 = sadd.s32 1, %s2109_s20   ;;  %s2540_s18 = smov %s2105_s19 }
0x166c   : > { %p12_p6 = scmp.ge.s32.totalorder %s15_s20, 4   ;;  %s2541_s19 = smov %s2543_s21 }
0x166e   :  { %14 = sbr.rel (!%p12_p6) target bundleno = 2 (0x2), region = 102 }

</bundles_post_ra>
